<compile_context>
chip_gen: v7x
topology: tpu7x:2x2x1
jax: 0.10.0
libtpu: 0.0.40
codegen_flags: <defaults>
</compile_context>

<pallas_src>
import functools

import numpy as np
import jax
import jax.numpy as jnp
from jax.experimental import pallas as pl
from jax.experimental.pallas import tpu as pltpu

_BN_EPS = 1e-5
_TILE_M = 512          # rows (N*H*W) per grid step, multiple of 8


def _round_up(x, m):
    return ((x + m - 1) // m) * m


# ----------------------------------------------------------------------------
# elementwise helpers (used inside kernels)
# ----------------------------------------------------------------------------
def _erf(x):
    # Abramowitz & Stegun 7.1.26 rational approximation, |err| < 1.5e-7
    # (exact to f32 precision).  nn.GELU() default is the exact erf GELU.
    a1 = 0.254829592
    a2 = -0.284496736
    a3 = 1.421413741
    a4 = -1.453152027
    a5 = 1.061405429
    p = 0.3275911
    sign = jnp.where(x >= 0.0, 1.0, -1.0)
    ax = jnp.abs(x)
    t = 1.0 / (1.0 + p * ax)
    poly = ((((a5 * t + a4) * t + a3) * t + a2) * t + a1) * t
    y = 1.0 - poly * jnp.exp(-ax * ax)
    return sign * y


def _gelu(x):
    return 0.5 * x * (1.0 + _erf(x * np.float32(1.0 / np.sqrt(2.0))))


def _apply_act(y, act):
    if act == "gelu":
        return _gelu(y)
    if act == "sigmoid":
        return 1.0 / (1.0 + jnp.exp(-y))
    return y


# ----------------------------------------------------------------------------
# Pallas kernels
# ----------------------------------------------------------------------------
def _conv_bn_act_fused_kernel(p_ref, w_ref, b_ref, g_ref, bt_ref, o_ref, *,
                              m_true, tile_m, act):
    """Single row tile: conv matmul + exact batch stats + BN + activation."""
    y = jnp.dot(p_ref[...], w_ref[...],
                preferred_element_type=jnp.float32) + b_ref[...]
    if tile_m != m_true:   # zero padded rows' contribution to the statistics
        rows = jax.lax.broadcasted_iota(jnp.int32, (tile_m, 1), 0)
        ym = jnp.where(rows < m_true, y, 0.0)
    else:
        ym = y
    inv_m = np.float32(1.0 / m_true)
    mean = jnp.sum(ym, axis=0, keepdims=True) * inv_m
    var = jnp.maximum(jnp.sum(ym * ym, axis=0, keepdims=True) * inv_m
                      - mean * mean, 0.0)                  # biased variance
    scale = jax.lax.rsqrt(var + _BN_EPS) * g_ref[...]
    shift = bt_ref[...] - mean * scale
    o_ref[...] = _apply_act(y * scale + shift, act)


def _conv_stats_kernel(p_ref, w_ref, b_ref, y_ref, s_ref, *,
                       tile_m, m_true, need_mask):
    """One row tile: y = patches @ W + b (bf16 MXU, f32 acc), write y tile,
    accumulate per-channel partial sum / sum-of-squares for BatchNorm."""
    i = pl.program_id(0)
    y = jnp.dot(p_ref[...], w_ref[...],
                preferred_element_type=jnp.float32) + b_ref[...]
    y_ref[...] = y

    @pl.when(i == 0)
    def _():
        s_ref[...] = jnp.zeros_like(s_ref)

    if need_mask:   # zero contribution of padded rows beyond the true N*H*W
        rows = i * tile_m + jax.lax.broadcasted_iota(jnp.int32, (tile_m, 1), 0)
        y = jnp.where(rows < m_true, y, 0.0)
    s_ref[0:1, :] += jnp.sum(y, axis=0, keepdims=True)
    s_ref[1:2, :] += jnp.sum(y * y, axis=0, keepdims=True)


def _conv_act_kernel(p_ref, w_ref, b_ref, o_ref, *, act):
    """Conv matmul + bias + activation (no BatchNorm)."""
    y = jnp.dot(p_ref[...], w_ref[...],
                preferred_element_type=jnp.float32) + b_ref[...]
    o_ref[...] = _apply_act(y, act)


def _bn_act_kernel(y_ref, s_ref, g_ref, bt_ref, o_ref, *, inv_m, act):
    """Finalize batch statistics and apply normalize + gamma/beta + activation."""
    s = s_ref[...]
    mean = s[0:1, :] * inv_m
    var = jnp.maximum(s[1:2, :] * inv_m - mean * mean, 0.0)   # biased variance
    scale = jax.lax.rsqrt(var + _BN_EPS) * g_ref[...]
    shift = bt_ref[...] - mean * scale
    o_ref[...] = _apply_act(y_ref[...] * scale + shift, act)


def _max4_kernel(a_ref, b_ref, c_ref, d_ref, o_ref):
    o_ref[...] = jnp.maximum(jnp.maximum(a_ref[...], b_ref[...]),
                             jnp.maximum(c_ref[...], d_ref[...]))


# ----------------------------------------------------------------------------
# wrappers around pallas_call
# ----------------------------------------------------------------------------
def _conv_call(patches, w, b, *, m_true, tile_m, with_stats, act):
    mp, kdim = patches.shape
    cout = w.shape[1]
    grid = (mp // tile_m,)
    in_specs = [pl.BlockSpec((tile_m, kdim), lambda i: (i, 0)),
                pl.BlockSpec((kdim, cout), lambda i: (0, 0)),
                pl.BlockSpec((1, cout), lambda i: (0, 0))]
    if with_stats:
        kern = functools.partial(_conv_stats_kernel, tile_m=tile_m,
                                 m_true=m_true, need_mask=(mp != m_true))
        out_shape = (jax.ShapeDtypeStruct((mp, cout), jnp.float32),
                     jax.ShapeDtypeStruct((2, cout), jnp.float32))
        out_specs = (pl.BlockSpec((tile_m, cout), lambda i: (i, 0)),
                     pl.BlockSpec((2, cout), lambda i: (0, 0)))
        dims = ("arbitrary",)        # stats accumulate across the row-tile axis
    else:
        kern = functools.partial(_conv_act_kernel, act=act)
        out_shape = jax.ShapeDtypeStruct((mp, cout), jnp.float32)
        out_specs = pl.BlockSpec((tile_m, cout), lambda i: (i, 0))
        dims = ("parallel",)
    return pl.pallas_call(
        kern, out_shape=out_shape, grid=grid,
        in_specs=in_specs, out_specs=out_specs,
        compiler_params=pltpu.CompilerParams(dimension_semantics=dims),
    )(patches, w, b)


def _conv_bn_fused_call(patches, w, b, gamma, beta, *, m_true, tile_m, act):
    mp, kdim = patches.shape
    cout = w.shape[1]
    kern = functools.partial(_conv_bn_act_fused_kernel, m_true=m_true,
                             tile_m=tile_m, act=act)
    return pl.pallas_call(
        kern, out_shape=jax.ShapeDtypeStruct((mp, cout), jnp.float32),
        grid=(1,),
        in_specs=[pl.BlockSpec((tile_m, kdim), lambda i: (0, 0)),
                  pl.BlockSpec((kdim, cout), lambda i: (0, 0)),
                  pl.BlockSpec((1, cout), lambda i: (0, 0)),
                  pl.BlockSpec((1, cout), lambda i: (0, 0)),
                  pl.BlockSpec((1, cout), lambda i: (0, 0))],
        out_specs=pl.BlockSpec((tile_m, cout), lambda i: (0, 0)),
    )(patches, w, b, gamma, beta)


def _bn_act_call(y, stats, gamma, beta, *, m_true, tile_m, act):
    mp, cout = y.shape
    kern = functools.partial(_bn_act_kernel, inv_m=np.float32(1.0 / m_true),
                             act=act)
    return pl.pallas_call(
        kern, out_shape=jax.ShapeDtypeStruct((mp, cout), jnp.float32),
        grid=(mp // tile_m,),
        in_specs=[pl.BlockSpec((tile_m, cout), lambda i: (i, 0)),
                  pl.BlockSpec((2, cout), lambda i: (0, 0)),
                  pl.BlockSpec((1, cout), lambda i: (0, 0)),
                  pl.BlockSpec((1, cout), lambda i: (0, 0))],
        out_specs=pl.BlockSpec((tile_m, cout), lambda i: (i, 0)),
        compiler_params=pltpu.CompilerParams(dimension_semantics=("parallel",)),
    )(y, stats, gamma, beta)


def _im2col(x, k):
    """(N,H,W,C) f32 -> (N*H*W, k*k*C) bf16 patch matrix ('same' padding)."""
    n, h, w, c = x.shape
    pad = (k - 1) // 2
    xp = jnp.pad(x, ((0, 0), (pad, pad), (pad, pad), (0, 0)))
    cols = [xp[:, dy:dy + h, dx:dx + w, :] for dy in range(k) for dx in range(k)]
    patches = jnp.concatenate(cols, axis=-1)
    return patches.reshape(n * h * w, k * k * c).astype(jnp.bfloat16)


def conv_layer(x, p, *, use_bn, act, tile_m=_TILE_M):
    """Fused Conv2d(+BatchNorm train)(+activation) on an NHWC activation."""
    n, h, w, _ = x.shape
    k, cout = p['k'], p['cout']
    patches = _im2col(x, k)
    m = n * h * w
    tm = min(tile_m, _round_up(m, 8))
    mp = _round_up(m, tm)
    if mp != m:
        patches = jnp.pad(patches, ((0, mp - m), (0, 0)))

    wq, b = p['w'], p['b']
    gamma, beta = p['gamma'], p['beta']
    if cout < 8:                       # lane-pad tiny output channel counts
        cpad = 8 - cout
        wq = jnp.pad(wq, ((0, 0), (0, cpad)))
        b = jnp.pad(b, ((0, 0), (0, cpad)))
        gamma = jnp.pad(gamma, ((0, 0), (0, cpad)))
        beta = jnp.pad(beta, ((0, 0), (0, cpad)))

    if not use_bn:
        out = _conv_call(patches, wq, b, m_true=m, tile_m=tm,
                         with_stats=False, act=act)
    elif mp == tm:
        # single row tile: conv + exact batch stats + BN + act in ONE kernel
        out = _conv_bn_fused_call(patches, wq, b, gamma, beta,
                                  m_true=m, tile_m=tm, act=act)
    else:
        # multi-tile: stats accumulated across row tiles, finalized in pass 2
        y, stats = _conv_call(patches, wq, b, m_true=m, tile_m=tm,
                              with_stats=True, act=None)
        out = _bn_act_call(y, stats, gamma, beta,
                           m_true=m, tile_m=tm, act=act)
    out = out[:m, :cout]
    return out.reshape(n, h, w, cout)


def maxpool2(x, tile_m=1024):
    """2x2 stride-2 max pool; four strided views + elementwise max kernel."""
    n, h, w, c = x.shape
    ho, wo = h // 2, w // 2
    views = [x[:, dy::2, dx::2, :].reshape(n * ho * wo, c)
             for dy in (0, 1) for dx in (0, 1)]
    m = n * ho * wo
    tm = min(tile_m, _round_up(m, 8))
    mp = _round_up(m, tm)
    if mp != m:
        views = [jnp.pad(v, ((0, mp - m), (0, 0))) for v in views]
    out = pl.pallas_call(
        _max4_kernel, out_shape=jax.ShapeDtypeStruct((mp, c), x.dtype),
        grid=(mp // tm,),
        in_specs=[pl.BlockSpec((tm, c), lambda i: (i, 0))] * 4,
        out_specs=pl.BlockSpec((tm, c), lambda i: (i, 0)),
        compiler_params=pltpu.CompilerParams(dimension_semantics=("parallel",)),
    )(*views)
    return out[:m].reshape(n, ho, wo, c)


# ----------------------------------------------------------------------------
# bilinear x2 upsampling (align_corners=False), PyTorch semantics — layout glue
# ----------------------------------------------------------------------------
def _interp_matrix(s_in, s_out):
    m = np.zeros((s_out, s_in), np.float32)
    scale = s_in / s_out
    for i in range(s_out):
        src = max((i + 0.5) * scale - 0.5, 0.0)
        i0 = min(int(np.floor(src)), s_in - 1)
        i1 = min(i0 + 1, s_in - 1)
        lam = src - i0
        m[i, i0] += 1.0 - lam
        m[i, i1] += lam
    return jnp.asarray(m)


def upsample_bilinear2x(x):
    n, h, w, c = x.shape
    x = jnp.einsum('oh,nhwc->nowc', _interp_matrix(h, 2 * h), x)
    x = jnp.einsum('ow,nhwc->nhoc', _interp_matrix(w, 2 * w), x)
    return x


# ----------------------------------------------------------------------------
# parameters (deterministic, PyTorch-style init ranges)
# ----------------------------------------------------------------------------
def _init_conv(key, cin, cout, k):
    kw_key, kb_key = jax.random.split(key)
    fan_in = cin * k * k
    bound = 1.0 / np.sqrt(fan_in)
    w = jax.random.uniform(kw_key, (k * k * cin, cout), jnp.float32, -bound, bound)
    b = jax.random.uniform(kb_key, (1, cout), jnp.float32, -bound, bound)
    return w.astype(jnp.bfloat16), b


def init_params(key, in_channels=1, channels=(32, 64, 128, 256)):
    c0, c1, c2, _ = channels
    defs = {
        'enc1': [(in_channels, c0, 7), (c0, c0, 3), (c0, c0, 3)],
        'enc2': [(c0, c1, 3), (c1, c1, 3), (c1, c1, 3)],
        'enc3': [(c1, c2, 3), (c2, c2, 3), (c2, c2, 3)],
        'dec3': [(c2 + c2, c1, 3), (c1, c1, 3), (c1, c1, 3)],
        'dec2': [(c1 + c1, c0, 3), (c0, c0, 3), (c0, c0, 3)],
        'dec1': [(c0 + c0, in_channels, 3)],
    }
    params = {}
    keys = jax.random.split(key, sum(len(v) for v in defs.values()))
    ki = 0
    for name, layers in defs.items():
        plist = []
        for (cin, cout, k) in layers:
            w, b = _init_conv(keys[ki], cin, cout, k)
            ki += 1
            plist.append({'w': w, 'b': b, 'k': k, 'cout': cout,
                          'gamma': jnp.ones((1, cout), jnp.float32),
                          'beta': jnp.zeros((1, cout), jnp.float32)})
        params[name] = plist
    return params


# ----------------------------------------------------------------------------
# forward
# ----------------------------------------------------------------------------
def unet_forward(params, x):
    """x: (N, H, W, Cin) NHWC float32."""
    def block(x, name, use_bn=True, act='gelu'):
        for p in params[name]:
            x = conv_layer(x, p, use_bn=use_bn, act=act)
        return x

    enc1 = block(x, 'enc1')
    x = maxpool2(enc1)
    enc2 = block(x, 'enc2')
    x = maxpool2(enc2)
    enc3 = block(x, 'enc3')
    x = maxpool2(enc3)
    # (enc4 / pool4 / up4 / dec4 are never used by the reference forward)
    x = upsample_bilinear2x(x)
    x = jnp.concatenate([x, enc3], axis=-1)
    x = block(x, 'dec3')
    x = upsample_bilinear2x(x)
    x = jnp.concatenate([x, enc2], axis=-1)
    x = block(x, 'dec2')
    x = upsample_bilinear2x(x)
    x = jnp.concatenate([x, enc1], axis=-1)
    x = block(x, 'dec1', use_bn=False, act='sigmoid')
    return x


if __name__ == "__main__":
    key = jax.random.PRNGKey(0)
    pkey, xkey = jax.random.split(key)
    params = init_params(pkey, in_channels=1, channels=(32, 64, 128, 256))

    N, C, H, W = 2, 1, 16, 16
    x_nchw = jax.random.normal(xkey, (N, C, H, W), jnp.float32)
    x_nhwc = jnp.transpose(x_nchw, (0, 2, 3, 1))          # NCHW -> NHWC

    out_nhwc = unet_forward(params, x_nhwc)
    out = jnp.transpose(out_nhwc, (0, 3, 1, 2))           # back to NCHW
    jax.block_until_ready(out)

    assert out.shape == (N, C, H, W), out.shape
    assert bool(jnp.all(jnp.isfinite(out)))
    assert bool(jnp.all((out >= 0.0) & (out <= 1.0)))     # sigmoid output range
    print("KERNEL_OK")
</pallas_src>

<mosaic_0001>
module attributes {stable_mosaic.version = 11 : i64} {
  func.func @_conv_bn_act_fused_kernel(%arg0: i32, %arg1: memref<512x49xbf16, #tpu.memory_space<vmem>>, %arg2: memref<49x32xbf16, #tpu.memory_space<vmem>>, %arg3: memref<1x32xf32, #tpu.memory_space<vmem>>, %arg4: memref<1x32xf32, #tpu.memory_space<vmem>>, %arg5: memref<1x32xf32, #tpu.memory_space<vmem>>, %arg6: memref<512x32xf32, #tpu.memory_space<vmem>>) attributes {dimension_semantics = [#tpu.dimension_semantics<arbitrary>], iteration_bounds = array<i64: 1>, scalar_prefetch = 0 : i64, scratch_operands = 0 : i64, tpu.core_type = #tpu.core_type<tc>, window_params = [{pipeline_mode = #tpu.pipeline_mode<synchronous>, transform_indices = @transform_0, window_bounds = array<i64: 512, 49>}, {pipeline_mode = #tpu.pipeline_mode<synchronous>, transform_indices = @transform_1, window_bounds = array<i64: 49, 32>}, {pipeline_mode = #tpu.pipeline_mode<synchronous>, transform_indices = @transform_2, window_bounds = array<i64: 1, 32>}, {pipeline_mode = #tpu.pipeline_mode<synchronous>, transform_indices = @transform_3, window_bounds = array<i64: 1, 32>}, {pipeline_mode = #tpu.pipeline_mode<synchronous>, transform_indices = @transform_4, window_bounds = array<i64: 1, 32>}, {pipeline_mode = #tpu.pipeline_mode<synchronous>, transform_indices = @transform_5, window_bounds = array<i64: 512, 32>}]} {
    %c0 = arith.constant 0 : index
    %c0_0 = arith.constant 0 : index
    %0 = vector.load %arg1[%c0, %c0_0] : memref<512x49xbf16, #tpu.memory_space<vmem>>, vector<512x49xbf16>
    %c0_1 = arith.constant 0 : index
    %c0_2 = arith.constant 0 : index
    %1 = vector.load %arg2[%c0_1, %c0_2] : memref<49x32xbf16, #tpu.memory_space<vmem>>, vector<49x32xbf16>
    %cst = arith.constant dense<0.000000e+00> : vector<512x32xf32>
    %2 = tpu.matmul %0, %1, %cst {dimension_numbers = #tpu.dot_dimension_numbers<[1], [0], [0], [1], [0, 0, 1, 1], [], []>} : vector<512x49xbf16>, vector<49x32xbf16>, vector<512x32xf32> -> vector<512x32xf32>
    %c0_3 = arith.constant 0 : index
    %c0_4 = arith.constant 0 : index
    %3 = vector.load %arg3[%c0_3, %c0_4] : memref<1x32xf32, #tpu.memory_space<vmem>>, vector<1x32xf32>
    %4 = vector.broadcast %3 : vector<1x32xf32> to vector<512x32xf32>
    %5 = arith.addf %2, %4 : vector<512x32xf32>
    %cst_5 = arith.constant dense<0.000000e+00> : vector<32xf32>
    %6 = vector.multi_reduction <add>, %5, %cst_5 [0] : vector<512x32xf32> to vector<32xf32>
    %7 = vector.shape_cast %6 : vector<32xf32> to vector<1x32xf32>
    %cst_6 = arith.constant 0.001953125 : f32
    %8 = vector.broadcast %cst_6 : f32 to vector<1x32xf32>
    %9 = arith.mulf %7, %8 : vector<1x32xf32>
    %10 = arith.mulf %5, %5 : vector<512x32xf32>
    %cst_7 = arith.constant dense<0.000000e+00> : vector<32xf32>
    %11 = vector.multi_reduction <add>, %10, %cst_7 [0] : vector<512x32xf32> to vector<32xf32>
    %12 = vector.shape_cast %11 : vector<32xf32> to vector<1x32xf32>
    %cst_8 = arith.constant 0.001953125 : f32
    %13 = vector.broadcast %cst_8 : f32 to vector<1x32xf32>
    %14 = arith.mulf %12, %13 : vector<1x32xf32>
    %15 = arith.mulf %9, %9 : vector<1x32xf32>
    %16 = arith.subf %14, %15 : vector<1x32xf32>
    %cst_9 = arith.constant 0.000000e+00 : f32
    %17 = vector.broadcast %cst_9 : f32 to vector<1x32xf32>
    %18 = arith.maximumf %16, %17 : vector<1x32xf32>
    %cst_10 = arith.constant 9.99999974E-6 : f32
    %19 = vector.broadcast %cst_10 : f32 to vector<1x32xf32>
    %20 = arith.addf %18, %19 : vector<1x32xf32>
    %21 = math.rsqrt %20 : vector<1x32xf32>
    %c0_11 = arith.constant 0 : index
    %c0_12 = arith.constant 0 : index
    %22 = vector.load %arg4[%c0_11, %c0_12] : memref<1x32xf32, #tpu.memory_space<vmem>>, vector<1x32xf32>
    %23 = arith.mulf %21, %22 : vector<1x32xf32>
    %c0_13 = arith.constant 0 : index
    %c0_14 = arith.constant 0 : index
    %24 = vector.load %arg5[%c0_13, %c0_14] : memref<1x32xf32, #tpu.memory_space<vmem>>, vector<1x32xf32>
    %25 = arith.mulf %9, %23 : vector<1x32xf32>
    %26 = arith.subf %24, %25 : vector<1x32xf32>
    %27 = vector.broadcast %23 : vector<1x32xf32> to vector<512x32xf32>
    %28 = arith.mulf %5, %27 : vector<512x32xf32>
    %29 = vector.broadcast %26 : vector<1x32xf32> to vector<512x32xf32>
    %30 = arith.addf %28, %29 : vector<512x32xf32>
    %cst_15 = arith.constant 5.000000e-01 : f32
    %31 = vector.broadcast %cst_15 : f32 to vector<512x32xf32>
    %32 = arith.mulf %31, %30 : vector<512x32xf32>
    %cst_16 = arith.constant 0.707106769 : f32
    %33 = vector.broadcast %cst_16 : f32 to vector<512x32xf32>
    %34 = arith.mulf %30, %33 : vector<512x32xf32>
    %cst_17 = arith.constant 0.000000e+00 : f32
    %35 = vector.broadcast %cst_17 : f32 to vector<512x32xf32>
    %36 = arith.cmpf oge, %34, %35 : vector<512x32xf32>
    %cst_18 = arith.constant 1.000000e+00 : f32
    %cst_19 = arith.constant -1.000000e+00 : f32
    %37 = vector.broadcast %cst_18 : f32 to vector<512x32xf32>
    %38 = vector.broadcast %cst_19 : f32 to vector<512x32xf32>
    %39 = arith.select %36, %37, %38 : vector<512x32xi1>, vector<512x32xf32>
    %40 = math.absf %34 : vector<512x32xf32>
    %cst_20 = arith.constant 0.327591091 : f32
    %41 = vector.broadcast %cst_20 : f32 to vector<512x32xf32>
    %42 = arith.mulf %41, %40 : vector<512x32xf32>
    %cst_21 = arith.constant 1.000000e+00 : f32
    %43 = vector.broadcast %cst_21 : f32 to vector<512x32xf32>
    %44 = arith.addf %43, %42 : vector<512x32xf32>
    %cst_22 = arith.constant 1.000000e+00 : f32
    %45 = vector.broadcast %cst_22 : f32 to vector<512x32xf32>
    %46 = arith.divf %45, %44 : vector<512x32xf32>
    %cst_23 = arith.constant 1.06140542 : f32
    %47 = vector.broadcast %cst_23 : f32 to vector<512x32xf32>
    %48 = arith.mulf %47, %46 : vector<512x32xf32>
    %cst_24 = arith.constant -1.45315206 : f32
    %49 = vector.broadcast %cst_24 : f32 to vector<512x32xf32>
    %50 = arith.addf %48, %49 : vector<512x32xf32>
    %51 = arith.mulf %50, %46 : vector<512x32xf32>
    %cst_25 = arith.constant 1.42141378 : f32
    %52 = vector.broadcast %cst_25 : f32 to vector<512x32xf32>
    %53 = arith.addf %51, %52 : vector<512x32xf32>
    %54 = arith.mulf %53, %46 : vector<512x32xf32>
    %cst_26 = arith.constant -0.284496725 : f32
    %55 = vector.broadcast %cst_26 : f32 to vector<512x32xf32>
    %56 = arith.addf %54, %55 : vector<512x32xf32>
    %57 = arith.mulf %56, %46 : vector<512x32xf32>
    %cst_27 = arith.constant 0.254829586 : f32
    %58 = vector.broadcast %cst_27 : f32 to vector<512x32xf32>
    %59 = arith.addf %57, %58 : vector<512x32xf32>
    %60 = arith.mulf %59, %46 : vector<512x32xf32>
    %cst_28 = arith.constant 0.000000e+00 : f32
    %61 = vector.broadcast %cst_28 : f32 to vector<512x32xf32>
    %62 = arith.subf %61, %40 : vector<512x32xf32>
    %63 = arith.mulf %62, %40 : vector<512x32xf32>
    %64 = math.exp %63 : vector<512x32xf32>
    %65 = arith.mulf %60, %64 : vector<512x32xf32>
    %cst_29 = arith.constant 1.000000e+00 : f32
    %66 = vector.broadcast %cst_29 : f32 to vector<512x32xf32>
    %67 = arith.subf %66, %65 : vector<512x32xf32>
    %68 = arith.mulf %39, %67 : vector<512x32xf32>
    %cst_30 = arith.constant 1.000000e+00 : f32
    %69 = vector.broadcast %cst_30 : f32 to vector<512x32xf32>
    %70 = arith.addf %69, %68 : vector<512x32xf32>
    %71 = arith.mulf %32, %70 : vector<512x32xf32>
    %c0_31 = arith.constant 0 : index
    %c0_32 = arith.constant 0 : index
    %72 = vector.load %arg6[%c0_31, %c0_32] : memref<512x32xf32, #tpu.memory_space<vmem>>, vector<512x32xf32>
    tpu.vector_store %arg6[%c0_31, %c0_32], %71 {strides = array<i32>} : memref<512x32xf32, #tpu.memory_space<vmem>>, vector<512x32xf32>,
    return
  }
  func.func @transform_0(%arg0: i32) -> (i32, i32) {
    %c0_i32 = arith.constant 0 : i32
    %c0_i32_0 = arith.constant 0 : i32
    %c0_i32_1 = arith.constant 0 : i32
    return %c0_i32, %c0_i32_0 : i32, i32
  }
  func.func @transform_1(%arg0: i32) -> (i32, i32) {
    %c0_i32 = arith.constant 0 : i32
    %c0_i32_0 = arith.constant 0 : i32
    %c0_i32_1 = arith.constant 0 : i32
    return %c0_i32, %c0_i32_0 : i32, i32
  }
  func.func @transform_2(%arg0: i32) -> (i32, i32) {
    %c0_i32 = arith.constant 0 : i32
    %c0_i32_0 = arith.constant 0 : i32
    %c0_i32_1 = arith.constant 0 : i32
    return %c0_i32, %c0_i32_0 : i32, i32
  }
  func.func @transform_3(%arg0: i32) -> (i32, i32) {
    %c0_i32 = arith.constant 0 : i32
    %c0_i32_0 = arith.constant 0 : i32
    %c0_i32_1 = arith.constant 0 : i32
    return %c0_i32, %c0_i32_0 : i32, i32
  }
  func.func @transform_4(%arg0: i32) -> (i32, i32) {
    %c0_i32 = arith.constant 0 : i32
    %c0_i32_0 = arith.constant 0 : i32
    %c0_i32_1 = arith.constant 0 : i32
    return %c0_i32, %c0_i32_0 : i32, i32
  }
  func.func @transform_5(%arg0: i32) -> (i32, i32) {
    %c0_i32 = arith.constant 0 : i32
    %c0_i32_0 = arith.constant 0 : i32
    %c0_i32_1 = arith.constant 0 : i32
    return %c0_i32, %c0_i32_0 : i32, i32
  }
}

</mosaic_0001>

<bundles_post_ra>
// kernel: tpu_custom_call.1
= control target key start
LH: loop header
LB: loop body
LE: loop exit
PB: predicated region body
PF: predicated region fallthrough
CT: control target
= control target key end

     0   :  { %vm377_vm0 = vcmask 1040384   ;;  %vm280_vm1 = vcmask 400384   ;;  %v3430_v5 = vmov 0   ;;  %vm8937_vm2 = vcmask 261120   ;;  %s8886_s1 = inlined_call_operand.vmem [shape: bf16[49,32], index: 1, kind: input, shape index: {}]   ;;  %s8887_s0 = inlined_call_operand.vmem [shape: bf16[512,49], index: 0, kind: input, shape index: {}]   ;;  %s8888_s2 = inlined_call_operand.vmem [shape: f32[1,32], index: 2, kind: input, shape index: {}]   ;;  %s8889_s3 = inlined_call_operand.vmem [shape: f32[1,32], index: 3, kind: input, shape index: {}]   ;;  %s8890_s4 = inlined_call_operand.vmem [shape: f32[1,32], index: 4, kind: input, shape index: {}]   ;;  %s8891_s5 = inlined_call_operand.vmem [shape: f32[512,32], index: 5, kind: output, shape index: {}]  }
   0x1   :  { %v3136_v0 = vld [vmem:[%s8886_s1] sm:$0xff]   ;;  %v3137_v1 = vld [vmem:[%s8886_s1 + $0x8] sm:$0xff]   ;;  %v3138_v2 = vld [vmem:[%s8886_s1 + $0x10] sm:$0xff]   ;;  %v379_v6 = vsel %vm377_vm0, 65535, %v3430_v5 }
   0x2   :  { %3054 = vmatprep.subr.bf16.mxu0 %v3136_v0  ;;  %3126 = vmatprep.subr.bf16.mxu1 %v3136_v0  ;;  %v3139_v3 = vld [vmem:[%s8886_s1 + $0x18] ss:$0 sps:$4 sm:$0x11]   ;;  %v3140_v4 = vld [vmem:[%s8887_s0] sm:$0xff]   ;;  %v3141_v8 = vld [vmem:[%s8887_s0 + $0x8] sm:$0xff]  }
   0x3   :  { %3055 = vmatpush3.bf16.msra.mxu0 %v3136_v0  ;;  %3130 = vmatpush3.bf16.msra.mxu1 %v3136_v0  ;;  %v381_v7 = vand.u32 %v3139_v3, %v379_v6  ;;  %v3142_v9 = vld [vmem:[%s8887_s0 + $0x10] sm:$0xff]   ;;  %v3143_v10 = vld [vmem:[%s8887_s0 + $0x18] sm:$0xff]   ;;  %v3156_v11 = vld [vmem:[%s8887_s0 + $0x80] sm:$0xff]  }
   0x4   :  { %3056 = vmatprep.subr.bf16.mxu0 %v3137_v1  ;;  %3127 = vmatprep.subr.bf16.mxu1 %v3137_v1  ;;  %v3157_v12 = vld [vmem:[%s8887_s0 + $0x88] sm:$0xff]   ;;  %v3158_v13 = vld [vmem:[%s8887_s0 + $0x90] sm:$0xff]   ;;  %v3144_v14 = vld [vmem:[%s8887_s0 + $0x20] sm:$0xff]  }
   0x5   :  { %3062 = vmatprep.mubr.msk.bf16.mxu0 %vm280_vm1, %v3140_v4  ;;  %3094 = vmatprep.mubr.msk.bf16.mxu1 %vm280_vm1, %v3156_v11  ;;  %v3159_v15 = vld [vmem:[%s8887_s0 + $0x98] sm:$0xff]   ;;  %v3160_v16 = vld [vmem:[%s8887_s0 + $0xa0] sm:$0xff]   ;;  %v3145_v17 = vld [vmem:[%s8887_s0 + $0x28] sm:$0xff]  }
   0x6   :  { %v3146_v18 = vld [vmem:[%s8887_s0 + $0x30] sm:$0xff]   ;;  %v3161_v19 = vld [vmem:[%s8887_s0 + $0xa8] sm:$0xff]   ;;  %v3147_v21 = vld [vmem:[%s8887_s0 + $0x38] sm:$0xff]  }
   0x7   :  { %3057 = vmatpush3.bf16.msra.mxu0 %v3137_v1  ;;  %3131 = vmatpush3.bf16.msra.mxu1 %v3137_v1  ;;  %v3162_v20 = vld [vmem:[%s8887_s0 + $0xb0] sm:$0xff]   ;;  %v3148_v22 = vld [vmem:[%s8887_s0 + $0x40] sm:$0xff]   ;;  %v3163_v23 = vld [vmem:[%s8887_s0 + $0xb8] sm:$0xff]  }
   0x8   :  { %3058 = vmatprep.subr.bf16.mxu0 %v3138_v2  ;;  %3128 = vmatprep.subr.bf16.mxu1 %v3138_v2  ;;  %v3164_v24 = vld [vmem:[%s8887_s0 + $0xc0] sm:$0xff]   ;;  %v3149_v25 = vld [vmem:[%s8887_s0 + $0x48] sm:$0xff]   ;;  %v3150_v26 = vld [vmem:[%s8887_s0 + $0x50] sm:$0xff]  }
   0x9   :  { %v3165_v27 = vld [vmem:[%s8887_s0 + $0xc8] sm:$0xff]   ;;  %v3166_v28 = vld [vmem:[%s8887_s0 + $0xd0] sm:$0xff]   ;;  %v3151_v29 = vld [vmem:[%s8887_s0 + $0x58] sm:$0xff]  }
   0xa   :  { %v3152_v30 = vld [vmem:[%s8887_s0 + $0x60] sm:$0xff]   ;;  %v3167_v31 = vld [vmem:[%s8887_s0 + $0xd8] sm:$0xff]   ;;  %v3153_v33 = vld [vmem:[%s8887_s0 + $0x68] sm:$0xff]  }
   0xb   :  { %3059 = vmatpush3.bf16.msra.mxu0 %v3138_v2  ;;  %3132 = vmatpush3.bf16.msra.mxu1 %v3138_v2  ;;  %v3168_v32 = vld [vmem:[%s8887_s0 + $0xe0] sm:$0xff]   ;;  %v3154_v34 = vld [vmem:[%s8887_s0 + $0x70] sm:$0xff]   ;;  %v3169_v35 = vld [vmem:[%s8887_s0 + $0xe8] sm:$0xff]  }
   0xc   :  { %3060 = vmatprep.subr.bf16.mxu0 %v381_v7  ;;  %3129 = vmatprep.subr.bf16.mxu1 %v381_v7  ;;  %v3170_v36 = vld [vmem:[%s8887_s0 + $0xf0] sm:$0xff]   ;;  %v3155_v37 = vld [vmem:[%s8887_s0 + $0x78] sm:$0xff]   ;;  %v3605_v39 = vld [vmem:[%s8888_s2] ss:$0 sm:$0xff] }
   0xd   :  { %v3171_v38 = vld [vmem:[%s8887_s0 + $0xf8] sm:$0xff]  }
   0xf   :  { %3061 = vmatpush3.bf16.msra.mxu0 %v381_v7  ;;  %3133 = vmatpush3.bf16.msra.mxu1 %v381_v7 }
  0x12   :  { %3063 = vmatmul.mubr.msk.bf16.vlgmr.msra.gmra.mrb[0].mxu0 %vm280_vm1, %v3141_v8  ;;  %3095 = vmatmul.mubr.msk.bf16.vlgmr.msra.gmra.mrb[0].mxu1 %vm280_vm1, %v3157_v12 }
  0x13   :  { %3066 = vmatprep.mubr.msk.bf16.mxu0 %vm280_vm1, %v3142_v9  ;;  %3098 = vmatprep.mubr.msk.bf16.mxu1 %vm280_vm1, %v3158_v13 }
  0x1a   :  { %3067 = vmatmul.mubr.msk.bf16.gmra.mrb[4].mxu0 %vm280_vm1, %v3143_v10  ;;  %3099 = vmatmul.mubr.msk.bf16.gmra.mrb[4].mxu1 %vm280_vm1, %v3159_v15 }
  0x1b   :  { %3070 = vmatprep.mubr.msk.bf16.mxu0 %vm280_vm1, %v3144_v14  ;;  %3102 = vmatprep.mubr.msk.bf16.mxu1 %vm280_vm1, %v3160_v16 }
  0x22   :  { %3071 = vmatmul.mubr.msk.bf16.gmra.mrb[8].mxu0 %vm280_vm1, %v3145_v17  ;;  %3103 = vmatmul.mubr.msk.bf16.gmra.mrb[8].mxu1 %vm280_vm1, %v3161_v19 }
  0x23   :  { %3074 = vmatprep.mubr.msk.bf16.mxu0 %vm280_vm1, %v3146_v18  ;;  %3106 = vmatprep.mubr.msk.bf16.mxu1 %vm280_vm1, %v3162_v20 }
  0x2a   :  { %3075 = vmatmul.mubr.msk.bf16.gmra.mrb[12].mxu0 %vm280_vm1, %v3147_v21  ;;  %3107 = vmatmul.mubr.msk.bf16.gmra.mrb[12].mxu1 %vm280_vm1, %v3163_v23 }
  0x2b   :  { %3078 = vmatprep.mubr.msk.bf16.mxu0 %vm280_vm1, %v3148_v22  ;;  %3110 = vmatprep.mubr.msk.bf16.mxu1 %vm280_vm1, %v3164_v24 }
  0x32   :  { %3079 = vmatmul.mubr.msk.bf16.gmra.mrb[16].mxu0 %vm280_vm1, %v3149_v25  ;;  %3111 = vmatmul.mubr.msk.bf16.gmra.mrb[16].mxu1 %vm280_vm1, %v3165_v27 }
  0x33   :  { %3082 = vmatprep.mubr.msk.bf16.mxu0 %vm280_vm1, %v3150_v26  ;;  %3114 = vmatprep.mubr.msk.bf16.mxu1 %vm280_vm1, %v3166_v28 }
  0x3a   :  { %3083 = vmatmul.mubr.msk.bf16.gmra.mrb[20].mxu0 %vm280_vm1, %v3151_v29  ;;  %3115 = vmatmul.mubr.msk.bf16.gmra.mrb[20].mxu1 %vm280_vm1, %v3167_v31 }
  0x3b   :  { %3086 = vmatprep.mubr.msk.bf16.mxu0 %vm280_vm1, %v3152_v30  ;;  %3118 = vmatprep.mubr.msk.bf16.mxu1 %vm280_vm1, %v3168_v32 }
  0x42   :  { %3087 = vmatmul.mubr.msk.bf16.gmra.mrb[24].mxu0 %vm280_vm1, %v3153_v33  ;;  %3119 = vmatmul.mubr.msk.bf16.gmra.mrb[24].mxu1 %vm280_vm1, %v3169_v35 }
  0x43   :  { %3090 = vmatprep.mubr.msk.bf16.mxu0 %vm280_vm1, %v3154_v34  ;;  %3122 = vmatprep.mubr.msk.bf16.mxu1 %vm280_vm1, %v3170_v36 }
  0x4a   :  { %3091 = vmatmul.mubr.msk.bf16.gmra.mrb[28].mxu0 %vm280_vm1, %v3155_v37  ;;  %3123 = vmatmul.mubr.msk.bf16.gmra.mrb[28].mxu1 %vm280_vm1, %v3171_v38 }
  0xe5   :  { %v3064_v40 = vpop.f32.mrb[0].mxu0  ;;  %v3621_v49 = vpop.f32.mrb[0].mxu1 }
  0xe6   :  { %v417_v41 = vpop.f32.mrb[1].mxu0  ;;  %v3608_v42 = vadd.f32 %v3064_v40, %v3605_v39  ;;  %v3631_v54 = vpop.f32.mrb[1].mxu1 }
  0xe7   :  { %v3611_v43 = vadd.f32 %v3605_v39, %v417_v41  ;;  %v3065_v44 = vpop.f32.mrb[2].mxu0  ;;  %v3633_v56 = vpop.f32.mrb[2].mxu1 }
  0xe8   :  { %v420_v45 = vpop.f32.mrb[3].mxu0  ;;  %v3616_v47 = vadd.f32 %v3065_v44, %v3605_v39  ;;  %v809_v50 = vmul.f32 %v3608_v42, %v3608_v42  ;;  %v676_v57 = vsel %vm8937_vm2, %v3608_v42, 0.0  ;;  %v3641_v62 = vpop.f32.mrb[3].mxu1 }
  0xe9   :  { %v807_v46 = vmul.f32 %v3611_v43, %v3611_v43  ;;  %v3619_v48 = vadd.f32 %v3605_v39, %v420_v45  ;;  %v673_v51 = vsel %vm8937_vm2, %v3611_v43, 0.0 }
  0xea   :  { %v810_v59 = vmul.f32 %v3616_v47, %v3616_v47  ;;  %v874_v2 = vsel %vm8937_vm2, %v809_v50, 0.0  ;;  %v678_v3 = vsel %vm8937_vm2, %v3616_v47, 0.0 }
  0xeb   :  { %v674_v52 = vsel %vm8937_vm2, %v3619_v48, 0.0  ;;  %v808_v53 = vmul.f32 %v3619_v48, %v3619_v48  ;;  %v871_v58 = vsel %vm8937_vm2, %v807_v46, 0.0 }
  0xec   :  { %v675_v55 = vadd.f32 %v674_v52, %v673_v51  ;;  %v876_v10 = vsel %vm8937_vm2, %v810_v59, 0.0 }
  0xed   :  { %v872_v60 = vsel %vm8937_vm2, %v808_v53, 0.0  ;;  %v3068_v61 = vpop.f32.mrb[4].mxu0  ;;  %v3663_v17 = vpop.f32.mrb[4].mxu1 }
  0xee   :  { %v677_v63 = vadd.f32 %v676_v57, %v675_v55  ;;  %v873_v0 = vadd.f32 %v872_v60, %v871_v58  ;;  %v433_v1 = vpop.f32.mrb[5].mxu0  ;;  %v3650_v7 = vadd.f32 %v3068_v61, %v3605_v39  ;;  %v3668_v20 = vpop.f32.mrb[5].mxu1 }
  0xef   :  { %v3647_v4 = vadd.f32 %v3605_v39, %v433_v1  ;;  %v3069_v5 = vpop.f32.mrb[6].mxu0  ;;  %v3674_v25 = vpop.f32.mrb[6].mxu1 }
  0xf0   :  { %v875_v6 = vadd.f32 %v874_v2, %v873_v0  ;;  %v679_v8 = vadd.f32 %v678_v3, %v677_v63  ;;  %v436_v9 = vpop.f32.mrb[7].mxu0  ;;  %v3661_v16 = vadd.f32 %v3069_v5, %v3605_v39  ;;  %v813_v21 = vmul.f32 %v3650_v7, %v3650_v7  ;;  %v3678_v28 = vpop.f32.mrb[7].mxu1 }
  0xf1   :  { %v680_v11 = vsel %vm8937_vm2, %v3647_v4, 0.0  ;;  %v811_v12 = vmul.f32 %v3647_v4, %v3647_v4  ;;  %v3658_v13 = vadd.f32 %v3605_v39, %v436_v9  ;;  %v684_v26 = vsel %vm8937_vm2, %v3650_v7, 0.0 }
  0xf2   :  { %v681_v14 = vadd.f32 %v680_v11, %v679_v8  ;;  %v877_v15 = vadd.f32 %v876_v10, %v875_v6  ;;  %v814_v29 = vmul.f32 %v3661_v16, %v3661_v16  ;;  %v686_v33 = vsel %vm8937_vm2, %v3661_v16, 0.0 }
  0xf3   :  { %v878_v18 = vsel %vm8937_vm2, %v811_v12, 0.0  ;;  %v682_v19 = vsel %vm8937_vm2, %v3658_v13, 0.0  ;;  %v812_v24 = vmul.f32 %v3658_v13, %v3658_v13  ;;  %v882_v37 = vsel %vm8937_vm2, %v813_v21, 0.0 }
  0xf4   :  { %v879_v22 = vadd.f32 %v878_v18, %v877_v15  ;;  %v683_v23 = vadd.f32 %v682_v19, %v681_v14  ;;  %v884_v51 = vsel %vm8937_vm2, %v814_v29, 0.0 }
  0xf5   :  { %v3072_v27 = vpop.f32.mrb[8].mxu0  ;;  %v880_v31 = vsel %vm8937_vm2, %v812_v24, 0.0  ;;  %v3703_v55 = vpop.f32.mrb[8].mxu1 }
  0xf6   :  { %v685_v30 = vadd.f32 %v684_v26, %v683_v23  ;;  %v449_v32 = vpop.f32.mrb[9].mxu0  ;;  %v881_v34 = vadd.f32 %v880_v31, %v879_v22  ;;  %v3690_v38 = vadd.f32 %v3072_v27, %v3605_v39  ;;  %v3710_v61 = vpop.f32.mrb[9].mxu1 }
  0xf7   :  { %v3686_v35 = vadd.f32 %v3605_v39, %v449_v32  ;;  %v3073_v36 = vpop.f32.mrb[10].mxu0  ;;  %v3714_v1 = vpop.f32.mrb[10].mxu1 }
  0xf8   :  { %v687_v40 = vadd.f32 %v686_v33, %v685_v30  ;;  %v452_v41 = vpop.f32.mrb[11].mxu0  ;;  %v883_v44 = vadd.f32 %v882_v37, %v881_v34  ;;  %v3701_v53 = vadd.f32 %v3073_v36, %v3605_v39  ;;  %v817_v63 = vmul.f32 %v3690_v38, %v3690_v38  ;;  %v3719_v8 = vpop.f32.mrb[11].mxu1 }
  0xf9   :  { %v688_v45 = vsel %vm8937_vm2, %v3686_v35, 0.0  ;;  %v815_v46 = vmul.f32 %v3686_v35, %v3686_v35  ;;  %v3697_v50 = vadd.f32 %v3605_v39, %v452_v41  ;;  %v692_v2 = vsel %vm8937_vm2, %v3690_v38, 0.0 }
  0xfa   :  { %v689_v52 = vadd.f32 %v688_v45, %v687_v40  ;;  %v885_v57 = vadd.f32 %v884_v51, %v883_v44  ;;  %v818_v9 = vmul.f32 %v3701_v53, %v3701_v53  ;;  %v694_v12 = vsel %vm8937_vm2, %v3701_v53, 0.0 }
  0xfb   :  { %v886_v58 = vsel %vm8937_vm2, %v815_v46, 0.0  ;;  %v690_v59 = vsel %vm8937_vm2, %v3697_v50, 0.0  ;;  %v816_v60 = vmul.f32 %v3697_v50, %v3697_v50  ;;  %v890_v19 = vsel %vm8937_vm2, %v817_v63, 0.0 }
  0xfc   :  { %v691_v0 = vadd.f32 %v690_v59, %v689_v52  ;;  %v887_v3 = vadd.f32 %v886_v58, %v885_v57  ;;  %v892_v30 = vsel %vm8937_vm2, %v818_v9, 0.0 }
  0xfd   :  { %v888_v5 = vsel %vm8937_vm2, %v816_v60, 0.0  ;;  %v3076_v6 = vpop.f32.mrb[12].mxu0  ;;  %v3743_v33 = vpop.f32.mrb[12].mxu1 }
  0xfe   :  { %v693_v10 = vadd.f32 %v692_v2, %v691_v0  ;;  %v465_v11 = vpop.f32.mrb[13].mxu0  ;;  %v889_v14 = vadd.f32 %v888_v5, %v887_v3  ;;  %v3730_v21 = vadd.f32 %v3076_v6, %v3605_v39  ;;  %v3750_v41 = vpop.f32.mrb[13].mxu1 }
  0xff   :  { %v3726_v15 = vadd.f32 %v3605_v39, %v465_v11  ;;  %v3077_v18 = vpop.f32.mrb[14].mxu0  ;;  %v3754_v46 = vpop.f32.mrb[14].mxu1 }
 0x100   :  { %9199 = vst [vmem:[#allocation2_spill] sm:$0xff] %v3730_v21  ;;  %v695_v22 = vadd.f32 %v694_v12, %v693_v10  ;;  %v468_v23 = vpop.f32.mrb[15].mxu0  ;;  %v891_v24 = vadd.f32 %v890_v19, %v889_v14  ;;  %v3741_v32 = vadd.f32 %v3077_v18, %v3605_v39  ;;  %v821_v44 = vmul.f32 %v3730_v21, %v3730_v21  ;;  %v3759_v59 = vpop.f32.mrb[15].mxu1 }
 0x101   :  { %v696_v26 = vsel %vm8937_vm2, %v3726_v15, 0.0  ;;  %v819_v27 = vmul.f32 %v3726_v15, %v3726_v15  ;;  %v3737_v29 = vadd.f32 %v3605_v39, %v468_v23  ;;  %v700_v51 = vsel %vm8937_vm2, %v3730_v21, 0.0 }
 0x102   :  { %v697_v31 = vadd.f32 %v696_v26, %v695_v22  ;;  %9200 = vst [vmem:[#allocation3_spill] sm:$0xff] %v3741_v32  ;;  %v893_v34 = vadd.f32 %v892_v30, %v891_v24  ;;  %v822_v60 = vmul.f32 %v3741_v32, %v3741_v32  ;;  %v702_v2 = vsel %vm8937_vm2, %v3741_v32, 0.0 }
 0x103   :  { %v894_v36 = vsel %vm8937_vm2, %v819_v27, 0.0  ;;  %v698_v37 = vsel %vm8937_vm2, %v3737_v29, 0.0  ;;  %v820_v40 = vmul.f32 %v3737_v29, %v3737_v29  ;;  %v898_v9 = vsel %vm8937_vm2, %v821_v44, 0.0 }
 0x104   :  { %v699_v45 = vadd.f32 %v698_v37, %v697_v31  ;;  %v895_v52 = vadd.f32 %v894_v36, %v893_v34  ;;  %v900_v23 = vsel %vm8937_vm2, %v822_v60, 0.0 }
 0x105   :  { %v896_v57 = vsel %vm8937_vm2, %v820_v40, 0.0  ;;  %v3080_v58 = vpop.f32.mrb[16].mxu0  ;;  %v3783_v27 = vpop.f32.mrb[16].mxu1 }
 0x106   :  { %v701_v63 = vadd.f32 %v700_v51, %v699_v45  ;;  %v481_v0 = vpop.f32.mrb[17].mxu0  ;;  %v897_v3 = vadd.f32 %v896_v57, %v895_v52  ;;  %v3770_v10 = vadd.f32 %v3080_v58, %v3605_v39  ;;  %v3790_v37 = vpop.f32.mrb[17].mxu1 }
 0x107   :  { %v3766_v5 = vadd.f32 %v3605_v39, %v481_v0  ;;  %v3081_v6 = vpop.f32.mrb[18].mxu0  ;;  %v3794_v45 = vpop.f32.mrb[18].mxu1 }
 0x108   :  { %9202 = vst [vmem:[#allocation5_spill] sm:$0xff] %v3770_v10  ;;  %v703_v11 = vadd.f32 %v702_v2, %v701_v63  ;;  %v484_v12 = vpop.f32.mrb[19].mxu0  ;;  %v899_v14 = vadd.f32 %v898_v9, %v897_v3  ;;  %v3781_v26 = vadd.f32 %v3081_v6, %v3605_v39  ;;  %v825_v40 = vmul.f32 %v3770_v10, %v3770_v10  ;;  %v3799_v60 = vpop.f32.mrb[19].mxu1 }
 0x109   :  { %9201 = vst [vmem:[#allocation4_spill] sm:$0xff] %v3766_v5  ;;  %v704_v18 = vsel %vm8937_vm2, %v3766_v5, 0.0  ;;  %v823_v19 = vmul.f32 %v3766_v5, %v3766_v5  ;;  %v3777_v22 = vadd.f32 %v3605_v39, %v484_v12  ;;  %v708_v51 = vsel %vm8937_vm2, %v3770_v10, 0.0 }
 0x10a   :  { %v705_v24 = vadd.f32 %v704_v18, %v703_v11  ;;  %9204 = vst [vmem:[#allocation7_spill] sm:$0xff] %v3781_v26  ;;  %v901_v30 = vadd.f32 %v900_v23, %v899_v14  ;;  %v826_v63 = vmul.f32 %v3781_v26, %v3781_v26  ;;  %v710_v3 = vsel %vm8937_vm2, %v3781_v26, 0.0 }
 0x10b   :  { %9203 = vst [vmem:[#allocation6_spill] sm:$0xff] %v3777_v22  ;;  %v902_v31 = vsel %vm8937_vm2, %v823_v19, 0.0  ;;  %v706_v34 = vsel %vm8937_vm2, %v3777_v22, 0.0  ;;  %v824_v36 = vmul.f32 %v3777_v22, %v3777_v22  ;;  %v906_v12 = vsel %vm8937_vm2, %v825_v40, 0.0 }
 0x10c   :  { %v707_v44 = vadd.f32 %v706_v34, %v705_v24  ;;  %v903_v52 = vadd.f32 %v902_v31, %v901_v30  ;;  %v908_v34 = vsel %vm8937_vm2, %v826_v63, 0.0  ;;  %v3894_v5 = vadd.f32 %v3605_v39, %v3631_v54 }
 0x10d   :  { %v904_v57 = vsel %vm8937_vm2, %v824_v36, 0.0  ;;  %v3084_v58 = vpop.f32.mrb[20].mxu0 }
 0x10e   :  { %v709_v0 = vadd.f32 %v708_v51, %v707_v44  ;;  %v497_v2 = vpop.f32.mrb[21].mxu0  ;;  %v905_v6 = vadd.f32 %v904_v57, %v903_v52  ;;  %v3810_v14 = vadd.f32 %v3084_v58, %v3605_v39  ;;  %v3823_v44 = vpop.f32.mrb[20].mxu1 }
 0x10f   :  { %v3806_v9 = vadd.f32 %v3605_v39, %v497_v2  ;;  %v3085_v11 = vpop.f32.mrb[22].mxu0 }
 0x110   :  { %9206 = vst [vmem:[#allocation9_spill] sm:$0xff] %v3810_v14  ;;  %v711_v18 = vadd.f32 %v710_v3, %v709_v0  ;;  %v500_v19 = vpop.f32.mrb[23].mxu0  ;;  %v907_v23 = vadd.f32 %v906_v12, %v905_v6  ;;  %v3821_v40 = vadd.f32 %v3085_v11, %v3605_v39  ;;  %v3830_v0 = vpop.f32.mrb[21].mxu1  ;;  %v829_v63 = vmul.f32 %v3810_v14, %v3810_v14 }
 0x111   :  { %9205 = vst [vmem:[#allocation8_spill] sm:$0xff] %v3806_v9  ;;  %v712_v24 = vsel %vm8937_vm2, %v3806_v9, 0.0  ;;  %v827_v30 = vmul.f32 %v3806_v9, %v3806_v9  ;;  %v3817_v31 = vadd.f32 %v3605_v39, %v500_v19  ;;  %v3834_v3 = vpop.f32.mrb[22].mxu1  ;;  %v716_v6 = vsel %vm8937_vm2, %v3810_v14, 0.0 }
 0x112   :  { %v713_v36 = vadd.f32 %v712_v24, %v711_v18  ;;  %9208 = vst [vmem:[#allocation11_spill] sm:$0xff] %v3821_v40  ;;  %v909_v51 = vadd.f32 %v908_v34, %v907_v23  ;;  %v3839_v19 = vpop.f32.mrb[23].mxu1  ;;  %v830_v23 = vmul.f32 %v3821_v40, %v3821_v40  ;;  %v718_v34 = vsel %vm8937_vm2, %v3821_v40, 0.0 }
 0x113   :  { %9207 = vst [vmem:[#allocation10_spill] sm:$0xff] %v3817_v31  ;;  %v910_v52 = vsel %vm8937_vm2, %v827_v30, 0.0  ;;  %v714_v57 = vsel %vm8937_vm2, %v3817_v31, 0.0  ;;  %v828_v58 = vmul.f32 %v3817_v31, %v3817_v31 }
 0x114   :  { %v715_v2 = vadd.f32 %v714_v57, %v713_v36  ;;  %v911_v11 = vadd.f32 %v910_v52, %v909_v51  ;;  %v914_v51 = vsel %vm8937_vm2, %v829_v63, 0.0 }
 0x115   :  { %v912_v12 = vsel %vm8937_vm2, %v828_v58, 0.0  ;;  %v3088_v18 = vpop.f32.mrb[24].mxu0 }
 0x116   :  { %v717_v24 = vadd.f32 %v716_v6, %v715_v2  ;;  %v513_v30 = vpop.f32.mrb[25].mxu0  ;;  %v913_v36 = vadd.f32 %v912_v12, %v911_v11  ;;  %v3850_v52 = vadd.f32 %v3088_v18, %v3605_v39  ;;  %v916_v12 = vsel %vm8937_vm2, %v830_v23, 0.0  ;;  %v3863_v18 = vpop.f32.mrb[24].mxu1 }
 0x117   :  { %v3846_v57 = vadd.f32 %v3605_v39, %v513_v30  ;;  %v3089_v31 = vpop.f32.mrb[26].mxu0 }
 0x118   :  { %9210 = vst [vmem:[#allocation13_spill] sm:$0xff] %v3850_v52  ;;  %v719_v58 = vadd.f32 %v718_v34, %v717_v24  ;;  %v516_v14 = vpop.f32.mrb[27].mxu0  ;;  %v915_v9 = vadd.f32 %v914_v51, %v913_v36  ;;  %v3861_v63 = vadd.f32 %v3089_v31, %v3605_v39  ;;  %v724_v31 = vsel %vm8937_vm2, %v3850_v52, 0.0 }
 0x119   :  { %9209 = vst [vmem:[#allocation12_spill] sm:$0xff] %v3846_v57  ;;  %v720_v2 = vsel %vm8937_vm2, %v3846_v57, 0.0  ;;  %v831_v6 = vmul.f32 %v3846_v57, %v3846_v57  ;;  %v3857_v11 = vadd.f32 %v3605_v39, %v516_v14  ;;  %v3870_v57 = vpop.f32.mrb[25].mxu1  ;;  %v833_v14 = vmul.f32 %v3850_v52, %v3850_v52 }
 0x11a   :  { %v721_v30 = vadd.f32 %v720_v2, %v719_v58  ;;  %9212 = vst [vmem:[#allocation15_spill] sm:$0xff] %v3861_v63  ;;  %v917_v24 = vadd.f32 %v916_v12, %v915_v9  ;;  %v3874_v58 = vpop.f32.mrb[26].mxu1  ;;  %v726_v10 = vsel %vm8937_vm2, %v3861_v63, 0.0 }
 0x11b   :  { %9211 = vst [vmem:[#allocation14_spill] sm:$0xff] %v3857_v11  ;;  %v918_v34 = vsel %vm8937_vm2, %v831_v6, 0.0  ;;  %v722_v36 = vsel %vm8937_vm2, %v3857_v11, 0.0  ;;  %v832_v51 = vmul.f32 %v3857_v11, %v3857_v11  ;;  %v3879_v12 = vpop.f32.mrb[27].mxu1  ;;  %v834_v11 = vmul.f32 %v3861_v63, %v3861_v63 }
 0x11c   :  { %v723_v23 = vadd.f32 %v722_v36, %v721_v30  ;;  %v919_v9 = vadd.f32 %v918_v34, %v917_v24  ;;  %v922_v24 = vsel %vm8937_vm2, %v833_v14, 0.0 }
 0x11d   :  { %v920_v2 = vsel %vm8937_vm2, %v832_v51, 0.0  ;;  %v3092_v6 = vpop.f32.mrb[28].mxu0  ;;  %v924_v14 = vsel %vm8937_vm2, %v834_v11, 0.0 }
 0x11e   :  { %v725_v40 = vadd.f32 %v724_v31, %v723_v23  ;;  %v529_v26 = vpop.f32.mrb[29].mxu0  ;;  %v921_v30 = vadd.f32 %v920_v2, %v919_v9  ;;  %v3890_v34 = vadd.f32 %v3092_v6, %v3605_v39 }
 0x11f   :  { %v3886_v36 = vadd.f32 %v3605_v39, %v529_v26  ;;  %v3093_v22 = vpop.f32.mrb[30].mxu0 }
 0x120   :  { %9214 = vst [vmem:[#allocation17_spill] sm:$0xff] %v3890_v34  ;;  %v727_v51 = vadd.f32 %v726_v10, %v725_v40  ;;  %v532_v52 = vpop.f32.mrb[31].mxu0  ;;  %v923_v23 = vadd.f32 %v922_v24, %v921_v30  ;;  %v3905_v10 = vadd.f32 %v3093_v22, %v3605_v39  ;;  %v3907_v40 = vpop.f32.mrb[28].mxu1  ;;  %v732_v22 = vsel %vm8937_vm2, %v3890_v34, 0.0 }
 0x121   :  { %9213 = vst [vmem:[#allocation16_spill] sm:$0xff] %v3886_v36  ;;  %v728_v31 = vsel %vm8937_vm2, %v3886_v36, 0.0  ;;  %v835_v26 = vmul.f32 %v3886_v36, %v3886_v36  ;;  %v3901_v9 = vadd.f32 %v3605_v39, %v532_v52  ;;  %v3914_v36 = vpop.f32.mrb[29].mxu1  ;;  %v837_v52 = vmul.f32 %v3890_v34, %v3890_v34 }
 0x122   :  { %v729_v2 = vadd.f32 %v728_v31, %v727_v51  ;;  %v925_v54 = vadd.f32 %v924_v14, %v923_v23  ;;  %v3918_v51 = vpop.f32.mrb[30].mxu1 }
 0x123   :  { %9215 = vst [vmem:[#allocation18_spill] sm:$0xff] %v3901_v9  ;;  %v926_v6 = vsel %vm8937_vm2, %v835_v26, 0.0  ;;  %v730_v30 = vsel %vm8937_vm2, %v3901_v9, 0.0  ;;  %v836_v24 = vmul.f32 %v3901_v9, %v3901_v9  ;;  %v839_v26 = vmul.f32 %v3894_v5, %v3894_v5  ;;  %v3925_v14 = vpop.f32.mrb[31].mxu1 }
 0x124   :  { %v731_v11 = vadd.f32 %v730_v30, %v729_v2  ;;  %v927_v23 = vadd.f32 %v926_v6, %v925_v54  ;;  %v838_v9 = vmul.f32 %v3905_v10, %v3905_v10  ;;  %v3931_v2 = vadd.f32 %v3605_v39, %v3641_v62 }
 0x125   :  { %v928_v31 = vsel %vm8937_vm2, %v836_v24, 0.0  ;;  %v734_v30 = vsel %vm8937_vm2, %v3905_v10, 0.0  ;;  %v736_v54 = vsel %vm8937_vm2, %v3894_v5, 0.0  ;;  %v930_v6 = vsel %vm8937_vm2, %v837_v52, 0.0 }
 0x126   :  { %v733_v63 = vadd.f32 %v732_v22, %v731_v11  ;;  %v929_v34 = vadd.f32 %v928_v31, %v927_v23  ;;  %v3940_v24 = vadd.f32 %v3621_v49, %v3605_v39  ;;  %v934_v11 = vsel %vm8937_vm2, %v839_v26, 0.0 }
 0x127   :  { %v3945_v62 = vadd.f32 %v3633_v56, %v3605_v39  ;;  %v932_v22 = vsel %vm8937_vm2, %v838_v9, 0.0  ;;  %v840_v31 = vmul.f32 %v3931_v2, %v3931_v2  ;;  %v3952_v52 = vadd.f32 %v3605_v39, %v3668_v20 }
 0x128   :  { %v735_v32 = vadd.f32 %v734_v30, %v733_v63  ;;  %v931_v21 = vadd.f32 %v930_v6, %v929_v34  ;;  %v738_v63 = vsel %vm8937_vm2, %v3931_v2, 0.0  ;;  %v841_v34 = vmul.f32 %v3940_v24, %v3940_v24 }
 0x129   :  { %v740_v56 = vsel %vm8937_vm2, %v3940_v24, 0.0  ;;  %v843_v20 = vmul.f32 %v3952_v52, %v3952_v52  ;;  %v742_v6 = vsel %vm8937_vm2, %v3945_v62, 0.0 }
 0x12a   :  { %v737_v23 = vadd.f32 %v736_v54, %v735_v32  ;;  %v933_v49 = vadd.f32 %v932_v22, %v931_v21  ;;  %v842_v32 = vmul.f32 %v3945_v62, %v3945_v62  ;;  %v936_v54 = vsel %vm8937_vm2, %v840_v31, 0.0 }
 0x12b   :  { %v3967_v21 = vadd.f32 %v3605_v39, %v3678_v28  ;;  %v3981_v28 = vadd.f32 %v3674_v25, %v3605_v39 }
 0x12c   :  { %v739_v26 = vadd.f32 %v738_v63, %v737_v23  ;;  %v935_v9 = vadd.f32 %v934_v11, %v933_v49  ;;  %v744_v11 = vsel %vm8937_vm2, %v3952_v52, 0.0  ;;  %v938_v23 = vsel %vm8937_vm2, %v841_v34, 0.0 }
 0x12d   :  { %v3976_v49 = vadd.f32 %v3663_v17, %v3605_v39  ;;  %v940_v63 = vsel %vm8937_vm2, %v842_v32, 0.0  ;;  %v3988_v34 = vadd.f32 %v3605_v39, %v3710_v61 }
 0x12e   :  { %v741_v30 = vadd.f32 %v740_v56, %v739_v26  ;;  %v937_v22 = vadd.f32 %v936_v54, %v935_v9  ;;  %v942_v9 = vsel %vm8937_vm2, %v843_v20, 0.0  ;;  %v844_v54 = vmul.f32 %v3967_v21, %v3967_v21 }
 0x12f   :  { %v845_v32 = vmul.f32 %v3976_v49, %v3976_v49  ;;  %v748_v25 = vsel %vm8937_vm2, %v3976_v49, 0.0  ;;  %v846_v20 = vmul.f32 %v3981_v28, %v3981_v28  ;;  %v847_v61 = vmul.f32 %v3988_v34, %v3988_v34 }
 0x130   :  { %v743_v31 = vadd.f32 %v742_v6, %v741_v30  ;;  %v939_v26 = vadd.f32 %v938_v23, %v937_v22  ;;  %v746_v30 = vsel %vm8937_vm2, %v3967_v21, 0.0  ;;  %v944_v23 = vsel %vm8937_vm2, %v844_v54, 0.0 }
 0x132   :  { %v745_v56 = vadd.f32 %v744_v11, %v743_v31  ;;  %v941_v17 = vadd.f32 %v940_v63, %v939_v26  ;;  %v4003_v31 = vadd.f32 %v3605_v39, %v3719_v8  ;;  %v750_v63 = vsel %vm8937_vm2, %v3981_v28, 0.0 }
 0x133   :  { %v4017_v8 = vadd.f32 %v3714_v1, %v3605_v39 }
 0x134   :  { %v747_v6 = vadd.f32 %v746_v30, %v745_v56  ;;  %v943_v22 = vadd.f32 %v942_v9, %v941_v17  ;;  %v752_v56 = vsel %vm8937_vm2, %v3988_v34, 0.0  ;;  %v946_v9 = vsel %vm8937_vm2, %v845_v32, 0.0 }
 0x135   :  { %v4012_v17 = vadd.f32 %v3703_v55, %v3605_v39  ;;  %v948_v30 = vsel %vm8937_vm2, %v846_v20, 0.0  ;;  %v4024_v32 = vadd.f32 %v3605_v39, %v3750_v41 }
 0x136   :  { %v749_v11 = vadd.f32 %v748_v25, %v747_v6  ;;  %v945_v26 = vadd.f32 %v944_v23, %v943_v22  ;;  %v950_v22 = vsel %vm8937_vm2, %v847_v61, 0.0  ;;  %v848_v23 = vmul.f32 %v4003_v31, %v4003_v31 }
 0x137   :  { %v849_v20 = vmul.f32 %v4012_v17, %v4012_v17  ;;  %v756_v1 = vsel %vm8937_vm2, %v4012_v17, 0.0  ;;  %v850_v61 = vmul.f32 %v4017_v8, %v4017_v8  ;;  %v851_v41 = vmul.f32 %v4024_v32, %v4024_v32 }
 0x138   :  { %v751_v54 = vadd.f32 %v750_v63, %v749_v11  ;;  %v947_v6 = vadd.f32 %v946_v9, %v945_v26  ;;  %v754_v11 = vsel %vm8937_vm2, %v4003_v31, 0.0  ;;  %v952_v9 = vsel %vm8937_vm2, %v848_v23, 0.0 }
 0x13a   :  { %v753_v25 = vadd.f32 %v752_v56, %v751_v54  ;;  %v949_v55 = vadd.f32 %v948_v30, %v947_v6  ;;  %v4039_v54 = vadd.f32 %v3605_v39, %v3759_v59  ;;  %v758_v30 = vsel %vm8937_vm2, %v4017_v8, 0.0 }
 0x13b   :  { %v4053_v59 = vadd.f32 %v3754_v46, %v3605_v39 }
 0x13c   :  { %v755_v63 = vadd.f32 %v754_v11, %v753_v25  ;;  %v951_v26 = vadd.f32 %v950_v22, %v949_v55  ;;  %v760_v25 = vsel %vm8937_vm2, %v4024_v32, 0.0  ;;  %v954_v22 = vsel %vm8937_vm2, %v849_v20, 0.0 }
 0x13d   :  { %v4048_v55 = vadd.f32 %v3743_v33, %v3605_v39  ;;  %v956_v11 = vsel %vm8937_vm2, %v850_v61, 0.0  ;;  %v4060_v20 = vadd.f32 %v3605_v39, %v3790_v37 }
 0x13e   :  { %v757_v56 = vadd.f32 %v756_v1, %v755_v63  ;;  %v953_v6 = vadd.f32 %v952_v9, %v951_v26  ;;  %v958_v26 = vsel %vm8937_vm2, %v851_v41, 0.0  ;;  %v852_v9 = vmul.f32 %v4039_v54, %v4039_v54 }
 0x13f   :  { %v853_v61 = vmul.f32 %v4048_v55, %v4048_v55  ;;  %v764_v46 = vsel %vm8937_vm2, %v4048_v55, 0.0  ;;  %v854_v41 = vmul.f32 %v4053_v59, %v4053_v59  ;;  %v855_v37 = vmul.f32 %v4060_v20, %v4060_v20 }
 0x140   :  { %v759_v23 = vadd.f32 %v758_v30, %v757_v56  ;;  %v955_v63 = vadd.f32 %v954_v22, %v953_v6  ;;  %v762_v56 = vsel %vm8937_vm2, %v4039_v54, 0.0  ;;  %v960_v22 = vsel %vm8937_vm2, %v852_v9, 0.0 }
 0x142   :  { %v761_v1 = vadd.f32 %v760_v25, %v759_v23  ;;  %v957_v33 = vadd.f32 %v956_v11, %v955_v63  ;;  %v4075_v23 = vadd.f32 %v3605_v39, %v3799_v60  ;;  %v766_v11 = vsel %vm8937_vm2, %v4053_v59, 0.0 }
 0x143   :  { %v4089_v60 = vadd.f32 %v3794_v45, %v3605_v39 }
 0x144   :  { %v763_v30 = vadd.f32 %v762_v56, %v761_v1  ;;  %v959_v6 = vadd.f32 %v958_v26, %v957_v33  ;;  %v768_v1 = vsel %vm8937_vm2, %v4060_v20, 0.0  ;;  %v962_v26 = vsel %vm8937_vm2, %v853_v61, 0.0 }
 0x145   :  { %v4084_v33 = vadd.f32 %v3783_v27, %v3605_v39  ;;  %v964_v56 = vsel %vm8937_vm2, %v854_v41, 0.0  ;;  %v4096_v61 = vadd.f32 %v3605_v39, %v3830_v0 }
 0x146   :  { %v765_v25 = vadd.f32 %v764_v46, %v763_v30  ;;  %v961_v63 = vadd.f32 %v960_v22, %v959_v6  ;;  %v966_v6 = vsel %vm8937_vm2, %v855_v37, 0.0  ;;  %v856_v22 = vmul.f32 %v4075_v23, %v4075_v23 }
 0x147   :  { %v857_v41 = vmul.f32 %v4084_v33, %v4084_v33  ;;  %v772_v45 = vsel %vm8937_vm2, %v4084_v33, 0.0  ;;  %v858_v37 = vmul.f32 %v4089_v60, %v4089_v60  ;;  %v859_v0 = vmul.f32 %v4096_v61, %v4096_v61 }
 0x148   :  { %v767_v9 = vadd.f32 %v766_v11, %v765_v25  ;;  %v963_v30 = vadd.f32 %v962_v26, %v961_v63  ;;  %v770_v25 = vsel %vm8937_vm2, %v4075_v23, 0.0  ;;  %v968_v26 = vsel %vm8937_vm2, %v856_v22, 0.0 }
 0x14a   :  { %v769_v46 = vadd.f32 %v768_v1, %v767_v9  ;;  %v965_v27 = vadd.f32 %v964_v56, %v963_v30  ;;  %v4111_v9 = vadd.f32 %v3605_v39, %v3839_v19  ;;  %v774_v56 = vsel %vm8937_vm2, %v4089_v60, 0.0 }
 0x14b   :  { %v4125_v19 = vadd.f32 %v3834_v3, %v3605_v39 }
 0x14c   :  { %v771_v11 = vadd.f32 %v770_v25, %v769_v46  ;;  %v967_v63 = vadd.f32 %v966_v6, %v965_v27  ;;  %v776_v46 = vsel %vm8937_vm2, %v4096_v61, 0.0  ;;  %v970_v6 = vsel %vm8937_vm2, %v857_v41, 0.0 }
 0x14d   :  { %v4120_v27 = vadd.f32 %v3823_v44, %v3605_v39  ;;  %v972_v25 = vsel %vm8937_vm2, %v858_v37, 0.0  ;;  %9217 = vst [vmem:[#allocation20_spill] sm:$0xff] %v4125_v19  ;;  %v4132_v41 = vadd.f32 %v3605_v39, %v3870_v57 }
 0x14e   :  { %v773_v1 = vadd.f32 %v772_v45, %v771_v11  ;;  %v969_v30 = vadd.f32 %v968_v26, %v967_v63  ;;  %v974_v63 = vsel %vm8937_vm2, %v859_v0, 0.0  ;;  %v860_v26 = vmul.f32 %v4111_v9, %v4111_v9 }
 0x14f   :  { %9216 = vst [vmem:[#allocation19_spill] sm:$0xff] %v4120_v27  ;;  %9218 = vst [vmem:[#allocation21_spill] sm:$0xff] %v4132_v41  ;;  %v861_v37 = vmul.f32 %v4120_v27, %v4120_v27  ;;  %v780_v3 = vsel %vm8937_vm2, %v4120_v27, 0.0  ;;  %v862_v0 = vmul.f32 %v4125_v19, %v4125_v19  ;;  %v863_v57 = vmul.f32 %v4132_v41, %v4132_v41 }
 0x150   :  { %v775_v22 = vadd.f32 %v774_v56, %v773_v1  ;;  %v971_v11 = vadd.f32 %v970_v6, %v969_v30  ;;  %v778_v1 = vsel %vm8937_vm2, %v4111_v9, 0.0  ;;  %v976_v6 = vsel %vm8937_vm2, %v860_v26, 0.0 }
 0x152   :  { %v777_v45 = vadd.f32 %v776_v46, %v775_v22  ;;  %v973_v44 = vadd.f32 %v972_v25, %v971_v11  ;;  %v4147_v22 = vadd.f32 %v3605_v39, %v3879_v12  ;;  %v782_v25 = vsel %vm8937_vm2, %v4125_v19, 0.0 }
 0x153   :  { %v4161_v12 = vadd.f32 %v3874_v58, %v3605_v39 }
 0x154   :  { %v779_v56 = vadd.f32 %v778_v1, %v777_v45  ;;  %v975_v30 = vadd.f32 %v974_v63, %v973_v44  ;;  %9219 = vst [vmem:[#allocation22_spill] sm:$0xff] %v4147_v22  ;;  %v784_v45 = vsel %vm8937_vm2, %v4132_v41, 0.0  ;;  %v978_v63 = vsel %vm8937_vm2, %v861_v37, 0.0 }
 0x155   :  { %v4156_v44 = vadd.f32 %v3863_v18, %v3605_v39  ;;  %v980_v1 = vsel %vm8937_vm2, %v862_v0, 0.0  ;;  %9221 = vst [vmem:[#allocation24_spill] sm:$0xff] %v4161_v12  ;;  %v4168_v37 = vadd.f32 %v3605_v39, %v3914_v36 }
 0x156   :  { %v781_v46 = vadd.f32 %v780_v3, %v779_v56  ;;  %v977_v11 = vadd.f32 %v976_v6, %v975_v30  ;;  %v982_v30 = vsel %vm8937_vm2, %v863_v57, 0.0  ;;  %v864_v6 = vmul.f32 %v4147_v22, %v4147_v22 }
 0x157   :  { %9220 = vst [vmem:[#allocation23_spill] sm:$0xff] %v4156_v44  ;;  %v865_v0 = vmul.f32 %v4156_v44, %v4156_v44  ;;  %v788_v58 = vsel %vm8937_vm2, %v4156_v44, 0.0  ;;  %v866_v57 = vmul.f32 %v4161_v12, %v4161_v12  ;;  %v867_v36 = vmul.f32 %v4168_v37, %v4168_v37 }
 0x158   :  { %v783_v26 = vadd.f32 %v782_v25, %v781_v46  ;;  %v979_v56 = vadd.f32 %v978_v63, %v977_v11  ;;  %v786_v46 = vsel %vm8937_vm2, %v4147_v22, 0.0  ;;  %v984_v63 = vsel %vm8937_vm2, %v864_v6, 0.0 }
 0x15a   :  { %v785_v3 = vadd.f32 %v784_v45, %v783_v26  ;;  %v981_v18 = vadd.f32 %v980_v1, %v979_v56  ;;  %v4183_v26 = vadd.f32 %v3605_v39, %v3925_v14  ;;  %v790_v1 = vsel %vm8937_vm2, %v4161_v12, 0.0 }
 0x15b   :  { %v990_v14 = vsel %vm8937_vm2, %v867_v36, 0.0  ;;  %v4198_v12 = vadd.f32 %v3918_v51, %v3605_v39 }
 0x15c   :  { %v787_v25 = vadd.f32 %v786_v46, %v785_v3  ;;  %v983_v11 = vadd.f32 %v982_v30, %v981_v18  ;;  %v792_v3 = vsel %vm8937_vm2, %v4168_v37, 0.0  ;;  %v986_v30 = vsel %vm8937_vm2, %v865_v0, 0.0 }
 0x15d   :  { %v4192_v18 = vadd.f32 %v3907_v40, %v3605_v39  ;;  %v988_v46 = vsel %vm8937_vm2, %v866_v57, 0.0  ;;  %9222 = vst [vmem:[#allocation25_spill] sm:$0xff] %v4198_v12  ;;  %v794_v0 = vsel %vm8937_vm2, %v4183_v26, 0.0  ;;  %v870_v36 = vmul.f32 %v4198_v12, %v4198_v12 }
 0x15e   :  { %v789_v45 = vadd.f32 %v788_v58, %v787_v25  ;;  %v985_v56 = vadd.f32 %v984_v63, %v983_v11  ;;  %v868_v11 = vmul.f32 %v4183_v26, %v4183_v26 }
 0x15f   :  { %v869_v40 = vmul.f32 %v4192_v18, %v4192_v18  ;;  %v796_v57 = vsel %vm8937_vm2, %v4192_v18, 0.0 }
 0x160   :  { %v791_v6 = vadd.f32 %v790_v1, %v789_v45  ;;  %v987_v25 = vadd.f32 %v986_v30, %v985_v56  ;;  %v992_v51 = vsel %vm8937_vm2, %v868_v11, 0.0  ;;  %v798_v56 = vsel %vm8937_vm2, %v4198_v12, 0.0 }
 0x161   :  { %v994_v30 = vsel %vm8937_vm2, %v869_v40, 0.0 }
 0x162   :  { %v793_v58 = vadd.f32 %v792_v3, %v791_v6  ;;  %v989_v63 = vadd.f32 %v988_v46, %v987_v25  ;;  %v996_v25 = vsel %vm8937_vm2, %v870_v36, 0.0  ;;  %v1015_v36 = vlaneseq }
 0x164   :  { %v795_v45 = vadd.f32 %v794_v0, %v793_v58  ;;  %v991_v1 = vadd.f32 %v990_v14, %v989_v63 }
 0x166   :  { %v797_v39 = vadd.f32 %v796_v57, %v795_v45  ;;  %v993_v3 = vadd.f32 %v992_v51, %v991_v1 }
 0x168   :  { %v799_v6 = vadd.f32 %v798_v56, %v797_v39  ;;  %v995_v46 = vadd.f32 %v994_v30, %v993_v3  ;;  %v4215_v30 = vshrl.u32 %v1015_v36, 7  ;;  %v9230_v36 = vld [vmem:[#allocation10_spill] sm:$0xff] }
 0x16a   :  { %v800_v58 = vrot.slane %v799_v6, 4  ;;  %v997_v0 = vadd.f32 %v996_v25, %v995_v46 }
 0x16c   :  { %v801_v44 = vadd.f32 %v800_v58, %v799_v6  ;;  %v998_v14 = vrot.slane %v997_v0, 4  ;;  %v8916_v6 = vsub.s32 0, %v4215_v30 }
 0x16e   :  { %v802_v63 = vrot.slane %v801_v44, 2  ;;  %v999_v22 = vadd.f32 %v998_v14, %v997_v0 }
 0x170   :  { %v803_v41 = vadd.f32 %v802_v63, %v801_v44  ;;  %v1000_v45 = vrot.slane %v999_v22, 2  ;;  %v1010_v44 = vld [vmem:[%s8889_s3] sm:$0x1] }
 0x172   :  { %v804_v57 = vrot.slane %v803_v41, 1  ;;  %v1001_v11 = vadd.f32 %v1000_v45, %v999_v22  ;;  %v9223_v45 = vld [vmem:[#allocation2_spill] sm:$0xff] }
 0x174   :  { %v805_v19 = vadd.f32 %v804_v57, %v803_v41  ;;  %v1002_v27 = vrot.slane %v1001_v11, 1  ;;  %v9224_v57 = vld [vmem:[#allocation3_spill] sm:$0xff] }
 0x176   :  { %v806_v12 = vmul.f32 0.001953125, %v805_v19  ;;  %v1003_v1 = vadd.f32 %v1002_v27, %v1001_v11  ;;  %v4224_v27 = vld [vmem:[%s8890_s4] sm:$0x1]  ;;  %v9225_v11 = vld [vmem:[#allocation4_spill] sm:$0xff] }
 0x178   :  { %v1005_v51 = vmul.f32 %v806_v12, %v806_v12  ;;  %v1004_v40 = vmul.f32 0.001953125, %v1003_v1  ;;  %v9226_v1 = vld [vmem:[#allocation6_spill] sm:$0xff] }
 0x17a   :  { %v1006_v39 = vsub.f32 %v1004_v40, %v1005_v51  ;;  %v9227_v51 = vld [vmem:[#allocation5_spill] sm:$0xff]  ;;  %v9228_v40 = vld [vmem:[#allocation7_spill] sm:$0xff] }
 0x17c   :  { %v1007_v56 = vmax.f32 %v1006_v39, 0.0 }
 0x17e   :  { %v1008_v3 = vadd.f32 1e-05, %v1007_v56  ;;  %v9229_v56 = vld [vmem:[#allocation8_spill] sm:$0xff] }
 0x180   :  { %3172 = vrsqrt.f32 %v1008_v3 }
 0x18a   :  { %v3173_v22 = vpop.eup %3172 }
 0x18b   :  { %v1011_v41 = vmul.f32 %v3173_v22, %v1010_v44  ;;  %v9231_v22 = vld [vmem:[#allocation9_spill] sm:$0xff] }
 0x18d   :  { %v4226_v19 = vmul.f32 %v1011_v41, %v806_v12  ;;  %v4230_v46 = vrot.slane %v1011_v41, %v8916_v6  ;;  %v9239_v6 = vld [vmem:[#allocation18_spill] sm:$0xff] }
 0x18f   :  { %v1014_v25 = vsub.f32 %v4224_v27, %v4226_v19  ;;  %v4236_v58 = vmul.f32 %v4230_v46, %v3611_v43  ;;  %v4240_v0 = vmul.f32 %v4230_v46, %v3619_v48  ;;  %v4244_v14 = vmul.f32 %v4230_v46, %v3608_v42  ;;  %v9232_v27 = vld [vmem:[#allocation11_spill] sm:$0xff] }
 0x190   :  { %v4248_v12 = vmul.f32 %v4230_v46, %v3616_v47  ;;  %v4252_v63 = vmul.f32 %v4230_v46, %v3647_v4  ;;  %v4256_v43 = vmul.f32 %v4230_v46, %v3658_v13  ;;  %v4260_v48 = vmul.f32 %v4230_v46, %v3650_v7 }
 0x191   :  { %v4264_v42 = vmul.f32 %v4230_v46, %v3661_v16  ;;  %v4268_v47 = vmul.f32 %v4230_v46, %v3686_v35  ;;  %v4272_v4 = vmul.f32 %v4230_v46, %v3697_v50  ;;  %v4276_v13 = vmul.f32 %v4230_v46, %v3690_v38 }
 0x192   :  { %v4280_v7 = vmul.f32 %v4230_v46, %v3701_v53  ;;  %v4284_v16 = vmul.f32 %v4230_v46, %v3726_v15  ;;  %v4288_v35 = vmul.f32 %v4230_v46, %v3737_v29  ;;  %v4292_v50 = vmul.f32 %v4230_v46, %v9223_v45  ;;  %v9233_v45 = vld [vmem:[#allocation12_spill] sm:$0xff] }
 0x193   :  { %v4296_v38 = vmul.f32 %v4230_v46, %v9224_v57  ;;  %v4300_v53 = vmul.f32 %v4230_v46, %v9225_v11  ;;  %v4304_v15 = vmul.f32 %v4230_v46, %v9226_v1  ;;  %v4308_v29 = vmul.f32 %v4230_v46, %v9227_v51  ;;  %v9235_v11 = vld [vmem:[#allocation14_spill] sm:$0xff]  ;;  %v9236_v51 = vld [vmem:[#allocation13_spill] sm:$0xff] }
 0x194   :  { %v4312_v39 = vmul.f32 %v4230_v46, %v9228_v40  ;;  %v4316_v3 = vmul.f32 %v4230_v46, %v9229_v56  ;;  %v4320_v44 = vmul.f32 %v4230_v46, %v9230_v36  ;;  %v4324_v41 = vmul.f32 %v4230_v46, %v9231_v22  ;;  %v9237_v56 = vld [vmem:[#allocation15_spill] sm:$0xff]  ;;  %v9238_v22 = vld [vmem:[#allocation16_spill] sm:$0xff] }
 0x195   :  { %v4328_v19 = vmul.f32 %v4230_v46, %v9232_v27  ;;  %v4332_v57 = vmul.f32 %v4230_v46, %v9233_v45  ;;  %v4336_v1 = vmul.f32 %v4230_v46, %v9235_v11  ;;  %v4340_v40 = vmul.f32 %v4230_v46, %v9236_v51 }
 0x196   :  { %v4344_v36 = vmul.f32 %v4230_v46, %v9237_v56  ;;  %v4348_v27 = vmul.f32 %v4230_v46, %v9238_v22  ;;  %v4352_v45 = vmul.f32 %v4230_v46, %v9239_v6  ;;  %v4360_v51 = vmul.f32 %v4230_v46, %v3905_v10 }
 0x197   :  { %9234 = vst [vmem:[#allocation2_spill] sm:$0xff] %v4332_v57  ;;  %v9240_v57 = vld [vmem:[#allocation17_spill] sm:$0xff]  ;;  %v4364_v56 = vmul.f32 %v4230_v46, %v3894_v5  ;;  %v4368_v22 = vmul.f32 %v4230_v46, %v3931_v2  ;;  %v4372_v6 = vmul.f32 %v4230_v46, %v3940_v24  ;;  %v4380_v10 = vmul.f32 %v4230_v46, %v3952_v52 }
 0x198   :  { %v4356_v11 = vmul.f32 %v4230_v46, %v9240_v57  ;;  %v4376_v57 = vmul.f32 %v4230_v46, %v3945_v62  ;;  %v4384_v5 = vmul.f32 %v4230_v46, %v3967_v21  ;;  %v4388_v2 = vmul.f32 %v4230_v46, %v3976_v49 }
 0x199   :  { %v4392_v24 = vmul.f32 %v4230_v46, %v3981_v28  ;;  %v4396_v62 = vmul.f32 %v4230_v46, %v3988_v34  ;;  %v4400_v52 = vmul.f32 %v4230_v46, %v4003_v31  ;;  %v4404_v21 = vmul.f32 %v4230_v46, %v4012_v17 }
 0x19a   :  { %v4408_v49 = vmul.f32 %v4230_v46, %v4017_v8  ;;  %v4412_v28 = vmul.f32 %v4230_v46, %v4024_v32  ;;  %v4416_v34 = vmul.f32 %v4230_v46, %v4039_v54  ;;  %v4420_v31 = vmul.f32 %v4230_v46, %v4048_v55 }
 0x19b   :  { %v4424_v17 = vmul.f32 %v4230_v46, %v4053_v59  ;;  %v4428_v8 = vmul.f32 %v4230_v46, %v4060_v20  ;;  %v4432_v32 = vmul.f32 %v4230_v46, %v4075_v23  ;;  %v4436_v54 = vmul.f32 %v4230_v46, %v4084_v33 }
 0x19c   :  { %v4440_v55 = vmul.f32 %v4230_v46, %v4089_v60  ;;  %v4444_v59 = vmul.f32 %v4230_v46, %v4096_v61  ;;  %v4448_v20 = vmul.f32 %v4230_v46, %v4111_v9  ;;  %v4452_v23 = vmul.f32 %v4230_v46, %v4168_v37  ;;  %v9252_v9 = vld [vmem:[#allocation25_spill] sm:$0xff] }
 0x19d   :  { %9241 = vst [vmem:[#allocation3_spill] sm:$0xff] %v4428_v8  ;;  %9242 = vst [vmem:[#allocation4_spill] sm:$0xff] %v4432_v32  ;;  %v4456_v33 = vmul.f32 %v4230_v46, %v4183_v26  ;;  %v4460_v60 = vmul.f32 %v4230_v46, %v4192_v18  ;;  %v9253_v37 = vsub.s32 0, %v4215_v30  ;;  %v9254_v26 = vld [vmem:[#allocation21_spill] sm:$0xff]  ;;  %v9255_v32 = vld [vmem:[#allocation22_spill] sm:$0xff] }
 0x19e   :  { %9243 = vst [vmem:[#allocation6_spill] sm:$0xff] %v4436_v54  ;;  %9244 = vst [vmem:[#allocation5_spill] sm:$0xff] %v4440_v55  ;;  %v9250_v55 = vld [vmem:[#allocation19_spill] sm:$0xff]  ;;  %v1076_v18 = vmul.f32 %v4230_v46, %v9255_v32  ;;  %v9257_v8 = vld [vmem:[#allocation24_spill] sm:$0xff] }
 0x19f   :  { %9245 = vst [vmem:[#allocation7_spill] sm:$0xff] %v4444_v59  ;;  %9246 = vst [vmem:[#allocation8_spill] sm:$0xff] %v4448_v20  ;;  %v1073_v61 = vmul.f32 %v4230_v46, %v9250_v55  ;;  %v9251_v59 = vld [vmem:[#allocation20_spill] sm:$0xff]  ;;  %v4468_v20 = vmul.f32 %v4230_v46, %v9252_v9 }
 0x1a0   :  { %9247 = vst [vmem:[#allocation10_spill] sm:$0xff] %v4452_v23  ;;  %9248 = vst [vmem:[#allocation9_spill] sm:$0xff] %v4456_v33  ;;  %v1074_v54 = vmul.f32 %v4230_v46, %v9251_v59  ;;  %v4472_v23 = vrot.slane %v1014_v25, %v9253_v37  ;;  %v1075_v33 = vmul.f32 %v4230_v46, %v9254_v26 }
 0x1a1   :  { %9249 = vst [vmem:[#allocation11_spill] sm:$0xff] %v4460_v60  ;;  %v9256_v60 = vld [vmem:[#allocation23_spill] sm:$0xff]  ;;  %v1078_v59 = vmul.f32 %v4230_v46, %v9257_v8 }
 0x1a2   :  { %v1077_v55 = vmul.f32 %v4230_v46, %v9256_v60  ;;  %v4484_v9 = vadd.f32 %v4472_v23, %v4236_v58  ;;  %v4488_v30 = vadd.f32 %v4472_v23, %v4240_v0  ;;  %v4492_v25 = vadd.f32 %v4472_v23, %v4244_v14 }
 0x1a3   :  { %v4496_v32 = vadd.f32 %v4472_v23, %v4248_v12  ;;  %v4500_v60 = vadd.f32 %v4472_v23, %v4252_v63  ;;  %v4504_v46 = vadd.f32 %v4472_v23, %v4256_v43  ;;  %v4508_v58 = vadd.f32 %v4472_v23, %v4260_v48 }
 0x1a4   :  { %v4512_v0 = vadd.f32 %v4472_v23, %v4264_v42  ;;  %v4516_v14 = vadd.f32 %v4472_v23, %v4268_v47  ;;  %v4520_v12 = vadd.f32 %v4472_v23, %v4272_v4  ;;  %v4524_v63 = vadd.f32 %v4472_v23, %v4276_v13  ;;  %v9266_v37 = vld [vmem:[#allocation3_spill] sm:$0xff]  ;;  %v9268_v26 = vld [vmem:[#allocation4_spill] sm:$0xff] }
 0x1a5   :  { %v4528_v43 = vadd.f32 %v4472_v23, %v4280_v7  ;;  %v4532_v48 = vadd.f32 %v4472_v23, %v4284_v16  ;;  %v4536_v42 = vadd.f32 %v4472_v23, %v4288_v35  ;;  %v4540_v47 = vadd.f32 %v4472_v23, %v4292_v50 }
 0x1a6   :  { %v4544_v4 = vadd.f32 %v4472_v23, %v4296_v38  ;;  %v4548_v13 = vadd.f32 %v4472_v23, %v4300_v53  ;;  %v4552_v7 = vadd.f32 %v4472_v23, %v4304_v15  ;;  %v4556_v16 = vadd.f32 %v4472_v23, %v4308_v29  ;;  %v9258_v29 = vld [vmem:[#allocation2_spill] sm:$0xff] }
 0x1a7   :  { %v4560_v35 = vadd.f32 %v4472_v23, %v4312_v39  ;;  %v4564_v50 = vadd.f32 %v4472_v23, %v4316_v3  ;;  %v4568_v38 = vadd.f32 %v4472_v23, %v4320_v44  ;;  %v4572_v53 = vadd.f32 %v4472_v23, %v4324_v41 }
 0x1a8   :  { %v4576_v15 = vadd.f32 %v4472_v23, %v4328_v19  ;;  %v4580_v39 = vadd.f32 %v4472_v23, %v9258_v29  ;;  %v4584_v3 = vadd.f32 %v4472_v23, %v4336_v1  ;;  %v4588_v44 = vadd.f32 %v4472_v23, %v4340_v40  ;;  %v9269_v29 = vld [vmem:[#allocation6_spill] sm:$0xff] }
 0x1a9   :  { %v4592_v41 = vadd.f32 %v4472_v23, %v4344_v36  ;;  %v4596_v19 = vadd.f32 %v4472_v23, %v4348_v27  ;;  %v4600_v8 = vadd.f32 %v4472_v23, %v4352_v45  ;;  %v4604_v1 = vadd.f32 %v4472_v23, %v4356_v11 }
 0x1aa   :  { %v4608_v40 = vadd.f32 %v4472_v23, %v4360_v51  ;;  %v4612_v36 = vadd.f32 %v4472_v23, %v4364_v56  ;;  %v4616_v27 = vadd.f32 %v4472_v23, %v4368_v22  ;;  %v4620_v45 = vadd.f32 %v4472_v23, %v4372_v6 }
 0x1ab   :  { %v4624_v11 = vadd.f32 %v4472_v23, %v4376_v57  ;;  %v4628_v51 = vadd.f32 %v4472_v23, %v4380_v10  ;;  %v4632_v56 = vadd.f32 %v4472_v23, %v4384_v5  ;;  %v4636_v22 = vadd.f32 %v4472_v23, %v4388_v2 }
 0x1ac   :  { %v4640_v6 = vadd.f32 %v4472_v23, %v4392_v24  ;;  %v4644_v57 = vadd.f32 %v4472_v23, %v4396_v62  ;;  %v4648_v10 = vadd.f32 %v4472_v23, %v4400_v52  ;;  %v4652_v5 = vadd.f32 %v4472_v23, %v4404_v21 }
 0x1ad   :  { %v4656_v2 = vadd.f32 %v4472_v23, %v4408_v49  ;;  %v4660_v24 = vadd.f32 %v4472_v23, %v4412_v28  ;;  %v4664_v62 = vadd.f32 %v4472_v23, %v4416_v34  ;;  %v4668_v52 = vadd.f32 %v4472_v23, %v4420_v31 }
 0x1ae   :  { %9259 = vst [vmem:[#allocation12_spill] sm:$0xff] %v4640_v6  ;;  %9260 = vst [vmem:[#allocation14_spill] sm:$0xff] %v4644_v57  ;;  %v4672_v21 = vadd.f32 %v4472_v23, %v4424_v17  ;;  %v4676_v49 = vadd.f32 %v4472_v23, %v9266_v37  ;;  %v4680_v28 = vadd.f32 %v4472_v23, %v9268_v26 }
 0x1af   :  { %9261 = vst [vmem:[#allocation13_spill] sm:$0xff] %v4648_v10  ;;  %9262 = vst [vmem:[#allocation15_spill] sm:$0xff] %v4660_v24  ;;  %v4684_v34 = vadd.f32 %v4472_v23, %v9269_v29  ;;  %v4702_v26 = vadd.f32 %v4472_v23, %v1074_v54  ;;  %v4705_v29 = vadd.f32 %v4472_v23, %v1075_v33 }
 0x1b0   :  { %9263 = vst [vmem:[#allocation16_spill] sm:$0xff] %v4664_v62  ;;  %9264 = vst [vmem:[#allocation18_spill] sm:$0xff] %v4668_v52  ;;  %v9270_v62 = vld [vmem:[#allocation5_spill] sm:$0xff]  ;;  %v9272_v52 = vld [vmem:[#allocation7_spill] sm:$0xff] }
 0x1b1   :  { %9265 = vst [vmem:[#allocation17_spill] sm:$0xff] %v4672_v21  ;;  %9267 = vst [vmem:[#allocation19_spill] sm:$0xff] %v4676_v49  ;;  %v4688_v31 = vadd.f32 %v4472_v23, %v9270_v62  ;;  %v4692_v17 = vadd.f32 %v4472_v23, %v9272_v52  ;;  %v9273_v21 = vld [vmem:[#allocation8_spill] sm:$0xff]  ;;  %v4699_v49 = vadd.f32 %v4472_v23, %v1073_v61  ;;  %v9278_v61 = vld [vmem:[#allocation9_spill] sm:$0xff] }
 0x1b2   :  { %v4696_v37 = vadd.f32 %v4472_v23, %v9273_v21  ;;  %9276 = vst [vmem:[#allocation22_spill] sm:$0xff] %v4702_v26  ;;  %v4708_v62 = vadd.f32 %v4472_v23, %v1076_v18  ;;  %v4714_v52 = vadd.f32 %v4472_v23, %v1078_v59  ;;  %v9277_v21 = vld [vmem:[#allocation10_spill] sm:$0xff]  ;;  %v4722_v54 = vadd.f32 %v4472_v23, %v9278_v61  ;;  %v9280_v26 = vld [vmem:[#allocation11_spill] sm:$0xff] }
 0x1b3   :  { %9271 = vst [vmem:[#allocation20_spill] sm:$0xff] %v4688_v31  ;;  %9275 = vst [vmem:[#allocation21_spill] sm:$0xff] %v4699_v49  ;;  %v4711_v31 = vadd.f32 %v4472_v23, %v1077_v55  ;;  %v4726_v33 = vadd.f32 %v4472_v23, %v9280_v26  ;;  %v4730_v18 = vadd.f32 %v4472_v23, %v4468_v20  ;;  %v4733_v55 = vmul.f32 0.5, %v4484_v9 }
 0x1b4   :  { %9274 = vst [vmem:[#allocation25_spill] sm:$0xff] %v4696_v37  ;;  %v4718_v37 = vadd.f32 %v4472_v23, %v9277_v21  ;;  %9279 = vst [vmem:[#allocation23_spill] sm:$0xff] %v4722_v54  ;;  %v4736_v59 = vmul.f32 0.5, %v4488_v30  ;;  %v4739_v21 = vmul.f32 0.5, %v4492_v25  ;;  %v4742_v61 = vmul.f32 0.5, %v4496_v32 }
 0x1b5   :  { %9281 = vst [vmem:[#allocation24_spill] sm:$0xff] %v4733_v55  ;;  %v4745_v54 = vmul.f32 0.5, %v4500_v60  ;;  %v4748_v26 = vmul.f32 0.5, %v4504_v46  ;;  %v4751_v20 = vmul.f32 0.5, %v4508_v58  ;;  %v4754_v23 = vmul.f32 0.5, %v4512_v0 }
 0x1b6   :  { %9282 = vst [vmem:[#allocation2_spill] sm:$0xff] %v4736_v59  ;;  %9283 = vst [vmem:[#allocation3_spill] sm:$0xff] %v4739_v21  ;;  %v4757_v59 = vmul.f32 0.5, %v4516_v14  ;;  %v4760_v21 = vmul.f32 0.5, %v4520_v12 }
 0x1b7   :  { %9284 = vst [vmem:[#allocation4_spill] sm:$0xff] %v4742_v61  ;;  %9285 = vst [vmem:[#allocation6_spill] sm:$0xff] %v4745_v54  ;;  %v4763_v61 = vmul.f32 0.5, %v4524_v63  ;;  %v4766_v54 = vmul.f32 0.5, %v4528_v43  ;;  %v9326_v55 = vld [vmem:[#allocation16_spill] sm:$0xff] }
 0x1b8   :  { %9286 = vst [vmem:[#allocation5_spill] sm:$0xff] %v4748_v26  ;;  %9287 = vst [vmem:[#allocation7_spill] sm:$0xff] %v4751_v20  ;;  %v4769_v26 = vmul.f32 0.5, %v4532_v48  ;;  %v4772_v20 = vmul.f32 0.5, %v4536_v42 }
 0x1b9   :  { %9288 = vst [vmem:[#allocation8_spill] sm:$0xff] %v4754_v23  ;;  %9289 = vst [vmem:[#allocation10_spill] sm:$0xff] %v4757_v59  ;;  %v4775_v23 = vmul.f32 0.5, %v4540_v47  ;;  %v4778_v59 = vmul.f32 0.5, %v4544_v4 }
 0x1ba   :  { %9290 = vst [vmem:[#allocation9_spill] sm:$0xff] %v4760_v21  ;;  %9291 = vst [vmem:[#allocation11_spill] sm:$0xff] %v4763_v61  ;;  %v4781_v21 = vmul.f32 0.5, %v4548_v13  ;;  %v4784_v61 = vmul.f32 0.5, %v4552_v7 }
 0x1bb   :  { %9292 = vst [vmem:[#allocation26_spill] sm:$0xff] %v4766_v54  ;;  %9293 = vst [vmem:[#allocation27_spill] sm:$0xff] %v4769_v26  ;;  %v4787_v54 = vmul.f32 0.5, %v4556_v16  ;;  %v4790_v26 = vmul.f32 0.5, %v4560_v35 }
 0x1bc   :  { %9294 = vst [vmem:[#allocation28_spill] sm:$0xff] %v4772_v20  ;;  %9295 = vst [vmem:[#allocation29_spill] sm:$0xff] %v4775_v23  ;;  %v4793_v20 = vmul.f32 0.5, %v4564_v50  ;;  %v4796_v23 = vmul.f32 0.5, %v4568_v38 }
 0x1bd   :  { %9296 = vst [vmem:[#allocation30_spill] sm:$0xff] %v4778_v59  ;;  %9297 = vst [vmem:[#allocation31_spill] sm:$0xff] %v4781_v21  ;;  %v4799_v59 = vmul.f32 0.5, %v4572_v53  ;;  %v4802_v21 = vmul.f32 0.5, %v4576_v15 }
 0x1be   :  { %9298 = vst [vmem:[#allocation32_spill] sm:$0xff] %v4784_v61  ;;  %9299 = vst [vmem:[#allocation33_spill] sm:$0xff] %v4787_v54  ;;  %v4805_v61 = vmul.f32 0.5, %v4580_v39  ;;  %v4808_v54 = vmul.f32 0.5, %v4584_v3 }
 0x1bf   :  { %9300 = vst [vmem:[#allocation34_spill] sm:$0xff] %v4790_v26  ;;  %9301 = vst [vmem:[#allocation35_spill] sm:$0xff] %v4793_v20  ;;  %v4811_v26 = vmul.f32 0.5, %v4588_v44  ;;  %v4814_v20 = vmul.f32 0.5, %v4592_v41 }
 0x1c0   :  { %9302 = vst [vmem:[#allocation36_spill] sm:$0xff] %v4796_v23  ;;  %9303 = vst [vmem:[#allocation37_spill] sm:$0xff] %v4799_v59  ;;  %v4817_v23 = vmul.f32 0.5, %v4596_v19  ;;  %v4820_v59 = vmul.f32 0.5, %v4600_v8 }
 0x1c1   :  { %9304 = vst [vmem:[#allocation38_spill] sm:$0xff] %v4802_v21  ;;  %9305 = vst [vmem:[#allocation39_spill] sm:$0xff] %v4805_v61  ;;  %v4823_v21 = vmul.f32 0.5, %v4604_v1  ;;  %v4826_v61 = vmul.f32 0.5, %v4608_v40 }
 0x1c2   :  { %9306 = vst [vmem:[#allocation40_spill] sm:$0xff] %v4808_v54  ;;  %9307 = vst [vmem:[#allocation41_spill] sm:$0xff] %v4811_v26  ;;  %v4829_v54 = vmul.f32 0.5, %v4612_v36  ;;  %v4832_v26 = vmul.f32 0.5, %v4616_v27 }
 0x1c3   :  { %9308 = vst [vmem:[#allocation42_spill] sm:$0xff] %v4814_v20  ;;  %9309 = vst [vmem:[#allocation43_spill] sm:$0xff] %v4817_v23  ;;  %v4835_v20 = vmul.f32 0.5, %v4620_v45  ;;  %v4838_v23 = vmul.f32 0.5, %v4624_v11 }
 0x1c4   :  { %9310 = vst [vmem:[#allocation44_spill] sm:$0xff] %v4820_v59  ;;  %9311 = vst [vmem:[#allocation45_spill] sm:$0xff] %v4823_v21  ;;  %v4841_v59 = vmul.f32 0.5, %v4628_v51  ;;  %v4844_v21 = vmul.f32 0.5, %v4632_v56 }
 0x1c5   :  { %9312 = vst [vmem:[#allocation46_spill] sm:$0xff] %v4826_v61  ;;  %9313 = vst [vmem:[#allocation47_spill] sm:$0xff] %v4829_v54  ;;  %v4847_v61 = vmul.f32 0.5, %v4636_v22  ;;  %v4850_v54 = vmul.f32 0.5, %v4640_v6  ;;  %v9328_v6 = vld [vmem:[#allocation18_spill] sm:$0xff] }
 0x1c6   :  { %9314 = vst [vmem:[#allocation48_spill] sm:$0xff] %v4832_v26  ;;  %9315 = vst [vmem:[#allocation49_spill] sm:$0xff] %v4835_v20  ;;  %v4853_v26 = vmul.f32 0.5, %v4644_v57  ;;  %v4856_v20 = vmul.f32 0.5, %v4648_v10  ;;  %v9330_v57 = vld [vmem:[#allocation17_spill] sm:$0xff]  ;;  %v9332_v10 = vld [vmem:[#allocation19_spill] sm:$0xff] }
 0x1c7   :  { %9316 = vst [vmem:[#allocation50_spill] sm:$0xff] %v4838_v23  ;;  %9317 = vst [vmem:[#allocation51_spill] sm:$0xff] %v4841_v59  ;;  %v4859_v23 = vmul.f32 0.5, %v4652_v5  ;;  %v4862_v59 = vmul.f32 0.5, %v4656_v2 }
 0x1c8   :  { %9318 = vst [vmem:[#allocation52_spill] sm:$0xff] %v4844_v21  ;;  %9319 = vst [vmem:[#allocation53_spill] sm:$0xff] %v4847_v61  ;;  %v4865_v21 = vmul.f32 0.5, %v4660_v24  ;;  %v4868_v61 = vmul.f32 0.5, %v9326_v55  ;;  %v9336_v24 = vld [vmem:[#allocation20_spill] sm:$0xff] }
 0x1c9   :  { %9320 = vst [vmem:[#allocation54_spill] sm:$0xff] %v4850_v54  ;;  %9321 = vst [vmem:[#allocation55_spill] sm:$0xff] %v4853_v26  ;;  %v4871_v54 = vmul.f32 0.5, %v9328_v6  ;;  %v4874_v26 = vmul.f32 0.5, %v9330_v57  ;;  %v9339_v6 = vld [vmem:[#allocation25_spill] sm:$0xff] }
 0x1ca   :  { %9322 = vst [vmem:[#allocation56_spill] sm:$0xff] %v4856_v20  ;;  %9323 = vst [vmem:[#allocation57_spill] sm:$0xff] %v4859_v23  ;;  %v4877_v20 = vmul.f32 0.5, %v9332_v10  ;;  %v4880_v23 = vmul.f32 0.5, %v4680_v28  ;;  %v9342_v10 = vld [vmem:[#allocation22_spill] sm:$0xff] }
 0x1cb   :  { %9324 = vst [vmem:[#allocation58_spill] sm:$0xff] %v4862_v59  ;;  %9325 = vst [vmem:[#allocation59_spill] sm:$0xff] %v4865_v21  ;;  %v4883_v59 = vmul.f32 0.5, %v4684_v34  ;;  %v4886_v21 = vmul.f32 0.5, %v9336_v24 }
 0x1cc   :  { %9327 = vst [vmem:[#allocation16_spill] sm:$0xff] %v4868_v61  ;;  %9329 = vst [vmem:[#allocation60_spill] sm:$0xff] %v4871_v54  ;;  %v4889_v61 = vmul.f32 0.5, %v4692_v17  ;;  %v4892_v54 = vmul.f32 0.5, %v9339_v6 }
 0x1cd   :  { %9331 = vst [vmem:[#allocation17_spill] sm:$0xff] %v4874_v26  ;;  %9333 = vst [vmem:[#allocation61_spill] sm:$0xff] %v4877_v20  ;;  %v4895_v26 = vmul.f32 0.5, %v4699_v49  ;;  %v4898_v20 = vmul.f32 0.5, %v9342_v10  ;;  %v9349_v49 = vld [vmem:[#allocation23_spill] sm:$0xff] }
 0x1ce   :  { %9334 = vst [vmem:[#allocation62_spill] sm:$0xff] %v4880_v23  ;;  %9335 = vst [vmem:[#allocation63_spill] sm:$0xff] %v4883_v59  ;;  %v4901_v23 = vmul.f32 0.5, %v4705_v29  ;;  %v4904_v59 = vmul.f32 0.5, %v4708_v62 }
 0x1cf   :  { %9337 = vst [vmem:[#allocation20_spill] sm:$0xff] %v4886_v21  ;;  %9338 = vst [vmem:[#allocation64_spill] sm:$0xff] %v4889_v61  ;;  %v4907_v21 = vmul.f32 0.5, %v4711_v31  ;;  %v4910_v61 = vmul.f32 0.5, %v4714_v52 }
 0x1d0   :  { %9340 = vst [vmem:[#allocation25_spill] sm:$0xff] %v4892_v54  ;;  %9341 = vst [vmem:[#allocation65_spill] sm:$0xff] %v4895_v26  ;;  %v4913_v54 = vmul.f32 0.5, %v4718_v37  ;;  %v4916_v26 = vmul.f32 0.5, %v9349_v49 }
 0x1d1   :  { %9343 = vst [vmem:[#allocation22_spill] sm:$0xff] %v4898_v20  ;;  %9344 = vst [vmem:[#allocation66_spill] sm:$0xff] %v4901_v23  ;;  %v4919_v20 = vmul.f32 0.5, %v4726_v33  ;;  %v4922_v23 = vmul.f32 0.5, %v4730_v18 }
 0x1d2   :  { %9345 = vst [vmem:[#allocation67_spill] sm:$0xff] %v4904_v59  ;;  %9346 = vst [vmem:[#allocation68_spill] sm:$0xff] %v4907_v21  ;;  %v4925_v59 = vmul.f32 0.70710677, %v4484_v9  ;;  %v4928_v21 = vmul.f32 0.70710677, %v4488_v30 }
 0x1d3   :  { %9347 = vst [vmem:[#allocation69_spill] sm:$0xff] %v4910_v61  ;;  %9348 = vst [vmem:[#allocation70_spill] sm:$0xff] %v4913_v54  ;;  %v4931_v61 = vmul.f32 0.70710677, %v4492_v25  ;;  %v4934_v54 = vmul.f32 0.70710677, %v4496_v32 }
 0x1d4   :  { %9350 = vst [vmem:[#allocation23_spill] sm:$0xff] %v4916_v26  ;;  %9351 = vst [vmem:[#allocation71_spill] sm:$0xff] %v4919_v20  ;;  %v4937_v26 = vmul.f32 0.70710677, %v4500_v60  ;;  %v4940_v20 = vmul.f32 0.70710677, %v4504_v46 }
 0x1d5   :  { %9352 = vst [vmem:[#allocation72_spill] sm:$0xff] %v4922_v23  ;;  %v4943_v23 = vmul.f32 0.70710677, %v4508_v58  ;;  %v4946_v9 = vmul.f32 0.70710677, %v4512_v0  ;;  %vm1281_vm3 = vcmp.ge.f32.partialorder %v4925_v59, 0.0 }
 0x1d6   :  { %v4949_v30 = vmul.f32 0.70710677, %v4516_v14  ;;  %v4952_v25 = vmul.f32 0.70710677, %v4520_v12  ;;  %v4955_v32 = vmul.f32 0.70710677, %v4524_v63 }
 0x1d7   :  { %v4958_v60 = vmul.f32 0.70710677, %v4528_v43  ;;  %v4961_v46 = vmul.f32 0.70710677, %v4532_v48  ;;  %v4964_v58 = vmul.f32 0.70710677, %v4536_v42 }
 0x1d8   :  { %v4967_v0 = vmul.f32 0.70710677, %v4540_v47  ;;  %v4970_v14 = vmul.f32 0.70710677, %v4544_v4  ;;  %v4973_v12 = vmul.f32 0.70710677, %v4548_v13 }
 0x1d9   :  { %v4976_v63 = vmul.f32 0.70710677, %v4552_v7  ;;  %v4979_v43 = vmul.f32 0.70710677, %v4556_v16  ;;  %v4982_v48 = vmul.f32 0.70710677, %v4560_v35 }
 0x1da   :  { %9353 = vst [vmem:[#allocation73_spill] sm:$0xff] %v4973_v12  ;;  %v4985_v42 = vmul.f32 0.70710677, %v4564_v50  ;;  %v4988_v47 = vmul.f32 0.70710677, %v4568_v38  ;;  %vm1282_vm4 = vcmp.ge.f32.partialorder %v4928_v21, 0.0 }
 0x1db   :  { %v4991_v4 = vmul.f32 0.70710677, %v4572_v53  ;;  %v4994_v13 = vmul.f32 0.70710677, %v4576_v15  ;;  %v4997_v7 = vmul.f32 0.70710677, %v4580_v39 }
 0x1dc   :  { %v5000_v16 = vmul.f32 0.70710677, %v4584_v3  ;;  %v5003_v35 = vmul.f32 0.70710677, %v4588_v44  ;;  %v5006_v50 = vmul.f32 0.70710677, %v4592_v41 }
 0x1dd   :  { %v5009_v38 = vmul.f32 0.70710677, %v4596_v19  ;;  %v5012_v53 = vmul.f32 0.70710677, %v4600_v8  ;;  %v5015_v15 = vmul.f32 0.70710677, %v4604_v1 }
 0x1de   :  { %v5018_v39 = vmul.f32 0.70710677, %v4608_v40  ;;  %v5021_v3 = vmul.f32 0.70710677, %v4612_v36  ;;  %v5024_v44 = vmul.f32 0.70710677, %v4616_v27 }
 0x1df   :  { %v5027_v41 = vmul.f32 0.70710677, %v4620_v45  ;;  %v5030_v19 = vmul.f32 0.70710677, %v4624_v11  ;;  %v5033_v8 = vmul.f32 0.70710677, %v4628_v51 }
 0x1e0   :  { %9354 = vst [vmem:[#allocation74_spill] sm:$0xff] %v5021_v3  ;;  %9355 = vst [vmem:[#allocation75_spill] sm:$0xff] %v5024_v44  ;;  %v5036_v1 = vmul.f32 0.70710677, %v4632_v56  ;;  %v5039_v40 = vmul.f32 0.70710677, %v4636_v22 }
 0x1e1   :  { %9356 = vst [vmem:[#allocation76_spill] sm:$0xff] %v5027_v41  ;;  %9357 = vst [vmem:[#allocation77_spill] sm:$0xff] %v5030_v19  ;;  %v9360_v36 = vld [vmem:[#allocation12_spill] sm:$0xff]  ;;  %v9362_v27 = vld [vmem:[#allocation14_spill] sm:$0xff]  ;;  %v5051_v11 = vmul.f32 0.70710677, %v4652_v5 }
 0x1e2   :  { %9358 = vst [vmem:[#allocation78_spill] sm:$0xff] %v5036_v1  ;;  %9359 = vst [vmem:[#allocation79_spill] sm:$0xff] %v5039_v40  ;;  %v5042_v3 = vmul.f32 0.70710677, %v9360_v36  ;;  %v5045_v44 = vmul.f32 0.70710677, %v9362_v27 }
 0x1e3   :  { %v9364_v45 = vld [vmem:[#allocation13_spill] sm:$0xff]  ;;  %9366 = vst [vmem:[#allocation80_spill] sm:$0xff] %v5051_v11  ;;  %v5054_v51 = vmul.f32 0.70710677, %v4656_v2  ;;  %v9368_v56 = vld [vmem:[#allocation15_spill] sm:$0xff]  ;;  %v9370_v36 = vld [vmem:[#allocation18_spill] sm:$0xff] }
 0x1e4   :  { %9361 = vst [vmem:[#allocation12_spill] sm:$0xff] %v5042_v3  ;;  %9363 = vst [vmem:[#allocation14_spill] sm:$0xff] %v5045_v44  ;;  %v5048_v41 = vmul.f32 0.70710677, %v9364_v45  ;;  %v5057_v1 = vmul.f32 0.70710677, %v9368_v56 }
 0x1e5   :  { %9367 = vst [vmem:[#allocation81_spill] sm:$0xff] %v5054_v51  ;;  %v5060_v22 = vmul.f32 0.70710677, %v9326_v55  ;;  %v5063_v3 = vmul.f32 0.70710677, %v9370_v36  ;;  %v9372_v45 = vld [vmem:[#allocation19_spill] sm:$0xff] }
 0x1e6   :  { %9365 = vst [vmem:[#allocation13_spill] sm:$0xff] %v5048_v41  ;;  %9369 = vst [vmem:[#allocation15_spill] sm:$0xff] %v5057_v1  ;;  %v5066_v27 = vmul.f32 0.70710677, %v9330_v57  ;;  %v5069_v41 = vmul.f32 0.70710677, %v9372_v45 }
 0x1e7   :  { %v5072_v5 = vmul.f32 0.70710677, %v4680_v28  ;;  %v5075_v2 = vmul.f32 0.70710677, %v4684_v34  ;;  %v5078_v56 = vmul.f32 0.70710677, %v9336_v24 }
 0x1e8   :  { %9371 = vst [vmem:[#allocation18_spill] sm:$0xff] %v5066_v27  ;;  %v5081_v55 = vmul.f32 0.70710677, %v4692_v17  ;;  %v5084_v36 = vmul.f32 0.70710677, %v9339_v6  ;;  %v9373_v57 = vld [vmem:[#allocation21_spill] sm:$0xff] }
 0x1e9   :  { %v5087_v27 = vmul.f32 0.70710677, %v9373_v57  ;;  %v5090_v45 = vmul.f32 0.70710677, %v9342_v10  ;;  %v5093_v28 = vmul.f32 0.70710677, %v4705_v29 }
 0x1ea   :  { %v5096_v34 = vmul.f32 0.70710677, %v4708_v62  ;;  %v5099_v24 = vmul.f32 0.70710677, %v4711_v31  ;;  %v5102_v17 = vmul.f32 0.70710677, %v4714_v52 }
 0x1eb   :  { %v5105_v6 = vmul.f32 0.70710677, %v4718_v37  ;;  %v5108_v57 = vmul.f32 0.70710677, %v9349_v49  ;;  %v5111_v10 = vmul.f32 0.70710677, %v4726_v33 }
 0x1ec   :  { %v5114_v29 = vmul.f32 0.70710677, %v4730_v18  ;;  %vm1283_vm5 = vcmp.ge.f32.partialorder %v4931_v61, 0.0  ;;  %vm1284_vm6 = vcmp.ge.f32.partialorder %v4934_v54, 0.0  ;;  %vm1285_vm7 = vcmp.ge.f32.partialorder %v4937_v26, 0.0  ;;  %v9376_v49 = vld [vmem:[#allocation74_spill] sm:$0xff] }
 0x1ed   :  { %9374 = vst [vmem:[#allocation19_spill] sm:$0xff] %v5108_v57  ;;  %9375 = vst [vmem:[#allocation21_spill] sm:$0xff] %v5111_v10  ;;  %vm1286_vm8 = vcmp.ge.f32.partialorder %v4940_v20, 0.0  ;;  %v9377_v31 = vld [vmem:[#allocation75_spill] sm:$0xff]  ;;  %v9378_v37 = vld [vmem:[#allocation76_spill] sm:$0xff]  ;;  %vm1319_vm11 = vcmp.ge.f32.partialorder %v5039_v40, 0.0 }
 0x1ee   :  { %v9380_v52 = vld [vmem:[#allocation12_spill] sm:$0xff]  ;;  %vm1321_vm13 = vcmp.ge.f32.partialorder %v5045_v44, 0.0  ;;  %v9381_v33 = vld [vmem:[#allocation13_spill] sm:$0xff]  ;;  %vm1323_vm15 = vcmp.ge.f32.partialorder %v5051_v11, 0.0  ;;  %vm1324_vm0 = vcmp.ge.f32.partialorder %v5054_v51, 0.0  ;;  %vm1325_vm1 = vcmp.ge.f32.partialorder %v5057_v1, 0.0 }
 0x1ef   :  { %vm1320_vm12 = vcmp.ge.f32.partialorder %v9380_v52, 0.0  ;;  %vm1322_vm14 = vcmp.ge.f32.partialorder %v9381_v33, 0.0  ;;  %v3431_v62 = vmov -1.0   ;;  %vm1329_vm10 = vcmp.ge.f32.partialorder %v5069_v41, 0.0 }
 0x1f0   :  { %v5167_v52 = vsel %vm1281_vm3, 1.0, %v3431_v62  ;;  %v5172_v11 = vsel %vm1282_vm4, 1.0, %v3431_v62  ;;  %v5177_v1 = vsel %vm1283_vm5, 1.0, %v3431_v62  ;;  %v5182_v18 = vsel %vm1284_vm6, 1.0, %v3431_v62 }
 0x1f1   :  { %9383 = vst [vmem:[#allocation74_spill] sm:$0xff] %v5167_v52  ;;  %9384 = vst [vmem:[#allocation76_spill] sm:$0xff] %v5172_v11  ;;  %vm1330_vm3 = vcmp.ge.f32.partialorder %v5072_v5, 0.0  ;;  %v5191_v11 = vsel %vm1285_vm7, 1.0, %v3431_v62  ;;  %vm9389_vm4 = vcmp.ge.f32.partialorder %v4943_v23, 0.0  ;;  %vm9391_vm5 = vcmp.ge.f32.partialorder %v4946_v9, 0.0 }
 0x1f2   :  { %9385 = vst [vmem:[#allocation13_spill] sm:$0xff] %v5177_v1  ;;  %9386 = vst [vmem:[#allocation82_spill] sm:$0xff] %v5182_v18  ;;  %v5196_v1 = vsel %vm1286_vm8, 1.0, %v3431_v62  ;;  %v5201_v18 = vsel %vm9389_vm4, 1.0, %v3431_v62  ;;  %v5206_v52 = vsel %vm9391_vm5, 1.0, %v3431_v62  ;;  %vm9393_vm8 = vcmp.ge.f32.partialorder %v4949_v30, 0.0 }
 0x1f3   :  { %9387 = vst [vmem:[#allocation83_spill] sm:$0xff] %v5191_v11  ;;  %9388 = vst [vmem:[#allocation84_spill] sm:$0xff] %v5196_v1  ;;  %v5215_v1 = vsel %vm9393_vm8, 1.0, %v3431_v62  ;;  %vm9395_vm4 = vcmp.ge.f32.partialorder %v4952_v25, 0.0  ;;  %vm9397_vm5 = vcmp.ge.f32.partialorder %v4955_v32, 0.0  ;;  %vm9399_vm2 = vcmp.ge.f32.partialorder %v4958_v60, 0.0 }
 0x1f4   :  { %9390 = vst [vmem:[#allocation85_spill] sm:$0xff] %v5201_v18  ;;  %9392 = vst [vmem:[#allocation86_spill] sm:$0xff] %v5206_v52  ;;  %v5220_v18 = vsel %vm9395_vm4, 1.0, %v3431_v62  ;;  %v5225_v52 = vsel %vm9397_vm5, 1.0, %v3431_v62  ;;  %v5230_v11 = vsel %vm9399_vm2, 1.0, %v3431_v62  ;;  %vm9401_vm4 = vcmp.ge.f32.partialorder %v4961_v46, 0.0 }
 0x1f5   :  { %9394 = vst [vmem:[#allocation87_spill] sm:$0xff] %v5215_v1  ;;  %9396 = vst [vmem:[#allocation88_spill] sm:$0xff] %v5220_v18  ;;  %v5239_v18 = vsel %vm9401_vm4, 1.0, %v3431_v62  ;;  %vm9403_vm5 = vcmp.ge.f32.partialorder %v4964_v58, 0.0  ;;  %vm9405_vm2 = vcmp.ge.f32.partialorder %v4967_v0, 0.0  ;;  %vm9407_vm7 = vcmp.ge.f32.partialorder %v4970_v14, 0.0 }
 0x1f6   :  { %9398 = vst [vmem:[#allocation89_spill] sm:$0xff] %v5225_v52  ;;  %9400 = vst [vmem:[#allocation90_spill] sm:$0xff] %v5230_v11  ;;  %v5244_v52 = vsel %vm9403_vm5, 1.0, %v3431_v62  ;;  %v5249_v11 = vsel %vm9405_vm2, 1.0, %v3431_v62  ;;  %v5254_v1 = vsel %vm9407_vm7, 1.0, %v3431_v62  ;;  %vm1341_vm6 = vcmp.ge.f32.partialorder %v5105_v6, 0.0 }
 0x1f7   :  { %9402 = vst [vmem:[#allocation91_spill] sm:$0xff] %v5239_v18  ;;  %9404 = vst [vmem:[#allocation92_spill] sm:$0xff] %v5244_v52  ;;  %vm1342_vm4 = vcmp.ge.f32.partialorder %v5108_v57, 0.0  ;;  %vm9409_vm5 = vcmp.ge.f32.partialorder %v4973_v12, 0.0  ;;  %vm9411_vm2 = vcmp.ge.f32.partialorder %v4976_v63, 0.0  ;;  %vm9413_vm7 = vcmp.ge.f32.partialorder %v4979_v43, 0.0 }
 0x1f8   :  { %9406 = vst [vmem:[#allocation93_spill] sm:$0xff] %v5249_v11  ;;  %9408 = vst [vmem:[#allocation94_spill] sm:$0xff] %v5254_v1  ;;  %v5263_v52 = vsel %vm9409_vm5, 1.0, %v3431_v62  ;;  %v5268_v11 = vsel %vm9411_vm2, 1.0, %v3431_v62  ;;  %v5273_v1 = vsel %vm9413_vm7, 1.0, %v3431_v62  ;;  %vm9415_vm8 = vcmp.ge.f32.partialorder %v4982_v48, 0.0 }
 0x1f9   :  { %9410 = vst [vmem:[#allocation95_spill] sm:$0xff] %v5263_v52  ;;  %9412 = vst [vmem:[#allocation96_spill] sm:$0xff] %v5268_v11  ;;  %v5278_v18 = vsel %vm9415_vm8, 1.0, %v3431_v62  ;;  %vm9417_vm9 = vcmp.ge.f32.partialorder %v4985_v42, 0.0  ;;  %vm9419_vm5 = vcmp.ge.f32.partialorder %v4988_v47, 0.0  ;;  %vm9421_vm2 = vcmp.ge.f32.partialorder %v4991_v4, 0.0 }
 0x1fa   :  { %9414 = vst [vmem:[#allocation97_spill] sm:$0xff] %v5273_v1  ;;  %9416 = vst [vmem:[#allocation98_spill] sm:$0xff] %v5278_v18  ;;  %v5283_v12 = vsel %vm9417_vm9, 1.0, %v3431_v62  ;;  %v5288_v52 = vsel %vm9419_vm5, 1.0, %v3431_v62  ;;  %v5293_v11 = vsel %vm9421_vm2, 1.0, %v3431_v62  ;;  %vm9423_vm7 = vcmp.ge.f32.partialorder %v4994_v13, 0.0 }
 0x1fb   :  { %9418 = vst [vmem:[#allocation99_spill] sm:$0xff] %v5283_v12  ;;  %9420 = vst [vmem:[#allocation100_spill] sm:$0xff] %v5288_v52  ;;  %v5298_v1 = vsel %vm9423_vm7, 1.0, %v3431_v62  ;;  %vm9425_vm8 = vcmp.ge.f32.partialorder %v4997_v7, 0.0  ;;  %vm9427_vm9 = vcmp.ge.f32.partialorder %v5000_v16, 0.0  ;;  %vm9429_vm5 = vcmp.ge.f32.partialorder %v5003_v35, 0.0 }
 0x1fc   :  { %9422 = vst [vmem:[#allocation101_spill] sm:$0xff] %v5293_v11  ;;  %9424 = vst [vmem:[#allocation102_spill] sm:$0xff] %v5298_v1  ;;  %v5303_v18 = vsel %vm9425_vm8, 1.0, %v3431_v62  ;;  %v5308_v12 = vsel %vm9427_vm9, 1.0, %v3431_v62  ;;  %v5313_v52 = vsel %vm9429_vm5, 1.0, %v3431_v62  ;;  %vm9431_vm2 = vcmp.ge.f32.partialorder %v5006_v50, 0.0 }
 0x1fd   :  { %9426 = vst [vmem:[#allocation103_spill] sm:$0xff] %v5303_v18  ;;  %9428 = vst [vmem:[#allocation104_spill] sm:$0xff] %v5308_v12  ;;  %v5318_v11 = vsel %vm9431_vm2, 1.0, %v3431_v62  ;;  %vm9433_vm7 = vcmp.ge.f32.partialorder %v5009_v38, 0.0  ;;  %vm9435_vm8 = vcmp.ge.f32.partialorder %v5012_v53, 0.0  ;;  %vm9437_vm9 = vcmp.ge.f32.partialorder %v5015_v15, 0.0 }
 0x1fe   :  { %9430 = vst [vmem:[#allocation105_spill] sm:$0xff] %v5313_v52  ;;  %9432 = vst [vmem:[#allocation106_spill] sm:$0xff] %v5318_v11  ;;  %v5323_v1 = vsel %vm9433_vm7, 1.0, %v3431_v62  ;;  %v5328_v18 = vsel %vm9435_vm8, 1.0, %v3431_v62  ;;  %v5333_v12 = vsel %vm9437_vm9, 1.0, %v3431_v62  ;;  %vm9439_vm5 = vcmp.ge.f32.partialorder %v5018_v39, 0.0 }
 0x1ff   :  { %9434 = vst [vmem:[#allocation107_spill] sm:$0xff] %v5323_v1  ;;  %9436 = vst [vmem:[#allocation108_spill] sm:$0xff] %v5328_v18  ;;  %v5338_v52 = vsel %vm9439_vm5, 1.0, %v3431_v62  ;;  %vm9441_vm2 = vcmp.ge.f32.partialorder %v9376_v49, 0.0  ;;  %vm9443_vm7 = vcmp.ge.f32.partialorder %v9377_v31, 0.0  ;;  %vm9445_vm8 = vcmp.ge.f32.partialorder %v9378_v37, 0.0 }
 0x200   :  { %9438 = vst [vmem:[#allocation109_spill] sm:$0xff] %v5333_v12  ;;  %9440 = vst [vmem:[#allocation110_spill] sm:$0xff] %v5338_v52  ;;  %v5343_v11 = vsel %vm9441_vm2, 1.0, %v3431_v62  ;;  %v5348_v1 = vsel %vm9443_vm7, 1.0, %v3431_v62  ;;  %v5353_v18 = vsel %vm9445_vm8, 1.0, %v3431_v62  ;;  %vm9447_vm9 = vcmp.ge.f32.partialorder %v5030_v19, 0.0 }
 0x201   :  { %9442 = vst [vmem:[#allocation111_spill] sm:$0xff] %v5343_v11  ;;  %9444 = vst [vmem:[#allocation112_spill] sm:$0xff] %v5348_v1  ;;  %v5358_v12 = vsel %vm9447_vm9, 1.0, %v3431_v62  ;;  %vm9449_vm5 = vcmp.ge.f32.partialorder %v5033_v8, 0.0  ;;  %v9451_v11 = vld [vmem:[#allocation78_spill] sm:$0xff]  ;;  %v5373_v1 = vsel %vm1319_vm11, 1.0, %v3431_v62 }
 0x202   :  { %9446 = vst [vmem:[#allocation113_spill] sm:$0xff] %v5353_v18  ;;  %9448 = vst [vmem:[#allocation114_spill] sm:$0xff] %v5358_v12  ;;  %v5363_v52 = vsel %vm9449_vm5, 1.0, %v3431_v62  ;;  %vm9452_vm2 = vcmp.ge.f32.partialorder %v9451_v11, 0.0  ;;  %v9455_v18 = vld [vmem:[#allocation12_spill] sm:$0xff]  ;;  %v5378_v19 = vsel %vm1320_vm12, 1.0, %v3431_v62 }
 0x203   :  { %9450 = vst [vmem:[#allocation115_spill] sm:$0xff] %v5363_v52  ;;  %v5368_v31 = vsel %vm9452_vm2, 1.0, %v3431_v62  ;;  %9454 = vst [vmem:[#allocation116_spill] sm:$0xff] %v5373_v1  ;;  %v5383_v12 = vsel %vm1321_vm13, 1.0, %v3431_v62  ;;  %v5388_v52 = vsel %vm1322_vm14, 1.0, %v3431_v62  ;;  %v5393_v40 = vsel %vm1323_vm15, 1.0, %v3431_v62 }
 0x204   :  { %9453 = vst [vmem:[#allocation78_spill] sm:$0xff] %v5368_v31  ;;  %9456 = vst [vmem:[#allocation12_spill] sm:$0xff] %v5378_v19  ;;  %v9459_v31 = vld [vmem:[#allocation80_spill] sm:$0xff]  ;;  %v5398_v1 = vsel %vm1324_vm0, 1.0, %v3431_v62  ;;  %v9462_v19 = vld [vmem:[#allocation15_spill] sm:$0xff]  ;;  %v5403_v44 = vsel %vm1325_vm1, 1.0, %v3431_v62 }
 0x205   :  { %9457 = vst [vmem:[#allocation117_spill] sm:$0xff] %v5383_v12  ;;  %9458 = vst [vmem:[#allocation118_spill] sm:$0xff] %v5388_v52  ;;  %vm9464_vm11 = vcmp.ge.f32.partialorder %v5060_v22, 0.0  ;;  %vm9466_vm12 = vcmp.ge.f32.partialorder %v5063_v3, 0.0  ;;  %vm9473_vm14 = vcmp.ge.f32.partialorder %v5075_v2, 0.0  ;;  %vm9475_vm15 = vcmp.ge.f32.partialorder %v5078_v56, 0.0 }
 0x206   :  { %9460 = vst [vmem:[#allocation80_spill] sm:$0xff] %v5393_v40  ;;  %9461 = vst [vmem:[#allocation119_spill] sm:$0xff] %v5398_v1  ;;  %v5408_v12 = vsel %vm9464_vm11, 1.0, %v3431_v62  ;;  %v5413_v52 = vsel %vm9466_vm12, 1.0, %v3431_v62  ;;  %v9468_v40 = vld [vmem:[#allocation18_spill] sm:$0xff]  ;;  %v5423_v1 = vsel %vm1329_vm10, 1.0, %v3431_v62 }
 0x207   :  { %9463 = vst [vmem:[#allocation15_spill] sm:$0xff] %v5403_v44  ;;  %9465 = vst [vmem:[#allocation120_spill] sm:$0xff] %v5408_v12  ;;  %vm9469_vm13 = vcmp.ge.f32.partialorder %v9468_v40, 0.0  ;;  %v5428_v44 = vsel %vm1330_vm3, 1.0, %v3431_v62  ;;  %v5433_v12 = vsel %vm9473_vm14, 1.0, %v3431_v62  ;;  %vm9477_vm0 = vcmp.ge.f32.partialorder %v5081_v55, 0.0 }
 0x208   :  { %9467 = vst [vmem:[#allocation121_spill] sm:$0xff] %v5413_v52  ;;  %v5418_v51 = vsel %vm9469_vm13, 1.0, %v3431_v62  ;;  %9471 = vst [vmem:[#allocation122_spill] sm:$0xff] %v5423_v1  ;;  %v5438_v52 = vsel %vm9475_vm15, 1.0, %v3431_v62  ;;  %vm9479_vm10 = vcmp.ge.f32.partialorder %v5084_v36, 0.0  ;;  %vm9481_vm1 = vcmp.ge.f32.partialorder %v5087_v27, 0.0 }
 0x209   :  { %9470 = vst [vmem:[#allocation18_spill] sm:$0xff] %v5418_v51  ;;  %9472 = vst [vmem:[#allocation123_spill] sm:$0xff] %v5428_v44  ;;  %v5443_v51 = vsel %vm9477_vm0, 1.0, %v3431_v62  ;;  %v5448_v1 = vsel %vm9479_vm10, 1.0, %v3431_v62  ;;  %v5453_v44 = vsel %vm9481_vm1, 1.0, %v3431_v62  ;;  %vm9483_vm3 = vcmp.ge.f32.partialorder %v5090_v45, 0.0 }
 0x20a   :  { %9474 = vst [vmem:[#allocation124_spill] sm:$0xff] %v5433_v12  ;;  %9476 = vst [vmem:[#allocation125_spill] sm:$0xff] %v5438_v52  ;;  %v5458_v12 = vsel %vm9483_vm3, 1.0, %v3431_v62  ;;  %vm9485_vm7 = vcmp.ge.f32.partialorder %v5093_v28, 0.0  ;;  %vm9487_vm8 = vcmp.ge.f32.partialorder %v5096_v34, 0.0  ;;  %vm9489_vm9 = vcmp.ge.f32.partialorder %v5099_v24, 0.0 }
 0x20b   :  { %9478 = vst [vmem:[#allocation126_spill] sm:$0xff] %v5443_v51  ;;  %9480 = vst [vmem:[#allocation127_spill] sm:$0xff] %v5448_v1  ;;  %v5463_v52 = vsel %vm9485_vm7, 1.0, %v3431_v62  ;;  %v5468_v51 = vsel %vm9487_vm8, 1.0, %v3431_v62  ;;  %v5473_v1 = vsel %vm9489_vm9, 1.0, %v3431_v62  ;;  %vm9491_vm5 = vcmp.ge.f32.partialorder %v5102_v17, 0.0 }
 0x20c   :  { %9482 = vst [vmem:[#allocation128_spill] sm:$0xff] %v5453_v44  ;;  %9484 = vst [vmem:[#allocation129_spill] sm:$0xff] %v5458_v12  ;;  %v5478_v44 = vsel %vm9491_vm5, 1.0, %v3431_v62  ;;  %v5483_v12 = vsel %vm1341_vm6, 1.0, %v3431_v62  ;;  %vm9495_vm2 = vcmp.ge.f32.partialorder %v5111_v10, 0.0  ;;  %vm9497_vm11 = vcmp.ge.f32.partialorder %v5114_v29, 0.0 }
 0x20d   :  { %9486 = vst [vmem:[#allocation130_spill] sm:$0xff] %v5463_v52  ;;  %9488 = vst [vmem:[#allocation131_spill] sm:$0xff] %v5468_v51  ;;  %v5488_v52 = vsel %vm1342_vm4, 1.0, %v3431_v62  ;;  %v5493_v51 = vsel %vm9495_vm2, 1.0, %v3431_v62  ;;  %v5507_v57 = vand.u32 2147483647, %v4931_v61 }
 0x20e   :  { %9490 = vst [vmem:[#allocation132_spill] sm:$0xff] %v5473_v1  ;;  %9492 = vst [vmem:[#allocation133_spill] sm:$0xff] %v5478_v44  ;;  %v5498_v1 = vsel %vm9497_vm11, 1.0, %v3431_v62  ;;  %v5501_v44 = vand.u32 2147483647, %v4925_v59  ;;  %vm10475_vm6 = vcmask 261120  }
 0x20f   :  { %9493 = vst [vmem:[#allocation134_spill] sm:$0xff] %v5483_v12  ;;  %9494 = vst [vmem:[#allocation135_spill] sm:$0xff] %v5488_v52  ;;  %v5504_v12 = vand.u32 2147483647, %v4928_v21  ;;  %v5510_v52 = vand.u32 2147483647, %v4934_v54 }
 0x210   :  { %9496 = vst [vmem:[#allocation136_spill] sm:$0xff] %v5493_v51  ;;  %9498 = vst [vmem:[#allocation137_spill] sm:$0xff] %v5498_v1  ;;  %v5513_v10 = vand.u32 2147483647, %v4937_v26  ;;  %v5516_v51 = vand.u32 2147483647, %v4940_v20 }
 0x211   :  { %9499 = vst [vmem:[#allocation138_spill] sm:$0xff] %v5501_v44  ;;  %9500 = vst [vmem:[#allocation139_spill] sm:$0xff] %v5504_v12  ;;  %v5519_v62 = vand.u32 2147483647, %v4943_v23  ;;  %v5522_v59 = vand.u32 2147483647, %v4946_v9 }
 0x212   :  { %9501 = vst [vmem:[#allocation140_spill] sm:$0xff] %v5507_v57  ;;  %9502 = vst [vmem:[#allocation141_spill] sm:$0xff] %v5510_v52  ;;  %v5525_v21 = vand.u32 2147483647, %v4949_v30  ;;  %v5528_v61 = vand.u32 2147483647, %v4952_v25 }
 0x213   :  { %9503 = vst [vmem:[#allocation142_spill] sm:$0xff] %v5513_v10  ;;  %9504 = vst [vmem:[#allocation143_spill] sm:$0xff] %v5516_v51  ;;  %v5531_v54 = vand.u32 2147483647, %v4955_v32  ;;  %v5534_v26 = vand.u32 2147483647, %v4958_v60 }
 0x214   :  { %9505 = vst [vmem:[#allocation144_spill] sm:$0xff] %v5519_v62  ;;  %9506 = vst [vmem:[#allocation145_spill] sm:$0xff] %v5522_v59  ;;  %v5537_v20 = vand.u32 2147483647, %v4961_v46  ;;  %v5540_v23 = vand.u32 2147483647, %v4964_v58 }
 0x215   :  { %9507 = vst [vmem:[#allocation146_spill] sm:$0xff] %v5525_v21  ;;  %9508 = vst [vmem:[#allocation147_spill] sm:$0xff] %v5528_v61  ;;  %v5543_v9 = vand.u32 2147483647, %v4967_v0  ;;  %v5546_v30 = vand.u32 2147483647, %v4970_v14 }
 0x216   :  { %9509 = vst [vmem:[#allocation148_spill] sm:$0xff] %v5531_v54  ;;  %9510 = vst [vmem:[#allocation149_spill] sm:$0xff] %v5534_v26  ;;  %v9515_v25 = vld [vmem:[#allocation73_spill] sm:$0xff]  ;;  %v5552_v32 = vand.u32 2147483647, %v4976_v63 }
 0x217   :  { %9511 = vst [vmem:[#allocation150_spill] sm:$0xff] %v5537_v20  ;;  %9512 = vst [vmem:[#allocation151_spill] sm:$0xff] %v5540_v23  ;;  %v5549_v1 = vand.u32 2147483647, %v9515_v25  ;;  %v5555_v60 = vand.u32 2147483647, %v4979_v43 }
 0x218   :  { %9513 = vst [vmem:[#allocation152_spill] sm:$0xff] %v5543_v9  ;;  %9514 = vst [vmem:[#allocation153_spill] sm:$0xff] %v5546_v30  ;;  %v5558_v46 = vand.u32 2147483647, %v4982_v48  ;;  %v5561_v58 = vand.u32 2147483647, %v4985_v42 }
 0x219   :  { %9516 = vst [vmem:[#allocation73_spill] sm:$0xff] %v5549_v1  ;;  %9517 = vst [vmem:[#allocation154_spill] sm:$0xff] %v5552_v32  ;;  %v5564_v0 = vand.u32 2147483647, %v4988_v47  ;;  %v5567_v14 = vand.u32 2147483647, %v4991_v4 }
 0x21a   :  { %9518 = vst [vmem:[#allocation155_spill] sm:$0xff] %v5555_v60  ;;  %9519 = vst [vmem:[#allocation156_spill] sm:$0xff] %v5558_v46  ;;  %v5570_v25 = vand.u32 2147483647, %v4994_v13  ;;  %v5573_v63 = vand.u32 2147483647, %v4997_v7 }
 0x21b   :  { %9520 = vst [vmem:[#allocation157_spill] sm:$0xff] %v5561_v58  ;;  %9521 = vst [vmem:[#allocation158_spill] sm:$0xff] %v5564_v0  ;;  %v5576_v43 = vand.u32 2147483647, %v5000_v16  ;;  %v5579_v48 = vand.u32 2147483647, %v5003_v35 }
 0x21c   :  { %9522 = vst [vmem:[#allocation159_spill] sm:$0xff] %v5567_v14  ;;  %9523 = vst [vmem:[#allocation160_spill] sm:$0xff] %v5570_v25  ;;  %v5582_v42 = vand.u32 2147483647, %v5006_v50  ;;  %v5585_v47 = vand.u32 2147483647, %v5009_v38 }
 0x21d   :  { %9524 = vst [vmem:[#allocation161_spill] sm:$0xff] %v5573_v63  ;;  %9525 = vst [vmem:[#allocation162_spill] sm:$0xff] %v5576_v43  ;;  %v5588_v4 = vand.u32 2147483647, %v5012_v53  ;;  %v5591_v13 = vand.u32 2147483647, %v5015_v15 }
 0x21e   :  { %9526 = vst [vmem:[#allocation163_spill] sm:$0xff] %v5579_v48  ;;  %9527 = vst [vmem:[#allocation164_spill] sm:$0xff] %v5582_v42  ;;  %v5594_v7 = vand.u32 2147483647, %v5018_v39  ;;  %v5597_v16 = vand.u32 2147483647, %v9376_v49 }
 0x21f   :  { %9528 = vst [vmem:[#allocation165_spill] sm:$0xff] %v5585_v47  ;;  %9529 = vst [vmem:[#allocation166_spill] sm:$0xff] %v5588_v4  ;;  %v9533_v35 = vld [vmem:[#allocation75_spill] sm:$0xff]  ;;  %v5603_v50 = vand.u32 2147483647, %v9378_v37  ;;  %v9536_v38 = vld [vmem:[#allocation77_spill] sm:$0xff] }
 0x220   :  { %9530 = vst [vmem:[#allocation167_spill] sm:$0xff] %v5591_v13  ;;  %9531 = vst [vmem:[#allocation168_spill] sm:$0xff] %v5594_v7  ;;  %v5600_v48 = vand.u32 2147483647, %v9533_v35  ;;  %v5606_v47 = vand.u32 2147483647, %v9536_v38 }
 0x221   :  { %9532 = vst [vmem:[#allocation169_spill] sm:$0xff] %v5597_v16  ;;  %9535 = vst [vmem:[#allocation170_spill] sm:$0xff] %v5603_v50  ;;  %v5609_v53 = vand.u32 2147483647, %v5033_v8  ;;  %v5612_v15 = vand.u32 2147483647, %v9451_v11 }
 0x222   :  { %9534 = vst [vmem:[#allocation75_spill] sm:$0xff] %v5600_v48  ;;  %9537 = vst [vmem:[#allocation77_spill] sm:$0xff] %v5606_v47  ;;  %v9540_v39 = vld [vmem:[#allocation79_spill] sm:$0xff]  ;;  %v5618_v49 = vand.u32 2147483647, %v9455_v18  ;;  %v9543_v35 = vld [vmem:[#allocation14_spill] sm:$0xff] }
 0x223   :  { %9538 = vst [vmem:[#allocation171_spill] sm:$0xff] %v5609_v53  ;;  %9539 = vst [vmem:[#allocation172_spill] sm:$0xff] %v5612_v15  ;;  %v5615_v7 = vand.u32 2147483647, %v9540_v39  ;;  %v5621_v48 = vand.u32 2147483647, %v9543_v35 }
 0x224   :  { %9542 = vst [vmem:[#allocation173_spill] sm:$0xff] %v5618_v49  ;;  %v5624_v37 = vand.u32 2147483647, %v9381_v33  ;;  %v5627_v38 = vand.u32 2147483647, %v9459_v31  ;;  %v9547_v8 = vld [vmem:[#allocation81_spill] sm:$0xff]  ;;  %vm10476_vm4 = vmmov %vm10475_vm6 }
 0x225   :  { %9541 = vst [vmem:[#allocation79_spill] sm:$0xff] %v5615_v7  ;;  %9544 = vst [vmem:[#allocation14_spill] sm:$0xff] %v5621_v48  ;;  %v5630_v53 = vand.u32 2147483647, %v9547_v8  ;;  %v5633_v11 = vand.u32 2147483647, %v9462_v19 }
 0x226   :  { %9545 = vst [vmem:[#allocation174_spill] sm:$0xff] %v5624_v37  ;;  %9546 = vst [vmem:[#allocation175_spill] sm:$0xff] %v5627_v38  ;;  %v5636_v39 = vand.u32 2147483647, %v5060_v22  ;;  %v5639_v18 = vand.u32 2147483647, %v5063_v3 }
 0x227   :  { %9548 = vst [vmem:[#allocation81_spill] sm:$0xff] %v5630_v53  ;;  %9549 = vst [vmem:[#allocation176_spill] sm:$0xff] %v5633_v11  ;;  %v5642_v35 = vand.u32 2147483647, %v9468_v40  ;;  %v5645_v33 = vand.u32 2147483647, %v5069_v41 }
 0x228   :  { %9550 = vst [vmem:[#allocation177_spill] sm:$0xff] %v5636_v39  ;;  %9551 = vst [vmem:[#allocation178_spill] sm:$0xff] %v5639_v18  ;;  %v5648_v31 = vand.u32 2147483647, %v5072_v5  ;;  %v5651_v8 = vand.u32 2147483647, %v5075_v2 }
 0x229   :  { %9552 = vst [vmem:[#allocation179_spill] sm:$0xff] %v5642_v35  ;;  %9553 = vst [vmem:[#allocation180_spill] sm:$0xff] %v5645_v33  ;;  %v5654_v19 = vand.u32 2147483647, %v5078_v56  ;;  %v5657_v22 = vand.u32 2147483647, %v5081_v55 }
 0x22a   :  { %9554 = vst [vmem:[#allocation181_spill] sm:$0xff] %v5648_v31  ;;  %9555 = vst [vmem:[#allocation182_spill] sm:$0xff] %v5651_v8  ;;  %v5660_v3 = vand.u32 2147483647, %v5084_v36  ;;  %v5663_v40 = vand.u32 2147483647, %v5087_v27 }
 0x22b   :  { %9556 = vst [vmem:[#allocation183_spill] sm:$0xff] %v5654_v19  ;;  %9557 = vst [vmem:[#allocation184_spill] sm:$0xff] %v5657_v22  ;;  %v5666_v41 = vand.u32 2147483647, %v5090_v45  ;;  %v5669_v5 = vand.u32 2147483647, %v5093_v28 }
 0x22c   :  { %9558 = vst [vmem:[#allocation185_spill] sm:$0xff] %v5660_v3  ;;  %9559 = vst [vmem:[#allocation186_spill] sm:$0xff] %v5663_v40  ;;  %v5672_v2 = vand.u32 2147483647, %v5096_v34  ;;  %v5675_v56 = vand.u32 2147483647, %v5099_v24 }
 0x22d   :  { %9560 = vst [vmem:[#allocation187_spill] sm:$0xff] %v5666_v41  ;;  %9561 = vst [vmem:[#allocation188_spill] sm:$0xff] %v5669_v5  ;;  %v5678_v55 = vand.u32 2147483647, %v5102_v17  ;;  %v5681_v36 = vand.u32 2147483647, %v5105_v6 }
 0x22e   :  { %9562 = vst [vmem:[#allocation189_spill] sm:$0xff] %v5672_v2  ;;  %9563 = vst [vmem:[#allocation190_spill] sm:$0xff] %v5675_v56  ;;  %v9566_v27 = vld [vmem:[#allocation19_spill] sm:$0xff]  ;;  %v9568_v45 = vld [vmem:[#allocation21_spill] sm:$0xff]  ;;  %v5690_v28 = vand.u32 2147483647, %v5114_v29 }
 0x22f   :  { %9564 = vst [vmem:[#allocation191_spill] sm:$0xff] %v5678_v55  ;;  %9565 = vst [vmem:[#allocation192_spill] sm:$0xff] %v5681_v36  ;;  %v5684_v40 = vand.u32 2147483647, %v9566_v27  ;;  %v5687_v41 = vand.u32 2147483647, %v9568_v45 }
 0x230   :  { %9570 = vst [vmem:[#allocation193_spill] sm:$0xff] %v5690_v28  ;;  %v5693_v34 = vmul.f32 0.3275911, %v5501_v44  ;;  %v5696_v24 = vmul.f32 0.3275911, %v5504_v12  ;;  %vm10481_vm12 = vmmov %vm10476_vm4 }
 0x231   :  { %9567 = vst [vmem:[#allocation19_spill] sm:$0xff] %v5684_v40  ;;  %9569 = vst [vmem:[#allocation21_spill] sm:$0xff] %v5687_v41  ;;  %v5699_v17 = vmul.f32 0.3275911, %v5507_v57  ;;  %v5702_v6 = vmul.f32 0.3275911, %v5510_v52 }
 0x232   :  { %v5705_v27 = vmul.f32 0.3275911, %v5513_v10  ;;  %v5708_v45 = vmul.f32 0.3275911, %v5516_v51  ;;  %v5711_v29 = vmul.f32 0.3275911, %v5519_v62  ;;  %vm10482_vm13 = vmmov %vm10476_vm4 }
 0x233   :  { %v5714_v44 = vmul.f32 0.3275911, %v5522_v59  ;;  %v5717_v12 = vmul.f32 0.3275911, %v5525_v21  ;;  %v5720_v57 = vmul.f32 0.3275911, %v5528_v61  ;;  %vm10483_vm14 = vmmov %vm10476_vm4 }
 0x234   :  { %v5723_v52 = vmul.f32 0.3275911, %v5531_v54  ;;  %v5726_v10 = vmul.f32 0.3275911, %v5534_v26  ;;  %v5729_v51 = vmul.f32 0.3275911, %v5537_v20  ;;  %vm10484_vm15 = vmmov %vm10476_vm4 }
 0x235   :  { %v5732_v62 = vmul.f32 0.3275911, %v5540_v23  ;;  %v5735_v59 = vmul.f32 0.3275911, %v5543_v9  ;;  %v5738_v21 = vmul.f32 0.3275911, %v5546_v30  ;;  %vm10489_vm0 = vmmov %vm10476_vm4 }
 0x236   :  { %v5741_v61 = vmul.f32 0.3275911, %v5549_v1  ;;  %v5744_v54 = vmul.f32 0.3275911, %v5552_v32  ;;  %v5747_v26 = vmul.f32 0.3275911, %v5555_v60  ;;  %vm10490_vm10 = vmmov %vm10489_vm0 }
 0x237   :  { %v5750_v20 = vmul.f32 0.3275911, %v5558_v46  ;;  %v5753_v23 = vmul.f32 0.3275911, %v5561_v58  ;;  %v5756_v9 = vmul.f32 0.3275911, %v5564_v0  ;;  %vm10491_vm1 = vmmov %vm10489_vm0 }
 0x238   :  { %v5759_v30 = vmul.f32 0.3275911, %v5567_v14  ;;  %v5762_v1 = vmul.f32 0.3275911, %v5570_v25  ;;  %v5765_v32 = vmul.f32 0.3275911, %v5573_v63  ;;  %vm10492_vm3 = vmmov %vm10489_vm0 }
 0x239   :  { %9571 = vst [vmem:[#allocation194_spill] sm:$0xff] %v5750_v20  ;;  %9572 = vst [vmem:[#allocation195_spill] sm:$0xff] %v5756_v9  ;;  %v5768_v60 = vmul.f32 0.3275911, %v5576_v43  ;;  %v9574_v46 = vld [vmem:[#allocation163_spill] sm:$0xff]  ;;  %v9576_v0 = vld [vmem:[#allocation165_spill] sm:$0xff] }
 0x23a   :  { %9573 = vst [vmem:[#allocation196_spill] sm:$0xff] %v5765_v32  ;;  %v5771_v20 = vmul.f32 0.3275911, %v9574_v46  ;;  %v5774_v58 = vmul.f32 0.3275911, %v5582_v42  ;;  %v9578_v63 = vld [vmem:[#allocation168_spill] sm:$0xff]  ;;  %vm10497_vm7 = vmmov %vm10489_vm0 }
 0x23b   :  { %v5777_v9 = vmul.f32 0.3275911, %v9576_v0  ;;  %v5780_v14 = vmul.f32 0.3275911, %v5588_v4  ;;  %v5783_v25 = vmul.f32 0.3275911, %v5591_v13  ;;  %vm10498_vm8 = vmmov %vm10489_vm0 }
 0x23c   :  { %9575 = vst [vmem:[#allocation197_spill] sm:$0xff] %v5771_v20  ;;  %v5786_v32 = vmul.f32 0.3275911, %v9578_v63  ;;  %v5789_v43 = vmul.f32 0.3275911, %v5597_v16  ;;  %v9579_v46 = vld [vmem:[#allocation75_spill] sm:$0xff]  ;;  %vm10499_vm9 = vmmov %vm10489_vm0 }
 0x23d   :  { %9577 = vst [vmem:[#allocation198_spill] sm:$0xff] %v5780_v14  ;;  %v5792_v20 = vmul.f32 0.3275911, %v9579_v46  ;;  %v5795_v42 = vmul.f32 0.3275911, %v5603_v50  ;;  %v9580_v4 = vld [vmem:[#allocation171_spill] sm:$0xff]  ;;  %vm10500_vm5 = vmmov %vm10489_vm0 }
 0x23e   :  { %v5798_v0 = vmul.f32 0.3275911, %v5606_v47  ;;  %v5801_v14 = vmul.f32 0.3275911, %v9580_v4  ;;  %v5804_v13 = vmul.f32 0.3275911, %v5612_v15  ;;  %vm10505_vm2 = vmmov %vm10489_vm0 }
 0x23f   :  { %v5807_v63 = vmul.f32 0.3275911, %v5615_v7  ;;  %v5810_v16 = vmul.f32 0.3275911, %v5618_v49  ;;  %v5813_v46 = vmul.f32 0.3275911, %v5621_v48  ;;  %vm10506_vm11 = vmmov %vm10489_vm0 }
 0x240   :  { %v5816_v50 = vmul.f32 0.3275911, %v5624_v37  ;;  %v5819_v47 = vmul.f32 0.3275911, %v5627_v38  ;;  %v5822_v4 = vmul.f32 0.3275911, %v5630_v53 }
 0x241   :  { %v5825_v15 = vmul.f32 0.3275911, %v5633_v11  ;;  %v5828_v7 = vmul.f32 0.3275911, %v5636_v39  ;;  %v5831_v49 = vmul.f32 0.3275911, %v5639_v18 }
 0x242   :  { %v5834_v48 = vmul.f32 0.3275911, %v5642_v35  ;;  %v5837_v37 = vmul.f32 0.3275911, %v5645_v33  ;;  %v5840_v38 = vmul.f32 0.3275911, %v5648_v31 }
 0x243   :  { %v5843_v53 = vmul.f32 0.3275911, %v5651_v8  ;;  %v5846_v11 = vmul.f32 0.3275911, %v5654_v19  ;;  %v5849_v39 = vmul.f32 0.3275911, %v5657_v22 }
 0x244   :  { %9581 = vst [vmem:[#allocation199_spill] sm:$0xff] %v5834_v48  ;;  %9582 = vst [vmem:[#allocation200_spill] sm:$0xff] %v5837_v37  ;;  %v5852_v18 = vmul.f32 0.3275911, %v5660_v3  ;;  %v9583_v35 = vld [vmem:[#allocation186_spill] sm:$0xff]  ;;  %v9584_v33 = vld [vmem:[#allocation187_spill] sm:$0xff] }
 0x245   :  { %v5855_v48 = vmul.f32 0.3275911, %v9583_v35  ;;  %v5858_v37 = vmul.f32 0.3275911, %v9584_v33  ;;  %v5861_v31 = vmul.f32 0.3275911, %v5669_v5 }
 0x246   :  { %v5864_v8 = vmul.f32 0.3275911, %v5672_v2  ;;  %v5867_v19 = vmul.f32 0.3275911, %v5675_v56  ;;  %v5870_v22 = vmul.f32 0.3275911, %v5678_v55 }
 0x247   :  { %v5873_v3 = vmul.f32 0.3275911, %v5681_v36  ;;  %v5876_v35 = vmul.f32 0.3275911, %v5684_v40  ;;  %v5879_v33 = vmul.f32 0.3275911, %v5687_v41 }
 0x248   :  { %9585 = vst [vmem:[#allocation201_spill] sm:$0xff] %v5867_v19  ;;  %v5882_v5 = vmul.f32 0.3275911, %v5690_v28  ;;  %v1537_v2 = vadd.f32 1.0, %v5693_v34  ;;  %v1538_v56 = vadd.f32 1.0, %v5696_v24  ;;  %v1539_v19 = vadd.f32 1.0, %v5699_v17 }
 0x249   :  { %9586 = vst [vmem:[#allocation202_spill] sm:$0xff] %v5873_v3  ;;  %9587 = vst [vmem:[#allocation203_spill] sm:$0xff] %v5879_v33  ;;  %v1540_v55 = vadd.f32 1.0, %v5702_v6  ;;  %v1541_v36 = vadd.f32 1.0, %v5705_v27  ;;  %v1542_v3 = vadd.f32 1.0, %v5708_v45  ;;  %v1543_v40 = vadd.f32 1.0, %v5711_v29 }
 0x24a   :  { %v1544_v41 = vadd.f32 1.0, %v5714_v44  ;;  %v1545_v33 = vadd.f32 1.0, %v5717_v12  ;;  %v1546_v28 = vadd.f32 1.0, %v5720_v57  ;;  %v5895_v34 = vadd.f32 1.0, %v5723_v52 }
 0x24b   :  { %v5898_v24 = vadd.f32 1.0, %v5726_v10  ;;  %v5901_v17 = vadd.f32 1.0, %v5729_v51  ;;  %v5904_v6 = vadd.f32 1.0, %v5732_v62  ;;  %v5907_v27 = vadd.f32 1.0, %v5735_v59  ;;  %v9588_v51 = vld [vmem:[#allocation194_spill] sm:$0xff]  ;;  %v9590_v59 = vld [vmem:[#allocation195_spill] sm:$0xff] }
 0x24c   :  { %v5910_v44 = vadd.f32 1.0, %v5738_v21  ;;  %v5913_v12 = vadd.f32 1.0, %v5741_v61  ;;  %v5916_v57 = vadd.f32 1.0, %v5744_v54  ;;  %v5919_v10 = vadd.f32 1.0, %v5747_v26  ;;  %v9592_v54 = vld [vmem:[#allocation196_spill] sm:$0xff] }
 0x24d   :  { %v5922_v52 = vadd.f32 1.0, %v9588_v51  ;;  %v5925_v62 = vadd.f32 1.0, %v5753_v23  ;;  %v5928_v45 = vadd.f32 1.0, %v9590_v59  ;;  %v5931_v21 = vadd.f32 1.0, %v5759_v30  ;;  %v9593_v51 = vld [vmem:[#allocation197_spill] sm:$0xff]  ;;  %v9594_v30 = vld [vmem:[#allocation198_spill] sm:$0xff] }
 0x24e   :  { %v5934_v61 = vadd.f32 1.0, %v5762_v1  ;;  %v5937_v29 = vadd.f32 1.0, %v9592_v54  ;;  %v5940_v26 = vadd.f32 1.0, %v5768_v60  ;;  %v5946_v23 = vadd.f32 1.0, %v5774_v58 }
 0x24f   :  { %9589 = vst [vmem:[#allocation194_spill] sm:$0xff] %v5922_v52  ;;  %9591 = vst [vmem:[#allocation195_spill] sm:$0xff] %v5931_v21  ;;  %v5943_v52 = vadd.f32 1.0, %v9593_v51  ;;  %v5949_v59 = vadd.f32 1.0, %v5777_v9  ;;  %v5952_v21 = vadd.f32 1.0, %v9594_v30  ;;  %v5955_v1 = vadd.f32 1.0, %v5783_v25 }
 0x250   :  { %v5958_v54 = vadd.f32 1.0, %v5786_v32  ;;  %v5961_v60 = vadd.f32 1.0, %v5789_v43  ;;  %3174 = vrcp.f32 %v1537_v2  ;;  %v5964_v51 = vadd.f32 1.0, %v5792_v20  ;;  %v9596_v2 = vld [vmem:[#allocation200_spill] sm:$0xff] }
 0x251   :  { %v5967_v58 = vadd.f32 1.0, %v5795_v42  ;;  %v5970_v9 = vadd.f32 1.0, %v5798_v0  ;;  %3176 = vrcp.f32 %v1538_v56  ;;  %v5973_v25 = vadd.f32 1.0, %v5801_v14 }
 0x252   :  { %v5976_v32 = vadd.f32 1.0, %v5804_v13  ;;  %v5979_v43 = vadd.f32 1.0, %v5807_v63  ;;  %3178 = vrcp.f32 %v1539_v19  ;;  %v5982_v20 = vadd.f32 1.0, %v5810_v16  ;;  %v9595_v19 = vld [vmem:[#allocation199_spill] sm:$0xff] }
 0x253   :  { %v5985_v42 = vadd.f32 1.0, %v5813_v46  ;;  %v5988_v0 = vadd.f32 1.0, %v5816_v50  ;;  %3180 = vrcp.f32 %v1540_v55  ;;  %v5991_v14 = vadd.f32 1.0, %v5819_v47 }
 0x254   :  { %v5994_v13 = vadd.f32 1.0, %v5822_v4  ;;  %v5997_v63 = vadd.f32 1.0, %v5825_v15  ;;  %3182 = vrcp.f32 %v1541_v36  ;;  %v6000_v16 = vadd.f32 1.0, %v5828_v7 }
 0x255   :  { %v6003_v46 = vadd.f32 1.0, %v5831_v49  ;;  %v6006_v50 = vadd.f32 1.0, %v9595_v19  ;;  %3184 = vrcp.f32 %v1542_v3  ;;  %v6009_v47 = vadd.f32 1.0, %v9596_v2 }
 0x256   :  { %v6012_v4 = vadd.f32 1.0, %v5840_v38  ;;  %v6015_v15 = vadd.f32 1.0, %v5843_v53  ;;  %3186 = vrcp.f32 %v1543_v40  ;;  %v6018_v7 = vadd.f32 1.0, %v5846_v11  ;;  %v9597_v40 = vld [vmem:[#allocation201_spill] sm:$0xff] }
 0x257   :  { %v6021_v49 = vadd.f32 1.0, %v5849_v39  ;;  %v6024_v56 = vadd.f32 1.0, %v5852_v18  ;;  %3188 = vrcp.f32 %v1544_v41  ;;  %v6027_v3 = vadd.f32 1.0, %v5855_v48  ;;  %v9599_v48 = vld [vmem:[#allocation202_spill] sm:$0xff] }
 0x258   :  { %v6030_v38 = vadd.f32 1.0, %v5858_v37  ;;  %v6033_v53 = vadd.f32 1.0, %v5861_v31  ;;  %3190 = vrcp.f32 %v1545_v33  ;;  %v6036_v11 = vadd.f32 1.0, %v5864_v8  ;;  %v9602_v31 = vld [vmem:[#allocation203_spill] sm:$0xff] }
 0x259   :  { %v6039_v39 = vadd.f32 1.0, %v9597_v40  ;;  %v6042_v18 = vadd.f32 1.0, %v5870_v22  ;;  %3192 = vrcp.f32 %v1546_v28  ;;  %v6047_v55 = vadd.f32 1.0, %v9599_v48 }
 0x25a   :  { %v6044_v41 = vpop.eup %3174  ;;  %v6050_v37 = vadd.f32 1.0, %v5876_v35  ;;  %v6053_v33 = vadd.f32 1.0, %v9602_v31  ;;  %3194 = vrcp.f32 %v5895_v34  ;;  %v6059_v36 = vadd.f32 1.0, %v5882_v5 }
 0x25b   :  { %9598 = vst [vmem:[#allocation196_spill] sm:$0xff] %v6044_v41  ;;  %9600 = vst [vmem:[#allocation197_spill] sm:$0xff] %v6047_v55  ;;  %v6056_v8 = vpop.eup %3176  ;;  %3196 = vrcp.f32 %v5898_v24  ;;  %v1729_v22 = vmul.f32 1.0614054, %v6044_v41 }
 0x25c   :  { %9601 = vst [vmem:[#allocation198_spill] sm:$0xff] %v6050_v37  ;;  %9603 = vst [vmem:[#allocation199_spill] sm:$0xff] %v6053_v33  ;;  %v6064_v19 = vpop.eup %3178  ;;  %3198 = vrcp.f32 %v5901_v17  ;;  %v1730_v35 = vmul.f32 1.0614054, %v6056_v8 }
 0x25d   :  { %9604 = vst [vmem:[#allocation200_spill] sm:$0xff] %v6056_v8  ;;  %9605 = vst [vmem:[#allocation201_spill] sm:$0xff] %v6059_v36  ;;  %v6070_v31 = vpop.eup %3180  ;;  %3200 = vrcp.f32 %v5904_v6  ;;  %v1731_v5 = vmul.f32 1.0614054, %v6064_v19  ;;  %v1793_v24 = vadd.f32 -1.4531521, %v1729_v22 }
 0x25e   :  { %9607 = vst [vmem:[#allocation202_spill] sm:$0xff] %v6064_v19  ;;  %9610 = vst [vmem:[#allocation203_spill] sm:$0xff] %v6070_v31  ;;  %v6075_v30 = vpop.eup %3182  ;;  %3202 = vrcp.f32 %v5907_v27  ;;  %v1732_v17 = vmul.f32 1.0614054, %v6070_v31  ;;  %v1794_v28 = vadd.f32 -1.4531521, %v1730_v35 }
 0x25f   :  { %9612 = vst [vmem:[#allocation204_spill] sm:$0xff] %v6075_v30  ;;  %v6080_v2 = vpop.eup %3184  ;;  %3204 = vrcp.f32 %v5910_v44  ;;  %v1733_v6 = vmul.f32 1.0614054, %v6075_v30  ;;  %v1795_v48 = vadd.f32 -1.4531521, %v1731_v5  ;;  %v6090_v35 = vmul.f32 %v6044_v41, %v1793_v24  ;;  %v9620_v36 = vld [vmem:[#allocation194_spill] sm:$0xff] }
 0x260   :  { %9614 = vst [vmem:[#allocation205_spill] sm:$0xff] %v6080_v2  ;;  %v6085_v55 = vpop.eup %3186  ;;  %3206 = vrcp.f32 %v5913_v12  ;;  %v1734_v27 = vmul.f32 1.0614054, %v6080_v2  ;;  %v1796_v33 = vadd.f32 -1.4531521, %v1732_v17  ;;  %v6097_v5 = vmul.f32 %v6056_v8, %v1794_v28  ;;  %v9624_v41 = vld [vmem:[#allocation195_spill] sm:$0xff] }
 0x261   :  { %9616 = vst [vmem:[#allocation206_spill] sm:$0xff] %v6085_v55  ;;  %v6092_v40 = vpop.eup %3188  ;;  %3208 = vrcp.f32 %v5916_v57  ;;  %v1735_v44 = vmul.f32 1.0614054, %v6085_v55  ;;  %v1797_v37 = vadd.f32 -1.4531521, %v1733_v6  ;;  %v6104_v24 = vmul.f32 %v6064_v19, %v1795_v48 }
 0x262   :  { %9617 = vst [vmem:[#allocation207_spill] sm:$0xff] %v6092_v40  ;;  %v6099_v22 = vpop.eup %3190  ;;  %3210 = vrcp.f32 %v5919_v10  ;;  %v1736_v12 = vmul.f32 1.0614054, %v6092_v40  ;;  %v1798_v17 = vadd.f32 -1.4531521, %v1734_v27  ;;  %v6111_v28 = vmul.f32 %v6070_v31, %v1796_v33 }
 0x263   :  { %9618 = vst [vmem:[#allocation208_spill] sm:$0xff] %v6099_v22  ;;  %v6106_v34 = vpop.eup %3192  ;;  %3212 = vrcp.f32 %v9620_v36  ;;  %v1737_v57 = vmul.f32 1.0614054, %v6099_v22  ;;  %v1799_v6 = vadd.f32 -1.4531521, %v1735_v44  ;;  %v6118_v48 = vmul.f32 %v6075_v30, %v1797_v37 }
 0x264   :  { %9619 = vst [vmem:[#allocation209_spill] sm:$0xff] %v6106_v34  ;;  %v6113_v8 = vpop.eup %3194  ;;  %3214 = vrcp.f32 %v5925_v62  ;;  %v1738_v10 = vmul.f32 1.0614054, %v6106_v34  ;;  %v1800_v27 = vadd.f32 -1.4531521, %v1736_v12  ;;  %v6125_v33 = vmul.f32 %v6080_v2, %v1798_v17 }
 0x265   :  { %9621 = vst [vmem:[#allocation194_spill] sm:$0xff] %v6113_v8  ;;  %v6120_v19 = vpop.eup %3196  ;;  %3216 = vrcp.f32 %v5928_v45  ;;  %v1739_v36 = vmul.f32 1.0614054, %v6113_v8  ;;  %v1801_v44 = vadd.f32 -1.4531521, %v1737_v57  ;;  %v6132_v37 = vmul.f32 %v6085_v55, %v1799_v6 }
 0x266   :  { %9622 = vst [vmem:[#allocation210_spill] sm:$0xff] %v6120_v19  ;;  %v6127_v31 = vpop.eup %3198  ;;  %3218 = vrcp.f32 %v9624_v41  ;;  %v1740_v62 = vmul.f32 1.0614054, %v6120_v19  ;;  %v1802_v12 = vadd.f32 -1.4531521, %v1738_v10  ;;  %v6139_v17 = vmul.f32 %v6092_v40, %v1800_v27 }
 0x267   :  { %9623 = vst [vmem:[#allocation211_spill] sm:$0xff] %v6127_v31  ;;  %v6134_v30 = vpop.eup %3200  ;;  %3220 = vrcp.f32 %v5934_v61  ;;  %v1741_v45 = vmul.f32 1.0614054, %v6127_v31  ;;  %v1803_v57 = vadd.f32 -1.4531521, %v1739_v36  ;;  %v6146_v6 = vmul.f32 %v6099_v22, %v1801_v44 }
 0x268   :  { %9625 = vst [vmem:[#allocation195_spill] sm:$0xff] %v6134_v30  ;;  %v6141_v2 = vpop.eup %3202  ;;  %3222 = vrcp.f32 %v5937_v29  ;;  %v1742_v41 = vmul.f32 1.0614054, %v6134_v30  ;;  %v1804_v10 = vadd.f32 -1.4531521, %v1740_v62  ;;  %v6153_v27 = vmul.f32 %v6106_v34, %v1802_v12 }
 0x269   :  { %9626 = vst [vmem:[#allocation212_spill] sm:$0xff] %v6141_v2  ;;  %v6148_v55 = vpop.eup %3204  ;;  %3224 = vrcp.f32 %v5940_v26  ;;  %v1743_v61 = vmul.f32 1.0614054, %v6141_v2  ;;  %v1805_v36 = vadd.f32 -1.4531521, %v1741_v45  ;;  %v6160_v44 = vmul.f32 %v6113_v8, %v1803_v57 }
 0x26a   :  { %9627 = vst [vmem:[#allocation213_spill] sm:$0xff] %v6148_v55  ;;  %v6155_v40 = vpop.eup %3206  ;;  %3226 = vrcp.f32 %v5943_v52  ;;  %v1744_v29 = vmul.f32 1.0614054, %v6148_v55  ;;  %v1806_v62 = vadd.f32 -1.4531521, %v1742_v41  ;;  %v6167_v12 = vmul.f32 %v6120_v19, %v1804_v10 }
 0x26b   :  { %9628 = vst [vmem:[#allocation214_spill] sm:$0xff] %v6155_v40  ;;  %v6162_v22 = vpop.eup %3208  ;;  %3228 = vrcp.f32 %v5946_v23  ;;  %v1745_v26 = vmul.f32 1.0614054, %v6155_v40  ;;  %v1807_v45 = vadd.f32 -1.4531521, %v1743_v61  ;;  %v6174_v57 = vmul.f32 %v6127_v31, %v1805_v36 }
 0x26c   :  { %9629 = vst [vmem:[#allocation215_spill] sm:$0xff] %v6162_v22  ;;  %v6169_v34 = vpop.eup %3210  ;;  %3230 = vrcp.f32 %v5949_v59  ;;  %v1746_v52 = vmul.f32 1.0614054, %v6162_v22  ;;  %v1808_v41 = vadd.f32 -1.4531521, %v1744_v29  ;;  %v6181_v10 = vmul.f32 %v6134_v30, %v1806_v62 }
 0x26d   :  { %9630 = vst [vmem:[#allocation216_spill] sm:$0xff] %v6169_v34  ;;  %v6176_v8 = vpop.eup %3212  ;;  %3232 = vrcp.f32 %v5952_v21  ;;  %v1747_v23 = vmul.f32 1.0614054, %v6169_v34  ;;  %v1809_v61 = vadd.f32 -1.4531521, %v1745_v26  ;;  %v6188_v36 = vmul.f32 %v6141_v2, %v1807_v45 }
 0x26e   :  { %9631 = vst [vmem:[#allocation217_spill] sm:$0xff] %v6176_v8  ;;  %v6183_v19 = vpop.eup %3214  ;;  %3234 = vrcp.f32 %v5955_v1  ;;  %v1748_v59 = vmul.f32 1.0614054, %v6176_v8  ;;  %v1810_v29 = vadd.f32 -1.4531521, %v1746_v52  ;;  %v6195_v62 = vmul.f32 %v6148_v55, %v1808_v41 }
 0x26f   :  { %9632 = vst [vmem:[#allocation218_spill] sm:$0xff] %v6183_v19  ;;  %v6190_v31 = vpop.eup %3216  ;;  %3236 = vrcp.f32 %v5958_v54  ;;  %v1749_v21 = vmul.f32 1.0614054, %v6183_v19  ;;  %v1811_v26 = vadd.f32 -1.4531521, %v1747_v23  ;;  %v6202_v45 = vmul.f32 %v6155_v40, %v1809_v61 }
 0x270   :  { %9633 = vst [vmem:[#allocation219_spill] sm:$0xff] %v6190_v31  ;;  %v6197_v30 = vpop.eup %3218  ;;  %3238 = vrcp.f32 %v5961_v60  ;;  %v1750_v1 = vmul.f32 1.0614054, %v6190_v31  ;;  %v1812_v52 = vadd.f32 -1.4531521, %v1748_v59  ;;  %v6209_v41 = vmul.f32 %v6162_v22, %v1810_v29 }
 0x271   :  { %9634 = vst [vmem:[#allocation220_spill] sm:$0xff] %v6197_v30  ;;  %v6204_v2 = vpop.eup %3220  ;;  %3240 = vrcp.f32 %v5964_v51  ;;  %v1751_v54 = vmul.f32 1.0614054, %v6197_v30  ;;  %v1813_v23 = vadd.f32 -1.4531521, %v1749_v21  ;;  %v6216_v61 = vmul.f32 %v6169_v34, %v1811_v26 }
 0x272   :  { %9635 = vst [vmem:[#allocation221_spill] sm:$0xff] %v6204_v2  ;;  %v6211_v55 = vpop.eup %3222  ;;  %3242 = vrcp.f32 %v5967_v58  ;;  %v1752_v60 = vmul.f32 1.0614054, %v6204_v2  ;;  %v1814_v59 = vadd.f32 -1.4531521, %v1750_v1  ;;  %v6223_v29 = vmul.f32 %v6176_v8, %v1812_v52 }
 0x273   :  { %9636 = vst [vmem:[#allocation222_spill] sm:$0xff] %v6211_v55  ;;  %v6218_v40 = vpop.eup %3224  ;;  %3244 = vrcp.f32 %v5970_v9  ;;  %v1753_v51 = vmul.f32 1.0614054, %v6211_v55  ;;  %v1815_v21 = vadd.f32 -1.4531521, %v1751_v54  ;;  %v6230_v26 = vmul.f32 %v6183_v19, %v1813_v23 }
 0x274   :  { %9637 = vst [vmem:[#allocation223_spill] sm:$0xff] %v6218_v40  ;;  %v6225_v22 = vpop.eup %3226  ;;  %3246 = vrcp.f32 %v5973_v25  ;;  %v1754_v58 = vmul.f32 1.0614054, %v6218_v40  ;;  %v1816_v1 = vadd.f32 -1.4531521, %v1752_v60  ;;  %v6237_v52 = vmul.f32 %v6190_v31, %v1814_v59 }
 0x275   :  { %9638 = vst [vmem:[#allocation224_spill] sm:$0xff] %v6225_v22  ;;  %v6232_v34 = vpop.eup %3228  ;;  %3248 = vrcp.f32 %v5976_v32  ;;  %v1755_v9 = vmul.f32 1.0614054, %v6225_v22  ;;  %v1817_v54 = vadd.f32 -1.4531521, %v1753_v51  ;;  %v6244_v23 = vmul.f32 %v6197_v30, %v1815_v21 }
 0x276   :  { %9639 = vst [vmem:[#allocation225_spill] sm:$0xff] %v6232_v34  ;;  %v6239_v8 = vpop.eup %3230  ;;  %3250 = vrcp.f32 %v5979_v43  ;;  %v1756_v25 = vmul.f32 1.0614054, %v6232_v34  ;;  %v1818_v60 = vadd.f32 -1.4531521, %v1754_v58  ;;  %v6251_v59 = vmul.f32 %v6204_v2, %v1816_v1 }
 0x277   :  { %9640 = vst [vmem:[#allocation226_spill] sm:$0xff] %v6239_v8  ;;  %v6246_v19 = vpop.eup %3232  ;;  %3252 = vrcp.f32 %v5982_v20  ;;  %v1757_v32 = vmul.f32 1.0614054, %v6239_v8  ;;  %v1819_v51 = vadd.f32 -1.4531521, %v1755_v9  ;;  %v6258_v21 = vmul.f32 %v6211_v55, %v1817_v54 }
 0x278   :  { %9641 = vst [vmem:[#allocation227_spill] sm:$0xff] %v6246_v19  ;;  %v6253_v31 = vpop.eup %3234  ;;  %3254 = vrcp.f32 %v5985_v42  ;;  %v1758_v43 = vmul.f32 1.0614054, %v6246_v19  ;;  %v1820_v58 = vadd.f32 -1.4531521, %v1756_v25  ;;  %v6265_v1 = vmul.f32 %v6218_v40, %v1818_v60 }
 0x279   :  { %9642 = vst [vmem:[#allocation228_spill] sm:$0xff] %v6253_v31  ;;  %v6260_v30 = vpop.eup %3236  ;;  %3256 = vrcp.f32 %v5988_v0  ;;  %v1759_v20 = vmul.f32 1.0614054, %v6253_v31  ;;  %v1821_v9 = vadd.f32 -1.4531521, %v1757_v32  ;;  %v6272_v54 = vmul.f32 %v6225_v22, %v1819_v51 }
 0x27a   :  { %9643 = vst [vmem:[#allocation229_spill] sm:$0xff] %v6260_v30  ;;  %v6267_v2 = vpop.eup %3238  ;;  %3258 = vrcp.f32 %v5991_v14  ;;  %v1760_v42 = vmul.f32 1.0614054, %v6260_v30  ;;  %v1822_v25 = vadd.f32 -1.4531521, %v1758_v43  ;;  %v6279_v60 = vmul.f32 %v6232_v34, %v1820_v58 }
 0x27b   :  { %9644 = vst [vmem:[#allocation230_spill] sm:$0xff] %v6267_v2  ;;  %v6274_v55 = vpop.eup %3240  ;;  %3260 = vrcp.f32 %v5994_v13  ;;  %v1761_v0 = vmul.f32 1.0614054, %v6267_v2  ;;  %v1823_v32 = vadd.f32 -1.4531521, %v1759_v20  ;;  %v6286_v51 = vmul.f32 %v6239_v8, %v1821_v9 }
 0x27c   :  { %9645 = vst [vmem:[#allocation231_spill] sm:$0xff] %v6274_v55  ;;  %v6281_v40 = vpop.eup %3242  ;;  %3262 = vrcp.f32 %v5997_v63  ;;  %v1762_v14 = vmul.f32 1.0614054, %v6274_v55  ;;  %v1824_v43 = vadd.f32 -1.4531521, %v1760_v42  ;;  %v6293_v58 = vmul.f32 %v6246_v19, %v1822_v25 }
 0x27d   :  { %9646 = vst [vmem:[#allocation232_spill] sm:$0xff] %v6281_v40  ;;  %v6288_v22 = vpop.eup %3244  ;;  %3264 = vrcp.f32 %v6000_v16  ;;  %v1763_v13 = vmul.f32 1.0614054, %v6281_v40  ;;  %v1825_v20 = vadd.f32 -1.4531521, %v1761_v0  ;;  %v6300_v9 = vmul.f32 %v6253_v31, %v1823_v32 }
 0x27e   :  { %9647 = vst [vmem:[#allocation233_spill] sm:$0xff] %v6288_v22  ;;  %v6295_v34 = vpop.eup %3246  ;;  %3266 = vrcp.f32 %v6003_v46  ;;  %v1764_v63 = vmul.f32 1.0614054, %v6288_v22  ;;  %v1826_v42 = vadd.f32 -1.4531521, %v1762_v14  ;;  %v6307_v25 = vmul.f32 %v6260_v30, %v1824_v43 }
 0x27f   :  { %9648 = vst [vmem:[#allocation234_spill] sm:$0xff] %v6295_v34  ;;  %v6302_v8 = vpop.eup %3248  ;;  %3268 = vrcp.f32 %v6006_v50  ;;  %v1765_v16 = vmul.f32 1.0614054, %v6295_v34  ;;  %v1827_v0 = vadd.f32 -1.4531521, %v1763_v13  ;;  %v6314_v32 = vmul.f32 %v6267_v2, %v1825_v20 }
 0x280   :  { %9649 = vst [vmem:[#allocation235_spill] sm:$0xff] %v6302_v8  ;;  %v6309_v19 = vpop.eup %3250  ;;  %3270 = vrcp.f32 %v6009_v47  ;;  %v1766_v46 = vmul.f32 1.0614054, %v6302_v8  ;;  %v1828_v14 = vadd.f32 -1.4531521, %v1764_v63  ;;  %v6321_v43 = vmul.f32 %v6274_v55, %v1826_v42 }
 0x281   :  { %9650 = vst [vmem:[#allocation236_spill] sm:$0xff] %v6309_v19  ;;  %v6316_v31 = vpop.eup %3252  ;;  %3272 = vrcp.f32 %v6012_v4  ;;  %v1767_v50 = vmul.f32 1.0614054, %v6309_v19  ;;  %v1829_v13 = vadd.f32 -1.4531521, %v1765_v16  ;;  %v6328_v20 = vmul.f32 %v6281_v40, %v1827_v0 }
 0x282   :  { %9651 = vst [vmem:[#allocation237_spill] sm:$0xff] %v6316_v31  ;;  %v6323_v30 = vpop.eup %3254  ;;  %3274 = vrcp.f32 %v6015_v15  ;;  %v1768_v47 = vmul.f32 1.0614054, %v6316_v31  ;;  %v1830_v63 = vadd.f32 -1.4531521, %v1766_v46  ;;  %v6335_v42 = vmul.f32 %v6288_v22, %v1828_v14 }
 0x283   :  { %9652 = vst [vmem:[#allocation238_spill] sm:$0xff] %v6323_v30  ;;  %v6330_v2 = vpop.eup %3256  ;;  %3276 = vrcp.f32 %v6018_v7  ;;  %v1769_v4 = vmul.f32 1.0614054, %v6323_v30  ;;  %v1831_v16 = vadd.f32 -1.4531521, %v1767_v50  ;;  %v6342_v0 = vmul.f32 %v6295_v34, %v1829_v13 }
 0x284   :  { %9653 = vst [vmem:[#allocation239_spill] sm:$0xff] %v6330_v2  ;;  %v6337_v55 = vpop.eup %3258  ;;  %3278 = vrcp.f32 %v6021_v49  ;;  %v1770_v15 = vmul.f32 1.0614054, %v6330_v2  ;;  %v1832_v46 = vadd.f32 -1.4531521, %v1768_v47  ;;  %v6349_v14 = vmul.f32 %v6302_v8, %v1830_v63 }
 0x285   :  { %9654 = vst [vmem:[#allocation240_spill] sm:$0xff] %v6337_v55  ;;  %v6344_v40 = vpop.eup %3260  ;;  %3280 = vrcp.f32 %v6024_v56  ;;  %v1771_v7 = vmul.f32 1.0614054, %v6337_v55  ;;  %v1833_v50 = vadd.f32 -1.4531521, %v1769_v4  ;;  %v6356_v13 = vmul.f32 %v6309_v19, %v1831_v16 }
 0x286   :  { %9655 = vst [vmem:[#allocation241_spill] sm:$0xff] %v6344_v40  ;;  %v6351_v22 = vpop.eup %3262  ;;  %3282 = vrcp.f32 %v6027_v3  ;;  %v1772_v49 = vmul.f32 1.0614054, %v6344_v40  ;;  %v1834_v47 = vadd.f32 -1.4531521, %v1770_v15  ;;  %v6363_v63 = vmul.f32 %v6316_v31, %v1832_v46 }
 0x287   :  { %9656 = vst [vmem:[#allocation242_spill] sm:$0xff] %v6351_v22  ;;  %v6358_v34 = vpop.eup %3264  ;;  %3284 = vrcp.f32 %v6030_v38  ;;  %v1773_v56 = vmul.f32 1.0614054, %v6351_v22  ;;  %v1835_v4 = vadd.f32 -1.4531521, %v1771_v7  ;;  %v6370_v16 = vmul.f32 %v6323_v30, %v1833_v50 }
 0x288   :  { %9657 = vst [vmem:[#allocation243_spill] sm:$0xff] %v6358_v34  ;;  %v6365_v8 = vpop.eup %3266  ;;  %3286 = vrcp.f32 %v6033_v53  ;;  %v1774_v3 = vmul.f32 1.0614054, %v6358_v34  ;;  %v1836_v15 = vadd.f32 -1.4531521, %v1772_v49  ;;  %v6377_v46 = vmul.f32 %v6330_v2, %v1834_v47 }
 0x289   :  { %9658 = vst [vmem:[#allocation244_spill] sm:$0xff] %v6365_v8  ;;  %v6372_v19 = vpop.eup %3268  ;;  %3288 = vrcp.f32 %v6036_v11  ;;  %v1775_v38 = vmul.f32 1.0614054, %v6365_v8  ;;  %v1837_v7 = vadd.f32 -1.4531521, %v1773_v56  ;;  %v6384_v50 = vmul.f32 %v6337_v55, %v1835_v4 }
 0x28a   :  { %9659 = vst [vmem:[#allocation245_spill] sm:$0xff] %v6372_v19  ;;  %9660 = vst [vmem:[#allocation246_spill] sm:$0xff] %v6377_v46  ;;  %v6379_v31 = vpop.eup %3270  ;;  %3290 = vrcp.f32 %v6039_v39  ;;  %v1776_v53 = vmul.f32 1.0614054, %v6372_v19  ;;  %v1838_v49 = vadd.f32 -1.4531521, %v1774_v3  ;;  %v6391_v47 = vmul.f32 %v6344_v40, %v1836_v15 }
 0x28b   :  { %9661 = vst [vmem:[#allocation247_spill] sm:$0xff] %v6379_v31  ;;  %9662 = vst [vmem:[#allocation248_spill] sm:$0xff] %v6384_v50  ;;  %v6386_v30 = vpop.eup %3272  ;;  %3292 = vrcp.f32 %v6042_v18  ;;  %v1777_v11 = vmul.f32 1.0614054, %v6379_v31  ;;  %v1839_v56 = vadd.f32 -1.4531521, %v1775_v38  ;;  %v6398_v4 = vmul.f32 %v6351_v22, %v1837_v7 }
 0x28c   :  { %9663 = vst [vmem:[#allocation249_spill] sm:$0xff] %v6386_v30  ;;  %9664 = vst [vmem:[#allocation250_spill] sm:$0xff] %v6391_v47  ;;  %v6393_v2 = vpop.eup %3274  ;;  %v9666_v46 = vld [vmem:[#allocation197_spill] sm:$0xff]  ;;  %v1778_v39 = vmul.f32 1.0614054, %v6386_v30  ;;  %v9669_v50 = vld [vmem:[#allocation198_spill] sm:$0xff]  ;;  %v6405_v15 = vmul.f32 %v6358_v34, %v1838_v49 }
 0x28d   :  { %9665 = vst [vmem:[#allocation251_spill] sm:$0xff] %v6393_v2  ;;  %3294 = vrcp.f32 %v9666_v46  ;;  %v1840_v3 = vadd.f32 -1.4531521, %v1776_v53  ;;  %9667 = vst [vmem:[#allocation197_spill] sm:$0xff] %v6398_v4  ;;  %v6400_v55 = vpop.eup %3276  ;;  %v1779_v18 = vmul.f32 1.0614054, %v6393_v2  ;;  %v6412_v7 = vmul.f32 %v6365_v8, %v1839_v56 }
 0x28e   :  { %9668 = vst [vmem:[#allocation252_spill] sm:$0xff] %v6400_v55  ;;  %3296 = vrcp.f32 %v9669_v50  ;;  %v1841_v38 = vadd.f32 -1.4531521, %v1777_v11  ;;  %9670 = vst [vmem:[#allocation198_spill] sm:$0xff] %v6405_v15  ;;  %v6407_v40 = vpop.eup %3278  ;;  %v9672_v47 = vld [vmem:[#allocation199_spill] sm:$0xff]  ;;  %v9675_v4 = vld [vmem:[#allocation201_spill] sm:$0xff] }
 0x28f   :  { %9671 = vst [vmem:[#allocation253_spill] sm:$0xff] %v6407_v40  ;;  %3298 = vrcp.f32 %v9672_v47  ;;  %v1780_v46 = vmul.f32 1.0614054, %v6400_v55  ;;  %v1842_v53 = vadd.f32 -1.4531521, %v1778_v39  ;;  %9673 = vst [vmem:[#allocation199_spill] sm:$0xff] %v6412_v7  ;;  %v6414_v22 = vpop.eup %3280  ;;  %v6419_v49 = vmul.f32 %v6372_v19, %v1840_v3 }
 0x290   :  { %9674 = vst [vmem:[#allocation254_spill] sm:$0xff] %v6414_v22  ;;  %3300 = vrcp.f32 %v9675_v4  ;;  %v1781_v50 = vmul.f32 1.0614054, %v6407_v40  ;;  %v1843_v11 = vadd.f32 -1.4531521, %v1779_v18  ;;  %v6421_v34 = vpop.eup %3282  ;;  %v6425_v39 = vmul.f32 %v6379_v31, %v1841_v38 }
 0x291   :  { %9676 = vst [vmem:[#allocation201_spill] sm:$0xff] %v6421_v34  ;;  %v1782_v47 = vmul.f32 1.0614054, %v6414_v22  ;;  %v1844_v15 = vadd.f32 -1.4531521, %v1780_v46  ;;  %v6430_v8 = vpop.eup %3284  ;;  %v6434_v18 = vmul.f32 %v6386_v30, %v1842_v53 }
 0x292   :  { %9677 = vst [vmem:[#allocation255_spill] sm:$0xff] %v6425_v39  ;;  %v6428_v56 = vadd.f32 1.4214138, %v6090_v35  ;;  %9678 = vst [vmem:[#allocation256_spill] sm:$0xff] %v6430_v8  ;;  %v1783_v4 = vmul.f32 1.0614054, %v6421_v34  ;;  %v6439_v19 = vpop.eup %3286  ;;  %v6443_v31 = vmul.f32 %v6393_v2, %v1843_v11 }
 0x293   :  { %v1845_v7 = vadd.f32 -1.4531521, %v1781_v50  ;;  %9679 = vst [vmem:[#allocation257_spill] sm:$0xff] %v6434_v18  ;;  %v6437_v3 = vadd.f32 1.4214138, %v6097_v5  ;;  %9680 = vst [vmem:[#allocation258_spill] sm:$0xff] %v6439_v19  ;;  %v6448_v39 = vpop.eup %3288  ;;  %v6452_v30 = vmul.f32 %v6400_v55, %v1844_v15 }
 0x294   :  { %v1784_v46 = vmul.f32 1.0614054, %v6430_v8  ;;  %v1846_v38 = vadd.f32 -1.4531521, %v1782_v47  ;;  %9681 = vst [vmem:[#allocation259_spill] sm:$0xff] %v6443_v31  ;;  %9682 = vst [vmem:[#allocation260_spill] sm:$0xff] %v6448_v39  ;;  %v6457_v18 = vpop.eup %3290 }
 0x295   :  { %v6446_v35 = vadd.f32 1.4214138, %v6104_v24  ;;  %v1785_v50 = vmul.f32 1.0614054, %v6439_v19  ;;  %v1847_v53 = vadd.f32 -1.4531521, %v1783_v4  ;;  %v6461_v2 = vmul.f32 %v6407_v40, %v1845_v7  ;;  %v6466_v31 = vpop.eup %3292 }
 0x296   :  { %9683 = vst [vmem:[#allocation261_spill] sm:$0xff] %v6452_v30  ;;  %v6455_v5 = vadd.f32 1.4214138, %v6111_v28  ;;  %9684 = vst [vmem:[#allocation262_spill] sm:$0xff] %v6457_v18  ;;  %v1786_v47 = vmul.f32 1.0614054, %v6448_v39  ;;  %v6470_v55 = vmul.f32 %v6414_v22, %v1846_v38 }
 0x297   :  { %v1848_v11 = vadd.f32 -1.4531521, %v1784_v46  ;;  %9685 = vst [vmem:[#allocation263_spill] sm:$0xff] %v6461_v2  ;;  %v6464_v24 = vadd.f32 1.4214138, %v6118_v48  ;;  %9686 = vst [vmem:[#allocation264_spill] sm:$0xff] %v6466_v31  ;;  %v6475_v30 = vpop.eup %3294  ;;  %v6479_v40 = vmul.f32 %v6421_v34, %v1847_v53 }
 0x298   :  { %v1787_v4 = vmul.f32 1.0614054, %v6457_v18  ;;  %v1849_v15 = vadd.f32 -1.4531521, %v1785_v50  ;;  %9687 = vst [vmem:[#allocation265_spill] sm:$0xff] %v6470_v55  ;;  %9688 = vst [vmem:[#allocation266_spill] sm:$0xff] %v6475_v30  ;;  %v6484_v2 = vpop.eup %3296 }
 0x299   :  { %v6473_v28 = vadd.f32 1.4214138, %v6125_v33  ;;  %v1788_v46 = vmul.f32 1.0614054, %v6466_v31  ;;  %v1850_v7 = vadd.f32 -1.4531521, %v1786_v47  ;;  %v6488_v22 = vmul.f32 %v6430_v8, %v1848_v11  ;;  %v6493_v55 = vpop.eup %3298 }
 0x29a   :  { %9689 = vst [vmem:[#allocation267_spill] sm:$0xff] %v6479_v40  ;;  %v6482_v48 = vadd.f32 1.4214138, %v6132_v37  ;;  %9690 = vst [vmem:[#allocation268_spill] sm:$0xff] %v6484_v2  ;;  %v1789_v50 = vmul.f32 1.0614054, %v6475_v30  ;;  %v6497_v34 = vmul.f32 %v6439_v19, %v1849_v15  ;;  %v6502_v40 = vpop.eup %3300 }
 0x29b   :  { %v1851_v38 = vadd.f32 -1.4531521, %v1787_v4  ;;  %9691 = vst [vmem:[#allocation269_spill] sm:$0xff] %v6488_v22  ;;  %v6491_v33 = vadd.f32 1.4214138, %v6139_v17  ;;  %9692 = vst [vmem:[#allocation270_spill] sm:$0xff] %v6493_v55  ;;  %v6506_v8 = vmul.f32 %v6448_v39, %v1850_v7 }
 0x29c   :  { %v1790_v47 = vmul.f32 1.0614054, %v6484_v2  ;;  %v1852_v53 = vadd.f32 -1.4531521, %v1788_v46  ;;  %9693 = vst [vmem:[#allocation271_spill] sm:$0xff] %v6497_v34  ;;  %9694 = vst [vmem:[#allocation272_spill] sm:$0xff] %v6502_v40 }
 0x29d   :  { %v6500_v37 = vadd.f32 1.4214138, %v6146_v6  ;;  %v1791_v4 = vmul.f32 1.0614054, %v6493_v55  ;;  %v1853_v11 = vadd.f32 -1.4531521, %v1789_v50  ;;  %v6513_v15 = vmul.f32 %v6457_v18, %v1851_v38 }
 0x29e   :  { %v6509_v17 = vadd.f32 1.4214138, %v6153_v27  ;;  %v1792_v22 = vmul.f32 1.0614054, %v6502_v40  ;;  %v1854_v46 = vadd.f32 -1.4531521, %v1790_v47  ;;  %v6519_v34 = vmul.f32 %v6466_v31, %v1852_v53 }
 0x29f   :  { %v6516_v6 = vadd.f32 1.4214138, %v6160_v44  ;;  %v1855_v19 = vadd.f32 -1.4531521, %v1791_v4  ;;  %v6522_v50 = vadd.f32 1.4214138, %v6167_v12  ;;  %v6528_v39 = vmul.f32 %v6475_v30, %v1853_v11 }
 0x2a0   :  { %v6525_v7 = vadd.f32 1.4214138, %v6174_v57  ;;  %v1856_v27 = vadd.f32 -1.4531521, %v1792_v22  ;;  %v6531_v38 = vadd.f32 1.4214138, %v6181_v10  ;;  %v1918_v47 = vmul.f32 %v6484_v2, %v1854_v46 }
 0x2a1   :  { %v6534_v44 = vadd.f32 1.4214138, %v6188_v36  ;;  %v6538_v53 = vadd.f32 1.4214138, %v6195_v62  ;;  %v6541_v12 = vadd.f32 1.4214138, %v6202_v45  ;;  %v1919_v22 = vmul.f32 %v6493_v55, %v1855_v19 }
 0x2a2   :  { %v6544_v57 = vadd.f32 1.4214138, %v6209_v41  ;;  %v6548_v4 = vadd.f32 1.4214138, %v6216_v61  ;;  %v6551_v10 = vadd.f32 1.4214138, %v6223_v29  ;;  %v1920_v62 = vmul.f32 %v6502_v40, %v1856_v27 }
 0x2a3   :  { %v6554_v36 = vadd.f32 1.4214138, %v6230_v26  ;;  %v6558_v11 = vadd.f32 1.4214138, %v6237_v52  ;;  %v6561_v45 = vadd.f32 1.4214138, %v6244_v23 }
 0x2a4   :  { %v6564_v41 = vadd.f32 1.4214138, %v6251_v59  ;;  %v6567_v19 = vadd.f32 1.4214138, %v6258_v21  ;;  %v6570_v61 = vadd.f32 1.4214138, %v6265_v1 }
 0x2a5   :  { %v6573_v29 = vadd.f32 1.4214138, %v6272_v54  ;;  %v9695_v26 = vld [vmem:[#allocation196_spill] sm:$0xff]  ;;  %v6580_v52 = vadd.f32 1.4214138, %v6279_v60  ;;  %v9714_v55 = vld [vmem:[#allocation206_spill] sm:$0xff] }
 0x2a6   :  { %v6577_v46 = vmul.f32 %v9695_v26, %v6428_v56  ;;  %v6583_v23 = vadd.f32 1.4214138, %v6286_v51  ;;  %v6586_v59 = vadd.f32 1.4214138, %v6293_v58  ;;  %v9700_v21 = vld [vmem:[#allocation200_spill] sm:$0xff]  ;;  %v9702_v26 = vld [vmem:[#allocation202_spill] sm:$0xff] }
 0x2a7   :  { %9697 = vst [vmem:[#allocation274_spill] sm:$0xff] %v6580_v52  ;;  %v6590_v1 = vmul.f32 %v9700_v21, %v6437_v3  ;;  %v1951_v54 = vadd.f32 1.4214138, %v6300_v9  ;;  %v1952_v27 = vadd.f32 1.4214138, %v6307_v25  ;;  %v6597_v60 = vmul.f32 %v9702_v26, %v6446_v35  ;;  %v9706_v21 = vld [vmem:[#allocation204_spill] sm:$0xff] }
 0x2a8   :  { %9696 = vst [vmem:[#allocation273_spill] sm:$0xff] %v6577_v46  ;;  %9698 = vst [vmem:[#allocation275_spill] sm:$0xff] %v6583_v23  ;;  %v1953_v56 = vadd.f32 1.4214138, %v6314_v32  ;;  %v1954_v51 = vadd.f32 1.4214138, %v6321_v43  ;;  %v6611_v35 = vmul.f32 %v9706_v21, %v6464_v24  ;;  %v6625_v24 = vmul.f32 %v9714_v55, %v6482_v48 }
 0x2a9   :  { %9699 = vst [vmem:[#allocation276_spill] sm:$0xff] %v6586_v59  ;;  %9701 = vst [vmem:[#allocation277_spill] sm:$0xff] %v6590_v1  ;;  %v1955_v40 = vadd.f32 1.4214138, %v6328_v20  ;;  %v1956_v58 = vadd.f32 1.4214138, %v6335_v42 }
 0x2aa   :  { %9703 = vst [vmem:[#allocation278_spill] sm:$0xff] %v6597_v60  ;;  %v9704_v46 = vld [vmem:[#allocation203_spill] sm:$0xff]  ;;  %v1957_v9 = vadd.f32 1.4214138, %v6342_v0  ;;  %v1958_v25 = vadd.f32 1.4214138, %v6349_v14 }
 0x2ab   :  { %v6604_v3 = vmul.f32 %v9704_v46, %v6455_v5  ;;  %v1959_v32 = vadd.f32 1.4214138, %v6356_v13  ;;  %9707 = vst [vmem:[#allocation280_spill] sm:$0xff] %v6611_v35  ;;  %v1960_v43 = vadd.f32 1.4214138, %v6363_v63  ;;  %v9708_v26 = vld [vmem:[#allocation246_spill] sm:$0xff] }
 0x2ac   :  { %v1961_v20 = vadd.f32 1.4214138, %v6370_v16  ;;  %v1962_v42 = vadd.f32 1.4214138, %v9708_v26  ;;  %v9709_v60 = vld [vmem:[#allocation205_spill] sm:$0xff]  ;;  %v9711_v46 = vld [vmem:[#allocation248_spill] sm:$0xff] }
 0x2ad   :  { %9705 = vst [vmem:[#allocation279_spill] sm:$0xff] %v6604_v3  ;;  %v6618_v5 = vmul.f32 %v9709_v60, %v6473_v28  ;;  %v1963_v0 = vadd.f32 1.4214138, %v9711_v46  ;;  %v9712_v3 = vld [vmem:[#allocation250_spill] sm:$0xff]  ;;  %v9713_v1 = vld [vmem:[#allocation197_spill] sm:$0xff]  ;;  %9715 = vst [vmem:[#allocation248_spill] sm:$0xff] %v6625_v24 }
 0x2ae   :  { %v1964_v14 = vadd.f32 1.4214138, %v9712_v3  ;;  %v1965_v13 = vadd.f32 1.4214138, %v9713_v1  ;;  %v9716_v21 = vld [vmem:[#allocation198_spill] sm:$0xff]  ;;  %v9717_v35 = vld [vmem:[#allocation199_spill] sm:$0xff] }
 0x2af   :  { %9710 = vst [vmem:[#allocation246_spill] sm:$0xff] %v6618_v5  ;;  %v1966_v63 = vadd.f32 1.4214138, %v9716_v21  ;;  %v1967_v16 = vadd.f32 1.4214138, %v9717_v35  ;;  %v9718_v2 = vld [vmem:[#allocation207_spill] sm:$0xff] }
 0x2b0   :  { %v1968_v26 = vadd.f32 1.4214138, %v6419_v49  ;;  %v6632_v28 = vmul.f32 %v9718_v2, %v6491_v33  ;;  %v9720_v60 = vld [vmem:[#allocation255_spill] sm:$0xff]  ;;  %v9721_v5 = vld [vmem:[#allocation257_spill] sm:$0xff]  ;;  %v9723_v31 = vld [vmem:[#allocation208_spill] sm:$0xff] }
 0x2b1   :  { %v1969_v46 = vadd.f32 1.4214138, %v9720_v60  ;;  %v1970_v3 = vadd.f32 1.4214138, %v9721_v5  ;;  %v9722_v30 = vld [vmem:[#allocation259_spill] sm:$0xff]  ;;  %v6639_v48 = vmul.f32 %v9723_v31, %v6500_v37  ;;  %v9724_v55 = vld [vmem:[#allocation261_spill] sm:$0xff] }
 0x2b2   :  { %9719 = vst [vmem:[#allocation250_spill] sm:$0xff] %v6632_v28  ;;  %v1971_v1 = vadd.f32 1.4214138, %v9722_v30  ;;  %v1972_v21 = vadd.f32 1.4214138, %v9724_v55  ;;  %v9725_v24 = vld [vmem:[#allocation263_spill] sm:$0xff] }
 0x2b3   :  { %v1973_v35 = vadd.f32 1.4214138, %v9725_v24  ;;  %v9726_v18 = vld [vmem:[#allocation265_spill] sm:$0xff]  ;;  %v9729_v2 = vld [vmem:[#allocation267_spill] sm:$0xff]  ;;  %v9732_v52 = vld [vmem:[#allocation194_spill] sm:$0xff] }
 0x2b4   :  { %v1974_v49 = vadd.f32 1.4214138, %v9726_v18  ;;  %v9727_v59 = vld [vmem:[#allocation209_spill] sm:$0xff]  ;;  %v1975_v60 = vadd.f32 1.4214138, %v9729_v2  ;;  %v9731_v23 = vld [vmem:[#allocation271_spill] sm:$0xff]  ;;  %v6653_v37 = vmul.f32 %v9732_v52, %v6516_v6 }
 0x2b5   :  { %v6646_v33 = vmul.f32 %v9727_v59, %v6509_v17  ;;  %v9730_v28 = vld [vmem:[#allocation269_spill] sm:$0xff]  ;;  %v1977_v30 = vadd.f32 1.4214138, %v9731_v23  ;;  %v1978_v55 = vadd.f32 1.4214138, %v6506_v8  ;;  %v9733_v31 = vld [vmem:[#allocation210_spill] sm:$0xff] }
 0x2b6   :  { %v1976_v5 = vadd.f32 1.4214138, %v9730_v28  ;;  %v1979_v24 = vadd.f32 1.4214138, %v6513_v15  ;;  %v1980_v18 = vadd.f32 1.4214138, %v6519_v34  ;;  %v6660_v17 = vmul.f32 %v9733_v31, %v6522_v50 }
 0x2b7   :  { %9728 = vst [vmem:[#allocation197_spill] sm:$0xff] %v6646_v33  ;;  %v1981_v2 = vadd.f32 1.4214138, %v6528_v39  ;;  %v1982_v59 = vadd.f32 1.4214138, %v1918_v47  ;;  %v9734_v23 = vld [vmem:[#allocation211_spill] sm:$0xff] }
 0x2b8   :  { %v1983_v28 = vadd.f32 1.4214138, %v1919_v22  ;;  %v6665_v33 = vmul.f32 %v9734_v23, %v6525_v7  ;;  %v1984_v6 = vadd.f32 1.4214138, %v1920_v62  ;;  %v9735_v52 = vld [vmem:[#allocation195_spill] sm:$0xff]  ;;  %v9736_v15 = vld [vmem:[#allocation212_spill] sm:$0xff] }
 0x2b9   :  { %v6669_v8 = vmul.f32 %v9735_v52, %v6531_v38  ;;  %v6673_v34 = vmul.f32 %v9736_v15, %v6534_v44  ;;  %v9737_v50 = vld [vmem:[#allocation213_spill] sm:$0xff]  ;;  %v9738_v39 = vld [vmem:[#allocation214_spill] sm:$0xff]  ;;  %v9739_v7 = vld [vmem:[#allocation215_spill] sm:$0xff] }
 0x2ba   :  { %v6677_v31 = vmul.f32 %v9737_v50, %v6538_v53  ;;  %v6681_v47 = vmul.f32 %v9738_v39, %v6541_v12  ;;  %v6685_v22 = vmul.f32 %v9739_v7, %v6544_v57  ;;  %v9740_v62 = vld [vmem:[#allocation216_spill] sm:$0xff]  ;;  %v9741_v52 = vld [vmem:[#allocation217_spill] sm:$0xff]  ;;  %v9742_v15 = vld [vmem:[#allocation218_spill] sm:$0xff] }
 0x2bb   :  { %v6689_v38 = vmul.f32 %v9740_v62, %v6548_v4  ;;  %v6693_v44 = vmul.f32 %v9741_v52, %v6551_v10  ;;  %v6697_v53 = vmul.f32 %v9742_v15, %v6554_v36  ;;  %v9743_v50 = vld [vmem:[#allocation219_spill] sm:$0xff]  ;;  %v9744_v39 = vld [vmem:[#allocation220_spill] sm:$0xff]  ;;  %v9746_v7 = vld [vmem:[#allocation221_spill] sm:$0xff] }
 0x2bc   :  { %v6701_v12 = vmul.f32 %v9743_v50, %v6558_v11  ;;  %v6705_v57 = vmul.f32 %v9744_v39, %v6561_v45  ;;  %v6709_v4 = vmul.f32 %v9746_v7, %v6564_v41  ;;  %v9748_v62 = vld [vmem:[#allocation222_spill] sm:$0xff]  ;;  %v9750_v52 = vld [vmem:[#allocation223_spill] sm:$0xff]  ;;  %v9751_v15 = vld [vmem:[#allocation224_spill] sm:$0xff] }
 0x2bd   :  { %v6713_v10 = vmul.f32 %v9748_v62, %v6567_v19  ;;  %v6717_v36 = vmul.f32 %v9750_v52, %v6570_v61  ;;  %v6721_v11 = vmul.f32 %v9751_v15, %v6573_v29  ;;  %v9753_v50 = vld [vmem:[#allocation274_spill] sm:$0xff]  ;;  %v9754_v23 = vld [vmem:[#allocation225_spill] sm:$0xff]  ;;  %v9756_v39 = vld [vmem:[#allocation275_spill] sm:$0xff] }
 0x2be   :  { %9745 = vst [vmem:[#allocation198_spill] sm:$0xff] %v6705_v57  ;;  %9747 = vst [vmem:[#allocation199_spill] sm:$0xff] %v6709_v4  ;;  %v6725_v45 = vmul.f32 %v9754_v23, %v9753_v50  ;;  %v9757_v57 = vld [vmem:[#allocation226_spill] sm:$0xff]  ;;  %v9758_v7 = vld [vmem:[#allocation276_spill] sm:$0xff] }
 0x2bf   :  { %9749 = vst [vmem:[#allocation255_spill] sm:$0xff] %v6713_v10  ;;  %9752 = vst [vmem:[#allocation257_spill] sm:$0xff] %v6721_v11  ;;  %v6729_v41 = vmul.f32 %v9757_v57, %v9756_v39  ;;  %v9759_v4 = vld [vmem:[#allocation227_spill] sm:$0xff]  ;;  %v9760_v62 = vld [vmem:[#allocation228_spill] sm:$0xff] }
 0x2c0   :  { %9755 = vst [vmem:[#allocation259_spill] sm:$0xff] %v6725_v45  ;;  %v6733_v19 = vmul.f32 %v9759_v4, %v9758_v7  ;;  %v6736_v10 = vmul.f32 %v9760_v62, %v1951_v54  ;;  %v9761_v61 = vld [vmem:[#allocation229_spill] sm:$0xff]  ;;  %v9762_v29 = vld [vmem:[#allocation230_spill] sm:$0xff]  ;;  %v9763_v11 = vld [vmem:[#allocation231_spill] sm:$0xff] }
 0x2c1   :  { %v6739_v52 = vmul.f32 %v9761_v61, %v1952_v27  ;;  %v6742_v15 = vmul.f32 %v9762_v29, %v1953_v56  ;;  %v6745_v50 = vmul.f32 %v9763_v11, %v1954_v51  ;;  %v9764_v23 = vld [vmem:[#allocation232_spill] sm:$0xff]  ;;  %v9765_v39 = vld [vmem:[#allocation233_spill] sm:$0xff]  ;;  %v9766_v7 = vld [vmem:[#allocation234_spill] sm:$0xff] }
 0x2c2   :  { %v6748_v45 = vmul.f32 %v9764_v23, %v1955_v40  ;;  %v6751_v57 = vmul.f32 %v9765_v39, %v1956_v58  ;;  %v6754_v4 = vmul.f32 %v9766_v7, %v1957_v9  ;;  %v9767_v54 = vld [vmem:[#allocation235_spill] sm:$0xff]  ;;  %v9768_v27 = vld [vmem:[#allocation236_spill] sm:$0xff]  ;;  %v9769_v56 = vld [vmem:[#allocation237_spill] sm:$0xff] }
 0x2c3   :  { %v6757_v62 = vmul.f32 %v9767_v54, %v1958_v25  ;;  %v6760_v61 = vmul.f32 %v9768_v27, %v1959_v32  ;;  %v6763_v29 = vmul.f32 %v9769_v56, %v1960_v43  ;;  %v9770_v51 = vld [vmem:[#allocation238_spill] sm:$0xff]  ;;  %v9771_v40 = vld [vmem:[#allocation239_spill] sm:$0xff]  ;;  %v9772_v58 = vld [vmem:[#allocation240_spill] sm:$0xff] }
 0x2c4   :  { %v6766_v11 = vmul.f32 %v9770_v51, %v1961_v20  ;;  %v6769_v23 = vmul.f32 %v9771_v40, %v1962_v42  ;;  %v6772_v39 = vmul.f32 %v9772_v58, %v1963_v0  ;;  %v9773_v9 = vld [vmem:[#allocation241_spill] sm:$0xff]  ;;  %v9774_v25 = vld [vmem:[#allocation242_spill] sm:$0xff]  ;;  %v9775_v32 = vld [vmem:[#allocation243_spill] sm:$0xff] }
 0x2c5   :  { %v6775_v7 = vmul.f32 %v9773_v9, %v1964_v14  ;;  %v6778_v54 = vmul.f32 %v9774_v25, %v1965_v13  ;;  %v6781_v27 = vmul.f32 %v9775_v32, %v1966_v63  ;;  %v9776_v43 = vld [vmem:[#allocation244_spill] sm:$0xff]  ;;  %v9777_v20 = vld [vmem:[#allocation245_spill] sm:$0xff]  ;;  %v9778_v42 = vld [vmem:[#allocation247_spill] sm:$0xff] }
 0x2c6   :  { %v6784_v56 = vmul.f32 %v9776_v43, %v1967_v16  ;;  %v6787_v51 = vmul.f32 %v9777_v20, %v1968_v26  ;;  %v6790_v40 = vmul.f32 %v9778_v42, %v1969_v46  ;;  %v9779_v0 = vld [vmem:[#allocation249_spill] sm:$0xff]  ;;  %v9780_v14 = vld [vmem:[#allocation251_spill] sm:$0xff]  ;;  %v9781_v13 = vld [vmem:[#allocation252_spill] sm:$0xff] }
 0x2c7   :  { %v6793_v58 = vmul.f32 %v9779_v0, %v1970_v3  ;;  %v6796_v9 = vmul.f32 %v9780_v14, %v1971_v1  ;;  %v6799_v25 = vmul.f32 %v9781_v13, %v1972_v21  ;;  %v9782_v63 = vld [vmem:[#allocation253_spill] sm:$0xff]  ;;  %v9783_v16 = vld [vmem:[#allocation254_spill] sm:$0xff]  ;;  %v9785_v46 = vld [vmem:[#allocation256_spill] sm:$0xff] }
 0x2c8   :  { %v6802_v32 = vmul.f32 %v9782_v63, %v1973_v35  ;;  %v6805_v43 = vmul.f32 %v9783_v16, %v1974_v49  ;;  %v9784_v26 = vld [vmem:[#allocation201_spill] sm:$0xff]  ;;  %v6811_v42 = vmul.f32 %v9785_v46, %v1976_v5  ;;  %v9786_v3 = vld [vmem:[#allocation258_spill] sm:$0xff]  ;;  %v9788_v1 = vld [vmem:[#allocation260_spill] sm:$0xff] }
 0x2c9   :  { %v6808_v20 = vmul.f32 %v9784_v26, %v1975_v60  ;;  %v6814_v0 = vmul.f32 %v9786_v3, %v1977_v30  ;;  %v6817_v14 = vmul.f32 %v9788_v1, %v1978_v55  ;;  %v9790_v21 = vld [vmem:[#allocation262_spill] sm:$0xff]  ;;  %v9792_v35 = vld [vmem:[#allocation264_spill] sm:$0xff]  ;;  %v9800_v30 = vld [vmem:[#allocation273_spill] sm:$0xff] }
 0x2ca   :  { %v6820_v13 = vmul.f32 %v9790_v21, %v1979_v24  ;;  %v6823_v63 = vmul.f32 %v9792_v35, %v1980_v18  ;;  %v9794_v49 = vld [vmem:[#allocation266_spill] sm:$0xff]  ;;  %v9796_v60 = vld [vmem:[#allocation268_spill] sm:$0xff]  ;;  %v2049_v3 = vadd.f32 -0.28449672, %v9800_v30  ;;  %v9803_v1 = vld [vmem:[#allocation277_spill] sm:$0xff] }
 0x2cb   :  { %9787 = vst [vmem:[#allocation261_spill] sm:$0xff] %v6814_v0  ;;  %9789 = vst [vmem:[#allocation263_spill] sm:$0xff] %v6817_v14  ;;  %v6826_v16 = vmul.f32 %v9794_v49, %v1981_v2  ;;  %v6829_v26 = vmul.f32 %v9796_v60, %v1982_v59  ;;  %v9798_v5 = vld [vmem:[#allocation270_spill] sm:$0xff]  ;;  %v9801_v0 = vld [vmem:[#allocation272_spill] sm:$0xff]  ;;  %v2050_v24 = vadd.f32 -0.28449672, %v9803_v1 }
 0x2cc   :  { %9791 = vst [vmem:[#allocation265_spill] sm:$0xff] %v6820_v13  ;;  %9793 = vst [vmem:[#allocation267_spill] sm:$0xff] %v6823_v63  ;;  %v6832_v46 = vmul.f32 %v9798_v5, %v1983_v28  ;;  %v6836_v55 = vmul.f32 %v9801_v0, %v1984_v6  ;;  %v9804_v21 = vld [vmem:[#allocation278_spill] sm:$0xff]  ;;  %v9805_v18 = vld [vmem:[#allocation279_spill] sm:$0xff]  ;;  %v2057_v0 = vadd.f32 -0.28449672, %v6639_v48 }
 0x2cd   :  { %9795 = vst [vmem:[#allocation269_spill] sm:$0xff] %v6826_v16  ;;  %9797 = vst [vmem:[#allocation271_spill] sm:$0xff] %v6829_v26  ;;  %v2051_v13 = vadd.f32 -0.28449672, %v9804_v21  ;;  %v2052_v35 = vadd.f32 -0.28449672, %v9805_v18 }
 0x2ce   :  { %9799 = vst [vmem:[#allocation274_spill] sm:$0xff] %v6832_v46  ;;  %9802 = vst [vmem:[#allocation275_spill] sm:$0xff] %v6836_v55  ;;  %v9806_v63 = vld [vmem:[#allocation280_spill] sm:$0xff]  ;;  %v9807_v49 = vld [vmem:[#allocation246_spill] sm:$0xff]  ;;  %v2061_v18 = vadd.f32 -0.28449672, %v6665_v33 }
 0x2cf   :  { %v2053_v2 = vadd.f32 -0.28449672, %v9806_v63  ;;  %v2054_v16 = vadd.f32 -0.28449672, %v9807_v49  ;;  %v9808_v59 = vld [vmem:[#allocation248_spill] sm:$0xff]  ;;  %v9809_v26 = vld [vmem:[#allocation138_spill] sm:$0xff] }
 0x2d0   :  { %v2055_v60 = vadd.f32 -0.28449672, %v9808_v59  ;;  %v9810_v28 = vsub.f32 0.0, %v9809_v26  ;;  %v9812_v30 = vld [vmem:[#allocation250_spill] sm:$0xff]  ;;  %v9813_v1 = vld [vmem:[#allocation197_spill] sm:$0xff]  ;;  %v9814_v21 = vld [vmem:[#allocation196_spill] sm:$0xff] }
 0x2d1   :  { %v2056_v6 = vadd.f32 -0.28449672, %v9812_v30  ;;  %v2058_v55 = vadd.f32 -0.28449672, %v9813_v1  ;;  %v6853_v46 = vmul.f32 %v9814_v21, %v2049_v3  ;;  %v2059_v63 = vadd.f32 -0.28449672, %v6653_v37 }
 0x2d2   :  { %v6847_v5 = vmul.f32 %v9810_v28, %v9809_v26  ;;  %v2060_v49 = vadd.f32 -0.28449672, %v6660_v17  ;;  %v9816_v59 = vld [vmem:[#allocation200_spill] sm:$0xff]  ;;  %v2062_v26 = vadd.f32 -0.28449672, %v6669_v8  ;;  %v9818_v30 = vld [vmem:[#allocation202_spill] sm:$0xff] }
 0x2d3   :  { %9815 = vst [vmem:[#allocation273_spill] sm:$0xff] %v6853_v46  ;;  %v6859_v14 = vmul.f32 %v9816_v59, %v2050_v24  ;;  %v2063_v28 = vadd.f32 -0.28449672, %v6673_v34  ;;  %v2064_v48 = vadd.f32 -0.28449672, %v6677_v31  ;;  %v6865_v1 = vmul.f32 %v9818_v30, %v2051_v13  ;;  %v9822_v59 = vld [vmem:[#allocation204_spill] sm:$0xff] }
 0x2d4   :  { %9811 = vst [vmem:[#allocation276_spill] sm:$0xff] %v6847_v5  ;;  %v2065_v3 = vadd.f32 -0.28449672, %v6681_v47  ;;  %v2066_v37 = vadd.f32 -0.28449672, %v6685_v22  ;;  %v9820_v5 = vld [vmem:[#allocation203_spill] sm:$0xff]  ;;  %v6877_v31 = vmul.f32 %v9822_v59, %v2053_v2 }
 0x2d5   :  { %9817 = vst [vmem:[#allocation277_spill] sm:$0xff] %v6859_v14  ;;  %9819 = vst [vmem:[#allocation278_spill] sm:$0xff] %v6865_v1  ;;  %v2067_v17 = vadd.f32 -0.28449672, %v6689_v38  ;;  %v6871_v33 = vmul.f32 %v9820_v5, %v2052_v35  ;;  %v2068_v24 = vadd.f32 -0.28449672, %v6693_v44 }
 0x2d6   :  { %v2069_v8 = vadd.f32 -0.28449672, %v6697_v53  ;;  %v2070_v34 = vadd.f32 -0.28449672, %v6701_v12  ;;  %v9823_v13 = vld [vmem:[#allocation198_spill] sm:$0xff]  ;;  %v9824_v21 = vld [vmem:[#allocation199_spill] sm:$0xff] }
 0x2d7   :  { %9821 = vst [vmem:[#allocation279_spill] sm:$0xff] %v6871_v33  ;;  %v2071_v30 = vadd.f32 -0.28449672, %v9823_v13  ;;  %v2072_v47 = vadd.f32 -0.28449672, %v9824_v21  ;;  %v9825_v1 = vld [vmem:[#allocation255_spill] sm:$0xff] }
 0x2d8   :  { %v2073_v22 = vadd.f32 -0.28449672, %v9825_v1  ;;  %v9826_v14 = vld [vmem:[#allocation205_spill] sm:$0xff]  ;;  %v2074_v35 = vadd.f32 -0.28449672, %v6717_v36  ;;  %v9828_v33 = vld [vmem:[#allocation259_spill] sm:$0xff] }
 0x2d9   :  { %v6883_v38 = vmul.f32 %v9826_v14, %v2054_v16  ;;  %v9827_v5 = vld [vmem:[#allocation257_spill] sm:$0xff]  ;;  %v2076_v53 = vadd.f32 -0.28449672, %v9828_v33  ;;  %v9829_v46 = vld [vmem:[#allocation206_spill] sm:$0xff]  ;;  %v2077_v2 = vadd.f32 -0.28449672, %v6729_v41 }
 0x2da   :  { %v2075_v44 = vadd.f32 -0.28449672, %v9827_v5  ;;  %v6889_v12 = vmul.f32 %v9829_v46, %v2055_v60  ;;  %v2078_v13 = vadd.f32 -0.28449672, %v6733_v19  ;;  %v2079_v21 = vadd.f32 -0.28449672, %v6736_v10 }
 0x2db   :  { %v9830_v59 = vld [vmem:[#allocation207_spill] sm:$0xff]  ;;  %v2080_v16 = vadd.f32 -0.28449672, %v6739_v52  ;;  %v2081_v36 = vadd.f32 -0.28449672, %v6742_v15  ;;  %v9831_v14 = vld [vmem:[#allocation208_spill] sm:$0xff] }
 0x2dc   :  { %v6895_v1 = vmul.f32 %v9830_v59, %v2056_v6  ;;  %v2082_v5 = vadd.f32 -0.28449672, %v6745_v50  ;;  %v6901_v33 = vmul.f32 %v9831_v14, %v2057_v0  ;;  %v2083_v60 = vadd.f32 -0.28449672, %v6748_v45  ;;  %v9833_v46 = vld [vmem:[#allocation209_spill] sm:$0xff]  ;;  %v9835_v59 = vld [vmem:[#allocation194_spill] sm:$0xff] }
 0x2dd   :  { %v2084_v41 = vadd.f32 -0.28449672, %v6751_v57  ;;  %v2085_v19 = vadd.f32 -0.28449672, %v6754_v4  ;;  %v6907_v10 = vmul.f32 %v9833_v46, %v2058_v55  ;;  %v2086_v6 = vadd.f32 -0.28449672, %v6757_v62 }
 0x2de   :  { %9832 = vst [vmem:[#allocation280_spill] sm:$0xff] %v6901_v33  ;;  %v2087_v52 = vadd.f32 -0.28449672, %v6760_v61  ;;  %v2088_v15 = vadd.f32 -0.28449672, %v6763_v29  ;;  %v6913_v50 = vmul.f32 %v9835_v59, %v2059_v63  ;;  %v9837_v14 = vld [vmem:[#allocation210_spill] sm:$0xff] }
 0x2df   :  { %9834 = vst [vmem:[#allocation246_spill] sm:$0xff] %v6907_v10  ;;  %v2089_v0 = vadd.f32 -0.28449672, %v6766_v11  ;;  %v2090_v45 = vadd.f32 -0.28449672, %v6769_v23  ;;  %v6919_v4 = vmul.f32 %v9837_v14, %v2060_v49  ;;  %v9839_v46 = vld [vmem:[#allocation211_spill] sm:$0xff] }
 0x2e0   :  { %9836 = vst [vmem:[#allocation248_spill] sm:$0xff] %v6913_v50  ;;  %v2091_v57 = vadd.f32 -0.28449672, %v6772_v39  ;;  %v2092_v55 = vadd.f32 -0.28449672, %v6775_v7  ;;  %v6925_v29 = vmul.f32 %v9839_v46, %v2061_v18  ;;  %v9841_v59 = vld [vmem:[#allocation195_spill] sm:$0xff] }
 0x2e1   :  { %9838 = vst [vmem:[#allocation138_spill] sm:$0xff] %v6919_v4  ;;  %v2093_v62 = vadd.f32 -0.28449672, %v6778_v54  ;;  %v2094_v61 = vadd.f32 -0.28449672, %v6781_v27  ;;  %v6931_v39 = vmul.f32 %v9841_v59, %v2062_v26  ;;  %v9843_v14 = vld [vmem:[#allocation212_spill] sm:$0xff] }
 0x2e2   :  { %9840 = vst [vmem:[#allocation250_spill] sm:$0xff] %v6925_v29  ;;  %v2095_v63 = vadd.f32 -0.28449672, %v6784_v56  ;;  %v2096_v11 = vadd.f32 -0.28449672, %v6787_v51  ;;  %v6937_v27 = vmul.f32 %v9843_v14, %v2063_v28  ;;  %v9845_v46 = vld [vmem:[#allocation213_spill] sm:$0xff] }
 0x2e3   :  { %v2097_v23 = vadd.f32 -0.28449672, %v6790_v40  ;;  %9842 = vst [vmem:[#allocation197_spill] sm:$0xff] %v6931_v39  ;;  %v2098_v49 = vadd.f32 -0.28449672, %v6793_v58  ;;  %v6943_v40 = vmul.f32 %v9845_v46, %v2064_v48  ;;  %v9847_v59 = vld [vmem:[#allocation261_spill] sm:$0xff] }
 0x2e4   :  { %v2099_v7 = vadd.f32 -0.28449672, %v6796_v9  ;;  %v2100_v54 = vadd.f32 -0.28449672, %v6799_v25  ;;  %9844 = vst [vmem:[#allocation198_spill] sm:$0xff] %v6937_v27  ;;  %v9848_v39 = vld [vmem:[#allocation263_spill] sm:$0xff] }
 0x2e5   :  { %v2101_v18 = vadd.f32 -0.28449672, %v6802_v32  ;;  %v2102_v56 = vadd.f32 -0.28449672, %v6805_v43  ;;  %v2103_v51 = vadd.f32 -0.28449672, %v6808_v20 }
 0x2e6   :  { %9846 = vst [vmem:[#allocation199_spill] sm:$0xff] %v6943_v40  ;;  %v2104_v26 = vadd.f32 -0.28449672, %v6811_v42  ;;  %v2105_v58 = vadd.f32 -0.28449672, %v9847_v59  ;;  %v9849_v29 = vld [vmem:[#allocation214_spill] sm:$0xff] }
 0x2e7   :  { %v2106_v9 = vadd.f32 -0.28449672, %v9848_v39  ;;  %v6949_v25 = vmul.f32 %v9849_v29, %v2065_v3  ;;  %v9851_v28 = vld [vmem:[#allocation265_spill] sm:$0xff]  ;;  %v9852_v27 = vld [vmem:[#allocation267_spill] sm:$0xff]  ;;  %v9857_v40 = vld [vmem:[#allocation274_spill] sm:$0xff] }
 0x2e8   :  { %v2107_v14 = vadd.f32 -0.28449672, %v9851_v28  ;;  %v2108_v32 = vadd.f32 -0.28449672, %v9852_v27  ;;  %v9853_v4 = vld [vmem:[#allocation269_spill] sm:$0xff]  ;;  %v9854_v50 = vld [vmem:[#allocation215_spill] sm:$0xff] }
 0x2e9   :  { %9850 = vst [vmem:[#allocation255_spill] sm:$0xff] %v6949_v25  ;;  %v2109_v43 = vadd.f32 -0.28449672, %v9853_v4  ;;  %v6955_v20 = vmul.f32 %v9854_v50, %v2066_v37  ;;  %v9856_v48 = vld [vmem:[#allocation271_spill] sm:$0xff]  ;;  %v2111_v42 = vadd.f32 -0.28449672, %v9857_v40 }
 0x2ea   :  { %v2110_v46 = vadd.f32 -0.28449672, %v9856_v48  ;;  %v9858_v10 = vld [vmem:[#allocation275_spill] sm:$0xff]  ;;  %v9859_v33 = vld [vmem:[#allocation216_spill] sm:$0xff]  ;;  %v9860_v3 = vld [vmem:[#allocation217_spill] sm:$0xff] }
 0x2eb   :  { %9855 = vst [vmem:[#allocation257_spill] sm:$0xff] %v6955_v20  ;;  %v2112_v59 = vadd.f32 -0.28449672, %v9858_v10  ;;  %v6961_v39 = vmul.f32 %v9859_v33, %v2067_v17  ;;  %v6964_v29 = vmul.f32 %v9860_v3, %v2068_v24  ;;  %v9861_v28 = vld [vmem:[#allocation218_spill] sm:$0xff]  ;;  %v9862_v27 = vld [vmem:[#allocation219_spill] sm:$0xff]  ;;  %v9863_v37 = vld [vmem:[#allocation220_spill] sm:$0xff] }
 0x2ec   :  { %v6967_v25 = vmul.f32 %v9861_v28, %v2069_v8  ;;  %v6970_v4 = vmul.f32 %v9862_v27, %v2070_v34  ;;  %v6973_v50 = vmul.f32 %v9863_v37, %v2071_v30  ;;  %v9864_v48 = vld [vmem:[#allocation221_spill] sm:$0xff]  ;;  %v9865_v40 = vld [vmem:[#allocation222_spill] sm:$0xff]  ;;  %v9866_v17 = vld [vmem:[#allocation223_spill] sm:$0xff] }
 0x2ed   :  { %v6976_v20 = vmul.f32 %v9864_v48, %v2072_v47  ;;  %v6979_v10 = vmul.f32 %v9865_v40, %v2073_v22  ;;  %v6982_v33 = vmul.f32 %v9866_v17, %v2074_v35  ;;  %v9867_v24 = vld [vmem:[#allocation224_spill] sm:$0xff]  ;;  %v9868_v8 = vld [vmem:[#allocation225_spill] sm:$0xff]  ;;  %v9869_v34 = vld [vmem:[#allocation226_spill] sm:$0xff] }
 0x2ee   :  { %v6985_v3 = vmul.f32 %v9867_v24, %v2075_v44  ;;  %v6988_v28 = vmul.f32 %v9868_v8, %v2076_v53  ;;  %v6991_v27 = vmul.f32 %v9869_v34, %v2077_v2  ;;  %v9870_v30 = vld [vmem:[#allocation227_spill] sm:$0xff]  ;;  %v9871_v47 = vld [vmem:[#allocation228_spill] sm:$0xff]  ;;  %v9872_v22 = vld [vmem:[#allocation229_spill] sm:$0xff] }
 0x2ef   :  { %v6994_v37 = vmul.f32 %v9870_v30, %v2078_v13  ;;  %v6997_v48 = vmul.f32 %v9871_v47, %v2079_v21  ;;  %v7000_v40 = vmul.f32 %v9872_v22, %v2080_v16  ;;  %v9873_v35 = vld [vmem:[#allocation230_spill] sm:$0xff]  ;;  %v9874_v44 = vld [vmem:[#allocation231_spill] sm:$0xff]  ;;  %v9875_v53 = vld [vmem:[#allocation232_spill] sm:$0xff] }
 0x2f0   :  { %v7003_v17 = vmul.f32 %v9873_v35, %v2081_v36  ;;  %v7006_v24 = vmul.f32 %v9874_v44, %v2082_v5  ;;  %v7009_v8 = vmul.f32 %v9875_v53, %v2083_v60  ;;  %v9876_v2 = vld [vmem:[#allocation233_spill] sm:$0xff]  ;;  %v9877_v13 = vld [vmem:[#allocation234_spill] sm:$0xff]  ;;  %v9878_v21 = vld [vmem:[#allocation235_spill] sm:$0xff] }
 0x2f1   :  { %v7012_v34 = vmul.f32 %v9876_v2, %v2084_v41  ;;  %v7015_v30 = vmul.f32 %v9877_v13, %v2085_v19  ;;  %v7018_v47 = vmul.f32 %v9878_v21, %v2086_v6  ;;  %v9879_v16 = vld [vmem:[#allocation236_spill] sm:$0xff]  ;;  %v9880_v36 = vld [vmem:[#allocation237_spill] sm:$0xff]  ;;  %v9881_v5 = vld [vmem:[#allocation238_spill] sm:$0xff] }
 0x2f2   :  { %v7021_v22 = vmul.f32 %v9879_v16, %v2087_v52  ;;  %v7024_v35 = vmul.f32 %v9880_v36, %v2088_v15  ;;  %v7027_v44 = vmul.f32 %v9881_v5, %v2089_v0  ;;  %v9882_v60 = vld [vmem:[#allocation239_spill] sm:$0xff]  ;;  %v9883_v41 = vld [vmem:[#allocation240_spill] sm:$0xff]  ;;  %v9884_v19 = vld [vmem:[#allocation241_spill] sm:$0xff] }
 0x2f3   :  { %v7030_v53 = vmul.f32 %v9882_v60, %v2090_v45  ;;  %v7033_v2 = vmul.f32 %v9883_v41, %v2091_v57  ;;  %v7036_v13 = vmul.f32 %v9884_v19, %v2092_v55  ;;  %v9885_v6 = vld [vmem:[#allocation242_spill] sm:$0xff]  ;;  %v9886_v52 = vld [vmem:[#allocation243_spill] sm:$0xff]  ;;  %v9887_v15 = vld [vmem:[#allocation244_spill] sm:$0xff] }
 0x2f4   :  { %v7039_v21 = vmul.f32 %v9885_v6, %v2093_v62  ;;  %v7042_v16 = vmul.f32 %v9886_v52, %v2094_v61  ;;  %v7045_v36 = vmul.f32 %v9887_v15, %v2095_v63  ;;  %v9888_v0 = vld [vmem:[#allocation245_spill] sm:$0xff]  ;;  %v9889_v45 = vld [vmem:[#allocation247_spill] sm:$0xff]  ;;  %v9892_v62 = vld [vmem:[#allocation252_spill] sm:$0xff] }
 0x2f5   :  { %v7048_v5 = vmul.f32 %v9888_v0, %v2096_v11  ;;  %v7051_v60 = vmul.f32 %v9889_v45, %v2097_v23  ;;  %v9890_v57 = vld [vmem:[#allocation249_spill] sm:$0xff]  ;;  %v9891_v55 = vld [vmem:[#allocation251_spill] sm:$0xff]  ;;  %v7060_v6 = vmul.f32 %v9892_v62, %v2100_v54  ;;  %v9895_v63 = vld [vmem:[#allocation254_spill] sm:$0xff] }
 0x2f6   :  { %v7054_v41 = vmul.f32 %v9890_v57, %v2098_v49  ;;  %v7057_v19 = vmul.f32 %v9891_v55, %v2099_v7  ;;  %v9893_v61 = vld [vmem:[#allocation253_spill] sm:$0xff]  ;;  %v7066_v15 = vmul.f32 %v9895_v63, %v2102_v56  ;;  %v9899_v23 = vld [vmem:[#allocation256_spill] sm:$0xff]  ;;  %v9901_v49 = vld [vmem:[#allocation258_spill] sm:$0xff] }
 0x2f7   :  { %v7063_v52 = vmul.f32 %v9893_v61, %v2101_v18  ;;  %v9897_v11 = vld [vmem:[#allocation201_spill] sm:$0xff]  ;;  %v7072_v45 = vmul.f32 %v9899_v23, %v2104_v26  ;;  %v7075_v57 = vmul.f32 %v9901_v49, %v2105_v58  ;;  %v9903_v7 = vld [vmem:[#allocation260_spill] sm:$0xff]  ;;  %v9905_v54 = vld [vmem:[#allocation262_spill] sm:$0xff] }
 0x2f8   :  { %9896 = vst [vmem:[#allocation261_spill] sm:$0xff] %v7066_v15  ;;  %v7069_v0 = vmul.f32 %v9897_v11, %v2103_v51  ;;  %v7078_v55 = vmul.f32 %v9903_v7, %v2106_v9  ;;  %v7081_v62 = vmul.f32 %v9905_v54, %v2107_v14  ;;  %v9907_v18 = vld [vmem:[#allocation264_spill] sm:$0xff]  ;;  %v9909_v56 = vld [vmem:[#allocation266_spill] sm:$0xff]  ;;  %v9917_v9 = vld [vmem:[#allocation273_spill] sm:$0xff] }
 0x2f9   :  { %9894 = vst [vmem:[#allocation259_spill] sm:$0xff] %v7063_v52  ;;  %9900 = vst [vmem:[#allocation265_spill] sm:$0xff] %v7072_v45  ;;  %v7084_v61 = vmul.f32 %v9907_v18, %v2108_v32  ;;  %v7087_v63 = vmul.f32 %v9909_v56, %v2109_v43  ;;  %v9911_v51 = vld [vmem:[#allocation268_spill] sm:$0xff]  ;;  %v9913_v26 = vld [vmem:[#allocation270_spill] sm:$0xff]  ;;  %v2177_v7 = vadd.f32 0.2548296, %v9917_v9 }
 0x2fa   :  { %9898 = vst [vmem:[#allocation263_spill] sm:$0xff] %v7069_v0  ;;  %9902 = vst [vmem:[#allocation267_spill] sm:$0xff] %v7075_v57  ;;  %v7090_v11 = vmul.f32 %v9911_v51, %v2110_v46  ;;  %v7093_v23 = vmul.f32 %v9913_v26, %v2111_v42  ;;  %v9915_v58 = vld [vmem:[#allocation272_spill] sm:$0xff]  ;;  %v9919_v54 = vld [vmem:[#allocation278_spill] sm:$0xff]  ;;  %v2181_v43 = vadd.f32 0.2548296, %v6877_v31 }
 0x2fb   :  { %9904 = vst [vmem:[#allocation269_spill] sm:$0xff] %v7078_v55  ;;  %9906 = vst [vmem:[#allocation271_spill] sm:$0xff] %v7081_v62  ;;  %v7096_v49 = vmul.f32 %v9915_v58, %v2112_v59  ;;  %v9918_v55 = vld [vmem:[#allocation277_spill] sm:$0xff]  ;;  %v2179_v62 = vadd.f32 0.2548296, %v9919_v54  ;;  %v9920_v32 = vld [vmem:[#allocation279_spill] sm:$0xff] }
 0x2fc   :  { %9908 = vst [vmem:[#allocation274_spill] sm:$0xff] %v7084_v61  ;;  %9910 = vst [vmem:[#allocation275_spill] sm:$0xff] %v7087_v63  ;;  %v2178_v14 = vadd.f32 0.2548296, %v9918_v55  ;;  %v2180_v18 = vadd.f32 0.2548296, %v9920_v32 }
 0x2fd   :  { %9912 = vst [vmem:[#allocation281_spill] sm:$0xff] %v7090_v11  ;;  %9914 = vst [vmem:[#allocation282_spill] sm:$0xff] %v7093_v23  ;;  %v2182_v56 = vadd.f32 0.2548296, %v6883_v38  ;;  %v9921_v46 = vld [vmem:[#allocation139_spill] sm:$0xff]  ;;  %v9924_v9 = vld [vmem:[#allocation280_spill] sm:$0xff] }
 0x2fe   :  { %9916 = vst [vmem:[#allocation283_spill] sm:$0xff] %v7096_v49  ;;  %v9922_v51 = vsub.f32 0.0, %v9921_v46  ;;  %v2183_v59 = vadd.f32 0.2548296, %v6889_v12  ;;  %v2184_v58 = vadd.f32 0.2548296, %v6895_v1 }
 0x2ff   :  { %v2185_v26 = vadd.f32 0.2548296, %v9924_v9  ;;  %v9925_v55 = vld [vmem:[#allocation140_spill] sm:$0xff]  ;;  %v9928_v32 = vld [vmem:[#allocation246_spill] sm:$0xff]  ;;  %v9940_v15 = vld [vmem:[#allocation257_spill] sm:$0xff] }
 0x300   :  { %v7107_v42 = vmul.f32 %v9922_v51, %v9921_v46  ;;  %v9926_v54 = vsub.f32 0.0, %v9925_v55  ;;  %v2186_v31 = vadd.f32 0.2548296, %v9928_v32  ;;  %v9929_v23 = vld [vmem:[#allocation248_spill] sm:$0xff]  ;;  %v9930_v11 = vld [vmem:[#allocation138_spill] sm:$0xff] }
 0x301   :  { %v2187_v38 = vadd.f32 0.2548296, %v9929_v23  ;;  %v2188_v63 = vadd.f32 0.2548296, %v9930_v11  ;;  %v9931_v61 = vld [vmem:[#allocation196_spill] sm:$0xff]  ;;  %v9933_v46 = vld [vmem:[#allocation250_spill] sm:$0xff] }
 0x302   :  { %9923 = vst [vmem:[#allocation273_spill] sm:$0xff] %v7107_v42  ;;  %v7115_v49 = vmul.f32 %v9926_v54, %v9925_v55  ;;  %v7121_v51 = vmul.f32 %v9931_v61, %v2177_v7  ;;  %v2189_v12 = vadd.f32 0.2548296, %v9933_v46  ;;  %v9934_v42 = vld [vmem:[#allocation197_spill] sm:$0xff]  ;;  %v9935_v57 = vld [vmem:[#allocation198_spill] sm:$0xff]  ;;  %v9936_v45 = vld [vmem:[#allocation200_spill] sm:$0xff] }
 0x303   :  { %v2190_v1 = vadd.f32 0.2548296, %v9934_v42  ;;  %v2191_v9 = vadd.f32 0.2548296, %v9935_v57  ;;  %v7127_v0 = vmul.f32 %v9936_v45, %v2178_v14  ;;  %v9938_v55 = vld [vmem:[#allocation199_spill] sm:$0xff]  ;;  %v9941_v52 = vld [vmem:[#allocation202_spill] sm:$0xff] }
 0x304   :  { %9927 = vst [vmem:[#allocation277_spill] sm:$0xff] %v7115_v49  ;;  %9932 = vst [vmem:[#allocation278_spill] sm:$0xff] %v7121_v51  ;;  %v2192_v54 = vadd.f32 0.2548296, %v9938_v55  ;;  %v9939_v49 = vld [vmem:[#allocation255_spill] sm:$0xff]  ;;  %v7133_v11 = vmul.f32 %v9941_v52, %v2179_v62  ;;  %v9945_v55 = vld [vmem:[#allocation204_spill] sm:$0xff] }
 0x305   :  { %9937 = vst [vmem:[#allocation279_spill] sm:$0xff] %v7127_v0  ;;  %v2193_v32 = vadd.f32 0.2548296, %v9939_v49  ;;  %v2194_v23 = vadd.f32 0.2548296, %v9940_v15  ;;  %v9943_v46 = vld [vmem:[#allocation203_spill] sm:$0xff]  ;;  %v7145_v15 = vmul.f32 %v9945_v55, %v2181_v43 }
 0x306   :  { %9942 = vst [vmem:[#allocation139_spill] sm:$0xff] %v7133_v11  ;;  %v2195_v61 = vadd.f32 0.2548296, %v6961_v39  ;;  %v2196_v7 = vadd.f32 0.2548296, %v6964_v29  ;;  %v7139_v57 = vmul.f32 %v9943_v46, %v2180_v18  ;;  %v9947_v62 = vld [vmem:[#allocation205_spill] sm:$0xff] }
 0x307   :  { %v2197_v42 = vadd.f32 0.2548296, %v6967_v25  ;;  %v2198_v45 = vadd.f32 0.2548296, %v6970_v4  ;;  %v2199_v14 = vadd.f32 0.2548296, %v6973_v50  ;;  %v7151_v25 = vmul.f32 %v9947_v62, %v2182_v56 }
 0x308   :  { %9944 = vst [vmem:[#allocation280_spill] sm:$0xff] %v7139_v57  ;;  %v2200_v49 = vadd.f32 0.2548296, %v6976_v20  ;;  %9946 = vst [vmem:[#allocation140_spill] sm:$0xff] %v7145_v15  ;;  %v2201_v52 = vadd.f32 0.2548296, %v6979_v10 }
 0x309   :  { %v2202_v39 = vadd.f32 0.2548296, %v6982_v33  ;;  %v2203_v29 = vadd.f32 0.2548296, %v6985_v3  ;;  %9948 = vst [vmem:[#allocation246_spill] sm:$0xff] %v7151_v25  ;;  %v9949_v46 = vld [vmem:[#allocation206_spill] sm:$0xff] }
 0x30a   :  { %v2204_v18 = vadd.f32 0.2548296, %v6988_v28  ;;  %v2205_v4 = vadd.f32 0.2548296, %v6991_v27  ;;  %v2206_v50 = vadd.f32 0.2548296, %v6994_v37  ;;  %v7157_v20 = vmul.f32 %v9949_v46, %v2183_v59 }
 0x30b   :  { %v2207_v43 = vadd.f32 0.2548296, %v6997_v48  ;;  %v2208_v10 = vadd.f32 0.2548296, %v7000_v40  ;;  %v2209_v33 = vadd.f32 0.2548296, %v7003_v17 }
 0x30c   :  { %9950 = vst [vmem:[#allocation248_spill] sm:$0xff] %v7157_v20  ;;  %v9951_v55 = vld [vmem:[#allocation207_spill] sm:$0xff]  ;;  %v2210_v56 = vadd.f32 0.2548296, %v7006_v24  ;;  %v2211_v28 = vadd.f32 0.2548296, %v7009_v8 }
 0x30d   :  { %v7163_v3 = vmul.f32 %v9951_v55, %v2184_v58  ;;  %v2212_v27 = vadd.f32 0.2548296, %v7012_v34  ;;  %v9953_v62 = vld [vmem:[#allocation208_spill] sm:$0xff]  ;;  %v2213_v59 = vadd.f32 0.2548296, %v7015_v30  ;;  %v9955_v46 = vld [vmem:[#allocation209_spill] sm:$0xff] }
 0x30e   :  { %v7169_v37 = vmul.f32 %v9953_v62, %v2185_v26  ;;  %v2214_v48 = vadd.f32 0.2548296, %v7018_v47  ;;  %v2215_v40 = vadd.f32 0.2548296, %v7021_v22  ;;  %v7175_v17 = vmul.f32 %v9955_v46, %v2186_v31  ;;  %v9957_v55 = vld [vmem:[#allocation194_spill] sm:$0xff]  ;;  %v9961_v46 = vld [vmem:[#allocation211_spill] sm:$0xff] }
 0x30f   :  { %9952 = vst [vmem:[#allocation138_spill] sm:$0xff] %v7163_v3  ;;  %v2216_v58 = vadd.f32 0.2548296, %v7024_v35  ;;  %v2217_v24 = vadd.f32 0.2548296, %v7027_v44  ;;  %v7181_v34 = vmul.f32 %v9957_v55, %v2187_v38  ;;  %v9959_v62 = vld [vmem:[#allocation210_spill] sm:$0xff] }
 0x310   :  { %9954 = vst [vmem:[#allocation196_spill] sm:$0xff] %v7169_v37  ;;  %9956 = vst [vmem:[#allocation250_spill] sm:$0xff] %v7175_v17  ;;  %v2218_v8 = vadd.f32 0.2548296, %v7030_v53  ;;  %v2219_v26 = vadd.f32 0.2548296, %v7033_v2  ;;  %v7187_v22 = vmul.f32 %v9959_v62, %v2188_v63  ;;  %v7193_v53 = vmul.f32 %v9961_v46, %v2189_v12 }
 0x311   :  { %9958 = vst [vmem:[#allocation197_spill] sm:$0xff] %v7181_v34  ;;  %v2220_v30 = vadd.f32 0.2548296, %v7036_v13  ;;  %v2221_v47 = vadd.f32 0.2548296, %v7039_v21  ;;  %v9963_v55 = vld [vmem:[#allocation195_spill] sm:$0xff] }
 0x312   :  { %9960 = vst [vmem:[#allocation198_spill] sm:$0xff] %v7187_v22  ;;  %v2222_v31 = vadd.f32 0.2548296, %v7042_v16  ;;  %v2223_v35 = vadd.f32 0.2548296, %v7045_v36  ;;  %9962 = vst [vmem:[#allocation200_spill] sm:$0xff] %v7193_v53  ;;  %v7199_v21 = vmul.f32 %v9963_v55, %v2190_v1 }
 0x313   :  { %v2224_v44 = vadd.f32 0.2548296, %v7048_v5  ;;  %v2225_v38 = vadd.f32 0.2548296, %v7051_v60  ;;  %v2226_v2 = vadd.f32 0.2548296, %v7054_v41 }
 0x314   :  { %v2227_v13 = vadd.f32 0.2548296, %v7057_v19  ;;  %9964 = vst [vmem:[#allocation199_spill] sm:$0xff] %v7199_v21  ;;  %v2228_v63 = vadd.f32 0.2548296, %v7060_v6  ;;  %v9965_v62 = vld [vmem:[#allocation259_spill] sm:$0xff] }
 0x315   :  { %v2229_v16 = vadd.f32 0.2548296, %v9965_v62  ;;  %v9966_v22 = vld [vmem:[#allocation261_spill] sm:$0xff]  ;;  %v9967_v34 = vld [vmem:[#allocation212_spill] sm:$0xff]  ;;  %v9969_v12 = vld [vmem:[#allocation263_spill] sm:$0xff] }
 0x316   :  { %v2230_v36 = vadd.f32 0.2548296, %v9966_v22  ;;  %v7205_v5 = vmul.f32 %v9967_v34, %v2191_v9  ;;  %v2231_v46 = vadd.f32 0.2548296, %v9969_v12  ;;  %v9970_v53 = vld [vmem:[#allocation265_spill] sm:$0xff]  ;;  %v9971_v17 = vld [vmem:[#allocation267_spill] sm:$0xff] }
 0x317   :  { %v2232_v60 = vadd.f32 0.2548296, %v9970_v53  ;;  %v2233_v41 = vadd.f32 0.2548296, %v9971_v17  ;;  %v9972_v37 = vld [vmem:[#allocation213_spill] sm:$0xff]  ;;  %v9975_v21 = vld [vmem:[#allocation271_spill] sm:$0xff] }
 0x318   :  { %9968 = vst [vmem:[#allocation255_spill] sm:$0xff] %v7205_v5  ;;  %v7211_v19 = vmul.f32 %v9972_v37, %v2192_v54  ;;  %v9974_v1 = vld [vmem:[#allocation269_spill] sm:$0xff]  ;;  %v2235_v6 = vadd.f32 0.2548296, %v9975_v21  ;;  %v9976_v3 = vld [vmem:[#allocation274_spill] sm:$0xff]  ;;  %v9979_v9 = vld [vmem:[#allocation275_spill] sm:$0xff] }
 0x319   :  { %v2234_v55 = vadd.f32 0.2548296, %v9974_v1  ;;  %v2236_v62 = vadd.f32 0.2548296, %v9976_v3  ;;  %v9977_v20 = vld [vmem:[#allocation214_spill] sm:$0xff]  ;;  %v9980_v5 = vld [vmem:[#allocation281_spill] sm:$0xff] }
 0x31a   :  { %9973 = vst [vmem:[#allocation257_spill] sm:$0xff] %v7211_v19  ;;  %v7217_v22 = vmul.f32 %v9977_v20, %v2193_v32  ;;  %v2237_v34 = vadd.f32 0.2548296, %v9979_v9  ;;  %v2238_v12 = vadd.f32 0.2548296, %v9980_v5  ;;  %v9981_v25 = vld [vmem:[#allocation282_spill] sm:$0xff] }
 0x31b   :  { %v2239_v53 = vadd.f32 0.2548296, %v9981_v25  ;;  %v9982_v15 = vld [vmem:[#allocation215_spill] sm:$0xff]  ;;  %v9985_v19 = vld [vmem:[#allocation216_spill] sm:$0xff]  ;;  %v9987_v21 = vld [vmem:[#allocation217_spill] sm:$0xff] }
 0x31c   :  { %9978 = vst [vmem:[#allocation202_spill] sm:$0xff] %v7217_v22  ;;  %v7223_v17 = vmul.f32 %v9982_v15, %v2194_v23  ;;  %v9984_v54 = vld [vmem:[#allocation283_spill] sm:$0xff]  ;;  %v7227_v1 = vmul.f32 %v9985_v19, %v2195_v61  ;;  %v7230_v57 = vmul.f32 %v9987_v21, %v2196_v7  ;;  %v9989_v3 = vld [vmem:[#allocation218_spill] sm:$0xff]  ;;  %v9993_v5 = vld [vmem:[#allocation220_spill] sm:$0xff] }
 0x31d   :  { %v2240_v37 = vadd.f32 0.2548296, %v9984_v54  ;;  %v7233_v32 = vmul.f32 %v9989_v3, %v2197_v42  ;;  %v9991_v20 = vld [vmem:[#allocation219_spill] sm:$0xff]  ;;  %v7239_v22 = vmul.f32 %v9993_v5, %v2199_v14  ;;  %v9995_v25 = vld [vmem:[#allocation221_spill] sm:$0xff]  ;;  %v9997_v15 = vld [vmem:[#allocation222_spill] sm:$0xff] }
 0x31e   :  { %9983 = vst [vmem:[#allocation203_spill] sm:$0xff] %v7223_v17  ;;  %9986 = vst [vmem:[#allocation204_spill] sm:$0xff] %v7227_v1  ;;  %v7236_v9 = vmul.f32 %v9991_v20, %v2198_v45  ;;  %v7242_v23 = vmul.f32 %v9995_v25, %v2200_v49  ;;  %v7245_v54 = vmul.f32 %v9997_v15, %v2201_v52  ;;  %v9999_v61 = vld [vmem:[#allocation223_spill] sm:$0xff]  ;;  %v10001_v7 = vld [vmem:[#allocation224_spill] sm:$0xff] }
 0x31f   :  { %9988 = vst [vmem:[#allocation205_spill] sm:$0xff] %v7230_v57  ;;  %9990 = vst [vmem:[#allocation206_spill] sm:$0xff] %v7233_v32  ;;  %v7248_v19 = vmul.f32 %v9999_v61, %v2202_v39  ;;  %v7251_v21 = vmul.f32 %v10001_v7, %v2203_v29  ;;  %v10003_v42 = vld [vmem:[#allocation225_spill] sm:$0xff]  ;;  %v10005_v45 = vld [vmem:[#allocation226_spill] sm:$0xff] }
 0x320   :  { %9992 = vst [vmem:[#allocation207_spill] sm:$0xff] %v7236_v9  ;;  %9994 = vst [vmem:[#allocation208_spill] sm:$0xff] %v7239_v22  ;;  %v7254_v3 = vmul.f32 %v10003_v42, %v2204_v18  ;;  %v7257_v20 = vmul.f32 %v10005_v45, %v2205_v4  ;;  %v10007_v14 = vld [vmem:[#allocation227_spill] sm:$0xff]  ;;  %v10009_v49 = vld [vmem:[#allocation228_spill] sm:$0xff] }
 0x321   :  { %9996 = vst [vmem:[#allocation209_spill] sm:$0xff] %v7242_v23  ;;  %9998 = vst [vmem:[#allocation194_spill] sm:$0xff] %v7245_v54  ;;  %v7260_v5 = vmul.f32 %v10007_v14, %v2206_v50  ;;  %v7263_v25 = vmul.f32 %v10009_v49, %v2207_v43  ;;  %v10011_v52 = vld [vmem:[#allocation229_spill] sm:$0xff]  ;;  %v10013_v39 = vld [vmem:[#allocation230_spill] sm:$0xff] }
 0x322   :  { %10000 = vst [vmem:[#allocation210_spill] sm:$0xff] %v7248_v19  ;;  %10002 = vst [vmem:[#allocation211_spill] sm:$0xff] %v7251_v21  ;;  %v7266_v15 = vmul.f32 %v10011_v52, %v2208_v10  ;;  %v7269_v61 = vmul.f32 %v10013_v39, %v2209_v33  ;;  %v10015_v29 = vld [vmem:[#allocation231_spill] sm:$0xff]  ;;  %v10017_v18 = vld [vmem:[#allocation232_spill] sm:$0xff] }
 0x323   :  { %10004 = vst [vmem:[#allocation195_spill] sm:$0xff] %v7254_v3  ;;  %10006 = vst [vmem:[#allocation259_spill] sm:$0xff] %v7257_v20  ;;  %v7272_v7 = vmul.f32 %v10015_v29, %v2210_v56  ;;  %v7275_v42 = vmul.f32 %v10017_v18, %v2211_v28  ;;  %v10019_v4 = vld [vmem:[#allocation233_spill] sm:$0xff]  ;;  %v10021_v50 = vld [vmem:[#allocation234_spill] sm:$0xff] }
 0x324   :  { %10008 = vst [vmem:[#allocation261_spill] sm:$0xff] %v7260_v5  ;;  %10010 = vst [vmem:[#allocation212_spill] sm:$0xff] %v7263_v25  ;;  %v7278_v45 = vmul.f32 %v10019_v4, %v2212_v27  ;;  %v7281_v14 = vmul.f32 %v10021_v50, %v2213_v59  ;;  %v10023_v43 = vld [vmem:[#allocation235_spill] sm:$0xff]  ;;  %v10025_v10 = vld [vmem:[#allocation236_spill] sm:$0xff] }
 0x325   :  { %10012 = vst [vmem:[#allocation263_spill] sm:$0xff] %v7266_v15  ;;  %10014 = vst [vmem:[#allocation265_spill] sm:$0xff] %v7269_v61  ;;  %v7284_v49 = vmul.f32 %v10023_v43, %v2214_v48  ;;  %v7287_v52 = vmul.f32 %v10025_v10, %v2215_v40  ;;  %v10027_v33 = vld [vmem:[#allocation237_spill] sm:$0xff]  ;;  %v10029_v56 = vld [vmem:[#allocation238_spill] sm:$0xff] }
 0x326   :  { %10016 = vst [vmem:[#allocation267_spill] sm:$0xff] %v7272_v7  ;;  %10018 = vst [vmem:[#allocation213_spill] sm:$0xff] %v7275_v42  ;;  %v7290_v39 = vmul.f32 %v10027_v33, %v2216_v58  ;;  %v7293_v29 = vmul.f32 %v10029_v56, %v2217_v24  ;;  %v10031_v28 = vld [vmem:[#allocation239_spill] sm:$0xff]  ;;  %v10033_v27 = vld [vmem:[#allocation240_spill] sm:$0xff] }
 0x327   :  { %10020 = vst [vmem:[#allocation269_spill] sm:$0xff] %v7278_v45  ;;  %10022 = vst [vmem:[#allocation271_spill] sm:$0xff] %v7281_v14  ;;  %v7296_v18 = vmul.f32 %v10031_v28, %v2218_v8  ;;  %v7299_v4 = vmul.f32 %v10033_v27, %v2219_v26  ;;  %v10035_v59 = vld [vmem:[#allocation241_spill] sm:$0xff]  ;;  %v10037_v48 = vld [vmem:[#allocation242_spill] sm:$0xff] }
 0x328   :  { %10024 = vst [vmem:[#allocation274_spill] sm:$0xff] %v7284_v49  ;;  %10026 = vst [vmem:[#allocation214_spill] sm:$0xff] %v7287_v52  ;;  %v7302_v50 = vmul.f32 %v10035_v59, %v2220_v30  ;;  %v7305_v43 = vmul.f32 %v10037_v48, %v2221_v47  ;;  %v10039_v40 = vld [vmem:[#allocation243_spill] sm:$0xff]  ;;  %v10041_v58 = vld [vmem:[#allocation244_spill] sm:$0xff] }
 0x329   :  { %10028 = vst [vmem:[#allocation275_spill] sm:$0xff] %v7290_v39  ;;  %10030 = vst [vmem:[#allocation281_spill] sm:$0xff] %v7293_v29  ;;  %v7308_v10 = vmul.f32 %v10039_v40, %v2222_v31  ;;  %v7311_v33 = vmul.f32 %v10041_v58, %v2223_v35  ;;  %v10043_v24 = vld [vmem:[#allocation245_spill] sm:$0xff]  ;;  %v10045_v8 = vld [vmem:[#allocation247_spill] sm:$0xff] }
 0x32a   :  { %10032 = vst [vmem:[#allocation282_spill] sm:$0xff] %v7296_v18  ;;  %10034 = vst [vmem:[#allocation215_spill] sm:$0xff] %v7299_v4  ;;  %v7314_v56 = vmul.f32 %v10043_v24, %v2224_v44  ;;  %v7317_v28 = vmul.f32 %v10045_v8, %v2225_v38  ;;  %v10047_v26 = vld [vmem:[#allocation249_spill] sm:$0xff]  ;;  %v10049_v30 = vld [vmem:[#allocation251_spill] sm:$0xff] }
 0x32b   :  { %10036 = vst [vmem:[#allocation283_spill] sm:$0xff] %v7302_v50  ;;  %10038 = vst [vmem:[#allocation216_spill] sm:$0xff] %v7305_v43  ;;  %v7320_v27 = vmul.f32 %v10047_v26, %v2226_v2  ;;  %v7323_v59 = vmul.f32 %v10049_v30, %v2227_v13  ;;  %v10051_v47 = vld [vmem:[#allocation252_spill] sm:$0xff]  ;;  %v10053_v31 = vld [vmem:[#allocation253_spill] sm:$0xff] }
 0x32c   :  { %10040 = vst [vmem:[#allocation217_spill] sm:$0xff] %v7308_v10  ;;  %10042 = vst [vmem:[#allocation218_spill] sm:$0xff] %v7311_v33  ;;  %v7326_v48 = vmul.f32 %v10051_v47, %v2228_v63  ;;  %v7329_v40 = vmul.f32 %v10053_v31, %v2229_v16  ;;  %v10055_v35 = vld [vmem:[#allocation254_spill] sm:$0xff]  ;;  %v10057_v44 = vld [vmem:[#allocation201_spill] sm:$0xff] }
 0x32d   :  { %10044 = vst [vmem:[#allocation219_spill] sm:$0xff] %v7314_v56  ;;  %10046 = vst [vmem:[#allocation220_spill] sm:$0xff] %v7317_v28  ;;  %v7332_v58 = vmul.f32 %v10055_v35, %v2230_v36  ;;  %v7335_v24 = vmul.f32 %v10057_v44, %v2231_v46  ;;  %v10059_v38 = vld [vmem:[#allocation256_spill] sm:$0xff]  ;;  %v10061_v2 = vld [vmem:[#allocation258_spill] sm:$0xff] }
 0x32e   :  { %10048 = vst [vmem:[#allocation221_spill] sm:$0xff] %v7320_v27  ;;  %10050 = vst [vmem:[#allocation222_spill] sm:$0xff] %v7323_v59  ;;  %v7338_v8 = vmul.f32 %v10059_v38, %v2232_v60  ;;  %v7341_v26 = vmul.f32 %v10061_v2, %v2233_v41  ;;  %v10063_v13 = vld [vmem:[#allocation260_spill] sm:$0xff]  ;;  %v10065_v63 = vld [vmem:[#allocation262_spill] sm:$0xff] }
 0x32f   :  { %10052 = vst [vmem:[#allocation223_spill] sm:$0xff] %v7326_v48  ;;  %10054 = vst [vmem:[#allocation224_spill] sm:$0xff] %v7329_v40  ;;  %v7344_v30 = vmul.f32 %v10063_v13, %v2234_v55  ;;  %v7347_v47 = vmul.f32 %v10065_v63, %v2235_v6  ;;  %v10067_v16 = vld [vmem:[#allocation264_spill] sm:$0xff]  ;;  %v10069_v36 = vld [vmem:[#allocation266_spill] sm:$0xff] }
 0x330   :  { %10056 = vst [vmem:[#allocation225_spill] sm:$0xff] %v7332_v58  ;;  %10058 = vst [vmem:[#allocation226_spill] sm:$0xff] %v7335_v24  ;;  %v7350_v31 = vmul.f32 %v10067_v16, %v2236_v62  ;;  %v7353_v35 = vmul.f32 %v10069_v36, %v2237_v34  ;;  %v10071_v46 = vld [vmem:[#allocation268_spill] sm:$0xff]  ;;  %v10073_v60 = vld [vmem:[#allocation270_spill] sm:$0xff] }
 0x331   :  { %10060 = vst [vmem:[#allocation227_spill] sm:$0xff] %v7338_v8  ;;  %10062 = vst [vmem:[#allocation228_spill] sm:$0xff] %v7341_v26  ;;  %v7356_v44 = vmul.f32 %v10071_v46, %v2238_v12  ;;  %v7359_v38 = vmul.f32 %v10073_v60, %v2239_v53  ;;  %v10075_v41 = vld [vmem:[#allocation272_spill] sm:$0xff]  ;;  %v10079_v63 = vld [vmem:[#allocation146_spill] sm:$0xff] }
 0x332   :  { %10064 = vst [vmem:[#allocation229_spill] sm:$0xff] %v7344_v30  ;;  %10066 = vst [vmem:[#allocation230_spill] sm:$0xff] %v7347_v47  ;;  %v7362_v2 = vmul.f32 %v10075_v41, %v2240_v37  ;;  %v10077_v55 = vld [vmem:[#allocation144_spill] sm:$0xff]  ;;  %v10078_v30 = vld [vmem:[#allocation145_spill] sm:$0xff]  ;;  %v2313_v47 = vsub.f32 0.0, %v10079_v63 }
 0x333   :  { %10068 = vst [vmem:[#allocation231_spill] sm:$0xff] %v7350_v31  ;;  %10070 = vst [vmem:[#allocation232_spill] sm:$0xff] %v7353_v35  ;;  %v2311_v13 = vsub.f32 0.0, %v10077_v55  ;;  %v2312_v6 = vsub.f32 0.0, %v10078_v30  ;;  %v10080_v62 = vld [vmem:[#allocation147_spill] sm:$0xff]  ;;  %v10081_v31 = vld [vmem:[#allocation148_spill] sm:$0xff] }
 0x334   :  { %10072 = vst [vmem:[#allocation233_spill] sm:$0xff] %v7356_v44  ;;  %10074 = vst [vmem:[#allocation234_spill] sm:$0xff] %v7359_v38  ;;  %v2314_v16 = vsub.f32 0.0, %v10080_v62  ;;  %v2315_v34 = vsub.f32 0.0, %v10081_v31  ;;  %v10082_v36 = vld [vmem:[#allocation149_spill] sm:$0xff]  ;;  %v10083_v12 = vld [vmem:[#allocation150_spill] sm:$0xff] }
 0x335   :  { %10076 = vst [vmem:[#allocation235_spill] sm:$0xff] %v7362_v2  ;;  %v2316_v35 = vsub.f32 0.0, %v10082_v36  ;;  %v2317_v46 = vsub.f32 0.0, %v10083_v12  ;;  %v10084_v44 = vld [vmem:[#allocation151_spill] sm:$0xff]  ;;  %v10085_v60 = vld [vmem:[#allocation152_spill] sm:$0xff]  ;;  %v10086_v37 = vld [vmem:[#allocation153_spill] sm:$0xff] }
 0x336   :  { %v2318_v53 = vsub.f32 0.0, %v10084_v44  ;;  %v2319_v38 = vsub.f32 0.0, %v10085_v60  ;;  %v2320_v41 = vsub.f32 0.0, %v10086_v37  ;;  %v10087_v2 = vld [vmem:[#allocation73_spill] sm:$0xff]  ;;  %v10088_v8 = vld [vmem:[#allocation154_spill] sm:$0xff]  ;;  %v10089_v58 = vld [vmem:[#allocation155_spill] sm:$0xff] }
 0x337   :  { %v2321_v26 = vsub.f32 0.0, %v10087_v2  ;;  %v2322_v24 = vsub.f32 0.0, %v10088_v8  ;;  %v2323_v40 = vsub.f32 0.0, %v10089_v58  ;;  %v10090_v48 = vld [vmem:[#allocation156_spill] sm:$0xff]  ;;  %v10091_v27 = vld [vmem:[#allocation157_spill] sm:$0xff]  ;;  %v10092_v56 = vld [vmem:[#allocation158_spill] sm:$0xff] }
 0x338   :  { %v2324_v59 = vsub.f32 0.0, %v10090_v48  ;;  %v2325_v28 = vsub.f32 0.0, %v10091_v27  ;;  %v2326_v33 = vsub.f32 0.0, %v10092_v56  ;;  %v10093_v10 = vld [vmem:[#allocation159_spill] sm:$0xff]  ;;  %v10094_v50 = vld [vmem:[#allocation160_spill] sm:$0xff]  ;;  %v10095_v18 = vld [vmem:[#allocation161_spill] sm:$0xff] }
 0x339   :  { %v2327_v43 = vsub.f32 0.0, %v10093_v10  ;;  %v2328_v4 = vsub.f32 0.0, %v10094_v50  ;;  %v2329_v29 = vsub.f32 0.0, %v10095_v18  ;;  %v10096_v39 = vld [vmem:[#allocation162_spill] sm:$0xff]  ;;  %v10097_v49 = vld [vmem:[#allocation163_spill] sm:$0xff]  ;;  %v10098_v45 = vld [vmem:[#allocation164_spill] sm:$0xff] }
 0x33a   :  { %v2330_v52 = vsub.f32 0.0, %v10096_v39  ;;  %v2331_v14 = vsub.f32 0.0, %v10097_v49  ;;  %v2332_v42 = vsub.f32 0.0, %v10098_v45  ;;  %v10099_v7 = vld [vmem:[#allocation165_spill] sm:$0xff]  ;;  %v10100_v15 = vld [vmem:[#allocation166_spill] sm:$0xff]  ;;  %v10101_v5 = vld [vmem:[#allocation167_spill] sm:$0xff] }
 0x33b   :  { %v2333_v61 = vsub.f32 0.0, %v10099_v7  ;;  %v2334_v25 = vsub.f32 0.0, %v10100_v15  ;;  %v2335_v20 = vsub.f32 0.0, %v10101_v5  ;;  %v10102_v3 = vld [vmem:[#allocation168_spill] sm:$0xff]  ;;  %v10103_v19 = vld [vmem:[#allocation169_spill] sm:$0xff]  ;;  %v10104_v23 = vld [vmem:[#allocation75_spill] sm:$0xff] }
 0x33c   :  { %v2336_v21 = vsub.f32 0.0, %v10102_v3  ;;  %v2337_v54 = vsub.f32 0.0, %v10103_v19  ;;  %v2338_v22 = vsub.f32 0.0, %v10104_v23  ;;  %v10105_v9 = vld [vmem:[#allocation170_spill] sm:$0xff]  ;;  %v10106_v57 = vld [vmem:[#allocation77_spill] sm:$0xff]  ;;  %v10107_v17 = vld [vmem:[#allocation171_spill] sm:$0xff] }
 0x33d   :  { %v2339_v32 = vsub.f32 0.0, %v10105_v9  ;;  %v2340_v1 = vsub.f32 0.0, %v10106_v57  ;;  %v2341_v11 = vsub.f32 0.0, %v10107_v17  ;;  %v10108_v0 = vld [vmem:[#allocation172_spill] sm:$0xff]  ;;  %v10109_v45 = vld [vmem:[#allocation79_spill] sm:$0xff]  ;;  %v10110_v49 = vld [vmem:[#allocation173_spill] sm:$0xff] }
 0x33e   :  { %v2342_v51 = vsub.f32 0.0, %v10108_v0  ;;  %v2343_v7 = vsub.f32 0.0, %v10109_v45  ;;  %v2344_v15 = vsub.f32 0.0, %v10110_v49  ;;  %v10111_v39 = vld [vmem:[#allocation14_spill] sm:$0xff]  ;;  %v10113_v50 = vld [vmem:[#allocation175_spill] sm:$0xff]  ;;  %v10114_v10 = vld [vmem:[#allocation81_spill] sm:$0xff] }
 0x33f   :  { %v2345_v5 = vsub.f32 0.0, %v10111_v39  ;;  %v10112_v18 = vld [vmem:[#allocation174_spill] sm:$0xff]  ;;  %v2347_v19 = vsub.f32 0.0, %v10113_v50  ;;  %v2348_v23 = vsub.f32 0.0, %v10114_v10  ;;  %v10115_v56 = vld [vmem:[#allocation176_spill] sm:$0xff]  ;;  %v10116_v27 = vld [vmem:[#allocation177_spill] sm:$0xff] }
 0x340   :  { %v2346_v3 = vsub.f32 0.0, %v10112_v18  ;;  %v2349_v9 = vsub.f32 0.0, %v10115_v56  ;;  %v2350_v57 = vsub.f32 0.0, %v10116_v27  ;;  %v10117_v48 = vld [vmem:[#allocation178_spill] sm:$0xff]  ;;  %v10118_v58 = vld [vmem:[#allocation179_spill] sm:$0xff]  ;;  %v10119_v8 = vld [vmem:[#allocation180_spill] sm:$0xff] }
 0x341   :  { %v2351_v17 = vsub.f32 0.0, %v10117_v48  ;;  %v2352_v0 = vsub.f32 0.0, %v10118_v58  ;;  %v2353_v45 = vsub.f32 0.0, %v10119_v8  ;;  %v10120_v2 = vld [vmem:[#allocation181_spill] sm:$0xff]  ;;  %v10121_v37 = vld [vmem:[#allocation182_spill] sm:$0xff]  ;;  %v10122_v60 = vld [vmem:[#allocation183_spill] sm:$0xff] }
 0x342   :  { %v2354_v49 = vsub.f32 0.0, %v10120_v2  ;;  %v2355_v39 = vsub.f32 0.0, %v10121_v37  ;;  %v2356_v18 = vsub.f32 0.0, %v10122_v60  ;;  %v10123_v44 = vld [vmem:[#allocation184_spill] sm:$0xff]  ;;  %v10124_v12 = vld [vmem:[#allocation185_spill] sm:$0xff]  ;;  %v10125_v36 = vld [vmem:[#allocation186_spill] sm:$0xff] }
 0x343   :  { %v2357_v50 = vsub.f32 0.0, %v10123_v44  ;;  %v2358_v10 = vsub.f32 0.0, %v10124_v12  ;;  %v2359_v56 = vsub.f32 0.0, %v10125_v36  ;;  %v10126_v31 = vld [vmem:[#allocation187_spill] sm:$0xff]  ;;  %v10127_v62 = vld [vmem:[#allocation188_spill] sm:$0xff]  ;;  %v10128_v63 = vld [vmem:[#allocation189_spill] sm:$0xff] }
 0x344   :  { %v2360_v27 = vsub.f32 0.0, %v10126_v31  ;;  %v2361_v48 = vsub.f32 0.0, %v10127_v62  ;;  %v2362_v58 = vsub.f32 0.0, %v10128_v63  ;;  %v10129_v30 = vld [vmem:[#allocation190_spill] sm:$0xff]  ;;  %v10130_v55 = vld [vmem:[#allocation191_spill] sm:$0xff]  ;;  %v10131_v37 = vld [vmem:[#allocation192_spill] sm:$0xff] }
 0x345   :  { %v2363_v8 = vsub.f32 0.0, %v10129_v30  ;;  %v2364_v2 = vsub.f32 0.0, %v10130_v55  ;;  %v2365_v60 = vsub.f32 0.0, %v10131_v37  ;;  %v10132_v44 = vld [vmem:[#allocation19_spill] sm:$0xff]  ;;  %v10133_v36 = vld [vmem:[#allocation21_spill] sm:$0xff] }
 0x346   :  { %v2366_v12 = vsub.f32 0.0, %v10132_v44  ;;  %v2367_v31 = vsub.f32 0.0, %v10133_v36  ;;  %v10135_v30 = vld [vmem:[#allocation141_spill] sm:$0xff]  ;;  %v10138_v44 = vld [vmem:[#allocation142_spill] sm:$0xff]  ;;  %v10141_v63 = vld [vmem:[#allocation143_spill] sm:$0xff] }
 0x347   :  { %v10136_v55 = vsub.f32 0.0, %v10135_v30  ;;  %v10139_v36 = vsub.f32 0.0, %v10138_v44 }
 0x349   :  { %v7425_v37 = vmul.f32 %v10136_v55, %v10135_v30  ;;  %v7430_v62 = vmul.f32 %v10139_v36, %v10138_v44  ;;  %v10142_v30 = vsub.f32 0.0, %v10141_v63  ;;  %v10146_v44 = vld [vmem:[#allocation145_spill] sm:$0xff] }
 0x34b   :  { %10137 = vst [vmem:[#allocation236_spill] sm:$0xff] %v7425_v37  ;;  %10140 = vst [vmem:[#allocation237_spill] sm:$0xff] %v7430_v62  ;;  %v7435_v55 = vmul.f32 %v10142_v30, %v10141_v63  ;;  %v10144_v37 = vld [vmem:[#allocation144_spill] sm:$0xff]  ;;  %v7441_v62 = vmul.f32 %v2312_v6, %v10146_v44  ;;  %v10148_v30 = vld [vmem:[#allocation146_spill] sm:$0xff] }
 0x34c   :  { %v7438_v36 = vmul.f32 %v2311_v13, %v10144_v37  ;;  %v7444_v63 = vmul.f32 %v2313_v47, %v10148_v30  ;;  %v10152_v37 = vld [vmem:[#allocation148_spill] sm:$0xff]  ;;  %v10154_v6 = vld [vmem:[#allocation149_spill] sm:$0xff]  ;;  %v10158_v47 = vld [vmem:[#allocation151_spill] sm:$0xff] }
 0x34d   :  { %10143 = vst [vmem:[#allocation238_spill] sm:$0xff] %v7435_v55  ;;  %10147 = vst [vmem:[#allocation240_spill] sm:$0xff] %v7441_v62  ;;  %v10150_v55 = vld [vmem:[#allocation147_spill] sm:$0xff]  ;;  %v7453_v44 = vmul.f32 %v2316_v35, %v10154_v6  ;;  %v10156_v62 = vld [vmem:[#allocation150_spill] sm:$0xff] }
 0x34e   :  { %10145 = vst [vmem:[#allocation239_spill] sm:$0xff] %v7438_v36  ;;  %10149 = vst [vmem:[#allocation241_spill] sm:$0xff] %v7444_v63  ;;  %v7447_v13 = vmul.f32 %v2314_v16, %v10150_v55  ;;  %v7450_v36 = vmul.f32 %v2315_v34, %v10152_v37  ;;  %v7456_v30 = vmul.f32 %v2317_v46, %v10156_v62  ;;  %v10159_v16 = vld [vmem:[#allocation152_spill] sm:$0xff]  ;;  %v10161_v37 = vld [vmem:[#allocation73_spill] sm:$0xff] }
 0x34f   :  { %10155 = vst [vmem:[#allocation244_spill] sm:$0xff] %v7453_v44  ;;  %v7459_v63 = vmul.f32 %v2318_v53, %v10158_v47  ;;  %v7462_v55 = vmul.f32 %v2319_v38, %v10159_v16  ;;  %v10162_v6 = vld [vmem:[#allocation154_spill] sm:$0xff]  ;;  %v10163_v44 = vld [vmem:[#allocation155_spill] sm:$0xff]  ;;  %v10164_v62 = vld [vmem:[#allocation156_spill] sm:$0xff] }
 0x350   :  { %10151 = vst [vmem:[#allocation242_spill] sm:$0xff] %v7447_v13  ;;  %10153 = vst [vmem:[#allocation243_spill] sm:$0xff] %v7450_v36  ;;  %v10160_v13 = vld [vmem:[#allocation153_spill] sm:$0xff]  ;;  %v7468_v36 = vmul.f32 %v2321_v26, %v10161_v37  ;;  %v7471_v35 = vmul.f32 %v2322_v24, %v10162_v6  ;;  %v7474_v46 = vmul.f32 %v2323_v40, %v10163_v44  ;;  %v10166_v38 = vld [vmem:[#allocation158_spill] sm:$0xff] }
 0x351   :  { %10157 = vst [vmem:[#allocation245_spill] sm:$0xff] %v7456_v30  ;;  %v7465_v34 = vmul.f32 %v2320_v41, %v10160_v13  ;;  %v7477_v30 = vmul.f32 %v2324_v59, %v10164_v62  ;;  %v10165_v53 = vld [vmem:[#allocation157_spill] sm:$0xff]  ;;  %v7483_v16 = vmul.f32 %v2326_v33, %v10166_v38  ;;  %v10167_v41 = vld [vmem:[#allocation159_spill] sm:$0xff]  ;;  %v10168_v26 = vld [vmem:[#allocation160_spill] sm:$0xff] }
 0x352   :  { %v7480_v47 = vmul.f32 %v2325_v28, %v10165_v53  ;;  %v7486_v13 = vmul.f32 %v2327_v43, %v10167_v41  ;;  %v7489_v37 = vmul.f32 %v2328_v4, %v10168_v26  ;;  %v10169_v24 = vld [vmem:[#allocation161_spill] sm:$0xff]  ;;  %v10170_v40 = vld [vmem:[#allocation162_spill] sm:$0xff]  ;;  %v10171_v59 = vld [vmem:[#allocation163_spill] sm:$0xff] }
 0x353   :  { %v7492_v6 = vmul.f32 %v2329_v29, %v10169_v24  ;;  %v7495_v44 = vmul.f32 %v2330_v52, %v10170_v40  ;;  %v7498_v62 = vmul.f32 %v2331_v14, %v10171_v59  ;;  %v10172_v28 = vld [vmem:[#allocation164_spill] sm:$0xff]  ;;  %v10173_v33 = vld [vmem:[#allocation165_spill] sm:$0xff]  ;;  %v10174_v43 = vld [vmem:[#allocation166_spill] sm:$0xff] }
 0x354   :  { %v7501_v53 = vmul.f32 %v2332_v42, %v10172_v28  ;;  %v7504_v38 = vmul.f32 %v2333_v61, %v10173_v33  ;;  %v7507_v41 = vmul.f32 %v2334_v25, %v10174_v43  ;;  %v10175_v4 = vld [vmem:[#allocation167_spill] sm:$0xff]  ;;  %v10176_v29 = vld [vmem:[#allocation168_spill] sm:$0xff]  ;;  %v10177_v52 = vld [vmem:[#allocation169_spill] sm:$0xff] }
 0x355   :  { %v7510_v26 = vmul.f32 %v2335_v20, %v10175_v4  ;;  %v7513_v24 = vmul.f32 %v2336_v21, %v10176_v29  ;;  %v7516_v40 = vmul.f32 %v2337_v54, %v10177_v52  ;;  %v10178_v14 = vld [vmem:[#allocation75_spill] sm:$0xff]  ;;  %v10179_v42 = vld [vmem:[#allocation170_spill] sm:$0xff]  ;;  %v10180_v61 = vld [vmem:[#allocation77_spill] sm:$0xff] }
 0x356   :  { %v7519_v59 = vmul.f32 %v2338_v22, %v10178_v14  ;;  %v7522_v28 = vmul.f32 %v2339_v32, %v10179_v42  ;;  %v7525_v33 = vmul.f32 %v2340_v1, %v10180_v61  ;;  %v10181_v25 = vld [vmem:[#allocation171_spill] sm:$0xff]  ;;  %v10182_v20 = vld [vmem:[#allocation172_spill] sm:$0xff]  ;;  %v10184_v54 = vld [vmem:[#allocation173_spill] sm:$0xff] }
 0x357   :  { %v7528_v43 = vmul.f32 %v2341_v11, %v10181_v25  ;;  %v7531_v4 = vmul.f32 %v2342_v51, %v10182_v20  ;;  %v10183_v21 = vld [vmem:[#allocation79_spill] sm:$0xff]  ;;  %v7537_v52 = vmul.f32 %v2344_v15, %v10184_v54  ;;  %v10185_v22 = vld [vmem:[#allocation14_spill] sm:$0xff]  ;;  %v10188_v11 = vld [vmem:[#allocation81_spill] sm:$0xff] }
 0x358   :  { %v7534_v29 = vmul.f32 %v2343_v7, %v10183_v21  ;;  %v7540_v14 = vmul.f32 %v2345_v5, %v10185_v22  ;;  %v10186_v32 = vld [vmem:[#allocation174_spill] sm:$0xff]  ;;  %v10187_v1 = vld [vmem:[#allocation175_spill] sm:$0xff]  ;;  %v7549_v25 = vmul.f32 %v2348_v23, %v10188_v11  ;;  %v10189_v51 = vld [vmem:[#allocation176_spill] sm:$0xff] }
 0x359   :  { %v7543_v42 = vmul.f32 %v2346_v3, %v10186_v32  ;;  %v7546_v61 = vmul.f32 %v2347_v19, %v10187_v1  ;;  %v7552_v20 = vmul.f32 %v2349_v9, %v10189_v51  ;;  %v10190_v7 = vld [vmem:[#allocation177_spill] sm:$0xff]  ;;  %v10191_v15 = vld [vmem:[#allocation178_spill] sm:$0xff]  ;;  %v10192_v5 = vld [vmem:[#allocation179_spill] sm:$0xff] }
 0x35a   :  { %v7555_v21 = vmul.f32 %v2350_v57, %v10190_v7  ;;  %v7558_v54 = vmul.f32 %v2351_v17, %v10191_v15  ;;  %v7561_v22 = vmul.f32 %v2352_v0, %v10192_v5  ;;  %v10193_v3 = vld [vmem:[#allocation180_spill] sm:$0xff]  ;;  %v10194_v19 = vld [vmem:[#allocation181_spill] sm:$0xff]  ;;  %v10195_v23 = vld [vmem:[#allocation182_spill] sm:$0xff] }
 0x35b   :  { %v7564_v32 = vmul.f32 %v2353_v45, %v10193_v3  ;;  %v7567_v1 = vmul.f32 %v2354_v49, %v10194_v19  ;;  %v7570_v11 = vmul.f32 %v2355_v39, %v10195_v23  ;;  %v10196_v9 = vld [vmem:[#allocation183_spill] sm:$0xff]  ;;  %v10197_v57 = vld [vmem:[#allocation184_spill] sm:$0xff]  ;;  %v10198_v17 = vld [vmem:[#allocation185_spill] sm:$0xff] }
 0x35c   :  { %v7573_v51 = vmul.f32 %v2356_v18, %v10196_v9  ;;  %v7576_v7 = vmul.f32 %v2357_v50, %v10197_v57  ;;  %v7579_v15 = vmul.f32 %v2358_v10, %v10198_v17  ;;  %v10199_v0 = vld [vmem:[#allocation186_spill] sm:$0xff]  ;;  %v10200_v45 = vld [vmem:[#allocation187_spill] sm:$0xff]  ;;  %v10202_v49 = vld [vmem:[#allocation188_spill] sm:$0xff] }
 0x35d   :  { %v7582_v5 = vmul.f32 %v2359_v56, %v10199_v0  ;;  %v7585_v3 = vmul.f32 %v2360_v27, %v10200_v45  ;;  %v7588_v19 = vmul.f32 %v2361_v48, %v10202_v49  ;;  %v10204_v39 = vld [vmem:[#allocation189_spill] sm:$0xff]  ;;  %v10206_v18 = vld [vmem:[#allocation190_spill] sm:$0xff]  ;;  %v10208_v50 = vld [vmem:[#allocation191_spill] sm:$0xff] }
 0x35e   :  { %v7591_v23 = vmul.f32 %v2362_v58, %v10204_v39  ;;  %v7594_v9 = vmul.f32 %v2363_v8, %v10206_v18  ;;  %v7597_v57 = vmul.f32 %v2364_v2, %v10208_v50  ;;  %v10210_v10 = vld [vmem:[#allocation192_spill] sm:$0xff]  ;;  %v10212_v56 = vld [vmem:[#allocation19_spill] sm:$0xff]  ;;  %v10214_v27 = vld [vmem:[#allocation21_spill] sm:$0xff] }
 0x35f   :  { %10201 = vst [vmem:[#allocation247_spill] sm:$0xff] %v7585_v3  ;;  %10203 = vst [vmem:[#allocation249_spill] sm:$0xff] %v7588_v19  ;;  %v7600_v17 = vmul.f32 %v2365_v60, %v10210_v10  ;;  %v7603_v0 = vmul.f32 %v2366_v12, %v10212_v56  ;;  %v7606_v45 = vmul.f32 %v2367_v31, %v10214_v27  ;;  %v10216_v48 = vld [vmem:[#allocation276_spill] sm:$0xff]  ;;  %v10217_v19 = vld [vmem:[#allocation273_spill] sm:$0xff] }
 0x360   :  { %10205 = vst [vmem:[#allocation251_spill] sm:$0xff] %v7591_v23  ;;  %10207 = vst [vmem:[#allocation252_spill] sm:$0xff] %v7594_v9  ;;  %v2433_v49 = vmul.f32 1.442695, %v10216_v48  ;;  %v2435_v58 = vmul.f32 1.442695, %v10217_v19 }
 0x361   :  { %10209 = vst [vmem:[#allocation253_spill] sm:$0xff] %v7597_v57  ;;  %10211 = vst [vmem:[#allocation254_spill] sm:$0xff] %v7600_v17  ;;  %v10218_v39 = vld [vmem:[#allocation277_spill] sm:$0xff]  ;;  %v10222_v50 = vld [vmem:[#allocation236_spill] sm:$0xff] }
 0x362   :  { %10213 = vst [vmem:[#allocation201_spill] sm:$0xff] %v7603_v0  ;;  %10215 = vst [vmem:[#allocation256_spill] sm:$0xff] %v7606_v45  ;;  %v2437_v23 = vmul.f32 1.442695, %v10218_v39  ;;  %v10219_v8 = vld [vmem:[#allocation193_spill] sm:$0xff]  ;;  %v10224_v12 = vld [vmem:[#allocation238_spill] sm:$0xff]  ;;  %3302 = vpow2.f32 %v2433_v49 }
 0x363   :  { %v10220_v18 = vsub.f32 0.0, %v10219_v8  ;;  %v2439_v60 = vmul.f32 1.442695, %v10222_v50  ;;  %v10223_v10 = vld [vmem:[#allocation237_spill] sm:$0xff]  ;;  %v2443_v56 = vmul.f32 1.442695, %v10224_v12  ;;  %3304 = vpow2.f32 %v2435_v58 }
 0x364   :  { %v2441_v17 = vmul.f32 1.442695, %v10223_v10  ;;  %v10225_v31 = vld [vmem:[#allocation239_spill] sm:$0xff]  ;;  %v10226_v45 = vld [vmem:[#allocation240_spill] sm:$0xff]  ;;  %v10227_v0 = vld [vmem:[#allocation241_spill] sm:$0xff]  ;;  %3306 = vpow2.f32 %v2437_v23 }
 0x365   :  { %v7614_v2 = vmul.f32 %v10220_v18, %v10219_v8  ;;  %v2445_v27 = vmul.f32 1.442695, %v10225_v31  ;;  %v2447_v48 = vmul.f32 1.442695, %v10226_v45  ;;  %v2449_v19 = vmul.f32 1.442695, %v10227_v0 }
 0x366   :  { %v10228_v39 = vld [vmem:[#allocation242_spill] sm:$0xff]  ;;  %v10229_v9 = vld [vmem:[#allocation243_spill] sm:$0xff]  ;;  %v10230_v8 = vld [vmem:[#allocation244_spill] sm:$0xff]  ;;  %v2459_v10 = vmul.f32 1.442695, %v7459_v63  ;;  %3308 = vpow2.f32 %v2439_v60 }
 0x367   :  { %10221 = vst [vmem:[#allocation258_spill] sm:$0xff] %v7614_v2  ;;  %v2451_v57 = vmul.f32 1.442695, %v10228_v39  ;;  %v2453_v3 = vmul.f32 1.442695, %v10229_v9  ;;  %v10231_v50 = vld [vmem:[#allocation245_spill] sm:$0xff]  ;;  %3310 = vpow2.f32 %v2441_v17 }
 0x368   :  { %v2455_v18 = vmul.f32 1.442695, %v10230_v8  ;;  %v2457_v2 = vmul.f32 1.442695, %v10231_v50  ;;  %v2461_v49 = vmul.f32 1.442695, %v7462_v55  ;;  %3312 = vpow2.f32 %v2443_v56 }
 0x369   :  { %v2463_v12 = vmul.f32 1.442695, %v7465_v34  ;;  %v2465_v45 = vmul.f32 1.442695, %v7468_v36  ;;  %v2467_v0 = vmul.f32 1.442695, %v7471_v35  ;;  %3314 = vpow2.f32 %v2445_v27 }
 0x36a   :  { %v7632_v58 = vmul.f32 1.442695, %v7474_v46  ;;  %v7635_v9 = vmul.f32 1.442695, %v7477_v30  ;;  %v7638_v23 = vmul.f32 1.442695, %v7480_v47  ;;  %3316 = vpow2.f32 %v2447_v48 }
 0x36b   :  { %v7641_v63 = vmul.f32 1.442695, %v7483_v16  ;;  %v7644_v55 = vmul.f32 1.442695, %v7486_v13  ;;  %v7647_v36 = vmul.f32 1.442695, %v7489_v37  ;;  %3318 = vpow2.f32 %v2449_v19 }
 0x36c   :  { %v7650_v34 = vmul.f32 1.442695, %v7492_v6  ;;  %v7653_v30 = vmul.f32 1.442695, %v7495_v44  ;;  %v7656_v35 = vmul.f32 1.442695, %v7498_v62  ;;  %3320 = vpow2.f32 %v2451_v57 }
 0x36d   :  { %v7659_v46 = vmul.f32 1.442695, %v7501_v53  ;;  %v7662_v47 = vmul.f32 1.442695, %v7504_v38  ;;  %v7665_v16 = vmul.f32 1.442695, %v7507_v41  ;;  %v3303_v38 = vpop.eup %3302  ;;  %3322 = vpow2.f32 %v2453_v3 }
 0x36e   :  { %v7668_v13 = vmul.f32 1.442695, %v7510_v26  ;;  %v7671_v37 = vmul.f32 1.442695, %v7513_v24  ;;  %v7674_v6 = vmul.f32 1.442695, %v7516_v40  ;;  %v3305_v40 = vpop.eup %3304  ;;  %3324 = vpow2.f32 %v2455_v18 }
 0x36f   :  { %v7677_v44 = vmul.f32 1.442695, %v7519_v59  ;;  %v7680_v62 = vmul.f32 1.442695, %v7522_v28  ;;  %v7683_v53 = vmul.f32 1.442695, %v7525_v33  ;;  %v3307_v3 = vpop.eup %3306  ;;  %3326 = vpow2.f32 %v2457_v2 }
 0x370   :  { %v7686_v41 = vmul.f32 1.442695, %v7528_v43  ;;  %v7689_v26 = vmul.f32 1.442695, %v7531_v4  ;;  %v7692_v24 = vmul.f32 1.442695, %v7534_v29  ;;  %v3309_v57 = vpop.eup %3308  ;;  %3328 = vpow2.f32 %v2459_v10 }
 0x371   :  { %v7695_v59 = vmul.f32 1.442695, %v7537_v52  ;;  %v7698_v28 = vmul.f32 1.442695, %v7540_v14  ;;  %v7701_v33 = vmul.f32 1.442695, %v7543_v42  ;;  %v3311_v17 = vpop.eup %3310  ;;  %3330 = vpow2.f32 %v2461_v49 }
 0x372   :  { %v7704_v43 = vmul.f32 1.442695, %v7546_v61  ;;  %v7707_v4 = vmul.f32 1.442695, %v7549_v25  ;;  %v7710_v29 = vmul.f32 1.442695, %v7552_v20  ;;  %v3313_v2 = vpop.eup %3312  ;;  %3332 = vpow2.f32 %v2463_v12 }
 0x373   :  { %v7713_v52 = vmul.f32 1.442695, %v7555_v21  ;;  %v7716_v14 = vmul.f32 1.442695, %v7558_v54  ;;  %v7719_v42 = vmul.f32 1.442695, %v7561_v22  ;;  %v3315_v60 = vpop.eup %3314  ;;  %3334 = vpow2.f32 %v2465_v45 }
 0x374   :  { %v7722_v61 = vmul.f32 1.442695, %v7564_v32  ;;  %v7725_v25 = vmul.f32 1.442695, %v7567_v1  ;;  %v7728_v20 = vmul.f32 1.442695, %v7570_v11  ;;  %v3317_v27 = vpop.eup %3316  ;;  %3336 = vpow2.f32 %v2467_v0 }
 0x375   :  { %v7731_v21 = vmul.f32 1.442695, %v7573_v51  ;;  %v7734_v54 = vmul.f32 1.442695, %v7576_v7  ;;  %v7737_v22 = vmul.f32 1.442695, %v7579_v15  ;;  %v3319_v8 = vpop.eup %3318  ;;  %3338 = vpow2.f32 %v7632_v58 }
 0x376   :  { %v7740_v32 = vmul.f32 1.442695, %v7582_v5  ;;  %v10232_v1 = vld [vmem:[#allocation247_spill] sm:$0xff]  ;;  %v10233_v11 = vld [vmem:[#allocation249_spill] sm:$0xff]  ;;  %v10235_v7 = vld [vmem:[#allocation252_spill] sm:$0xff]  ;;  %v3321_v45 = vpop.eup %3320  ;;  %3340 = vpow2.f32 %v7635_v9 }
 0x377   :  { %v7743_v56 = vmul.f32 1.442695, %v10232_v1  ;;  %v7746_v31 = vmul.f32 1.442695, %v10233_v11  ;;  %v10234_v51 = vld [vmem:[#allocation251_spill] sm:$0xff]  ;;  %v10236_v15 = vld [vmem:[#allocation253_spill] sm:$0xff]  ;;  %3342 = vpow2.f32 %v7638_v23 }
 0x378   :  { %v7749_v48 = vmul.f32 1.442695, %v10234_v51  ;;  %v7752_v19 = vmul.f32 1.442695, %v10235_v7  ;;  %v7755_v39 = vmul.f32 1.442695, %v10236_v15  ;;  %v3323_v15 = vpop.eup %3322  ;;  %3344 = vpow2.f32 %v7641_v63 }
 0x379   :  { %v10237_v5 = vld [vmem:[#allocation254_spill] sm:$0xff]  ;;  %v10238_v50 = vld [vmem:[#allocation201_spill] sm:$0xff]  ;;  %v10240_v49 = vld [vmem:[#allocation256_spill] sm:$0xff]  ;;  %3346 = vpow2.f32 %v7644_v55 }
 0x37a   :  { %v7759_v18 = vmul.f32 1.442695, %v10237_v5  ;;  %v7762_v10 = vmul.f32 1.442695, %v10238_v50  ;;  %v7765_v12 = vmul.f32 1.442695, %v10240_v49  ;;  %3348 = vpow2.f32 %v7647_v36 }
 0x37b   :  { %v10242_v0 = vld [vmem:[#allocation258_spill] sm:$0xff]  ;;  %v10245_v7 = vld [vmem:[#allocation279_spill] sm:$0xff]  ;;  %v10247_v49 = vld [vmem:[#allocation280_spill] sm:$0xff]  ;;  %3350 = vpow2.f32 %v7650_v34 }
 0x37c   :  { %10239 = vst [vmem:[#allocation260_spill] sm:$0xff] %v7762_v10  ;;  %10241 = vst [vmem:[#allocation262_spill] sm:$0xff] %v7765_v12  ;;  %v7769_v1 = vmul.f32 1.442695, %v10242_v0  ;;  %v10244_v11 = vld [vmem:[#allocation278_spill] sm:$0xff]  ;;  %v7775_v58 = vmul.f32 %v3305_v40, %v10245_v7  ;;  %v10246_v5 = vld [vmem:[#allocation139_spill] sm:$0xff]  ;;  %v7782_v12 = vmul.f32 %v3309_v57, %v10247_v49  ;;  %v3325_v0 = vpop.eup %3324  ;;  %3352 = vpow2.f32 %v7653_v30 }
 0x37d   :  { %v7772_v51 = vmul.f32 %v3303_v38, %v10244_v11  ;;  %v7779_v50 = vmul.f32 %v3307_v3, %v10246_v5  ;;  %v10248_v10 = vld [vmem:[#allocation140_spill] sm:$0xff]  ;;  %v10249_v38 = vld [vmem:[#allocation246_spill] sm:$0xff]  ;;  %v3327_v3 = vpop.eup %3326  ;;  %v10254_v49 = vld [vmem:[#allocation197_spill] sm:$0xff]  ;;  %3354 = vpow2.f32 %v7656_v35 }
 0x37e   :  { %10243 = vst [vmem:[#allocation264_spill] sm:$0xff] %v7769_v1  ;;  %v7785_v9 = vmul.f32 %v3311_v17, %v10248_v10  ;;  %v7789_v11 = vmul.f32 %v3313_v2, %v10249_v38  ;;  %v10250_v40 = vld [vmem:[#allocation248_spill] sm:$0xff]  ;;  %v10251_v1 = vld [vmem:[#allocation138_spill] sm:$0xff]  ;;  %v7805_v63 = vmul.f32 %v3323_v15, %v10254_v49  ;;  %v3329_v2 = vpop.eup %3328  ;;  %v2626_v15 = vsub.f32 1.0, %v7775_v58  ;;  %v10258_v36 = vld [vmem:[#allocation255_spill] sm:$0xff] }
 0x37f   :  { %v7792_v7 = vmul.f32 %v3315_v60, %v10250_v40  ;;  %v7795_v23 = vmul.f32 %v3317_v27, %v10251_v1  ;;  %v10252_v57 = vld [vmem:[#allocation196_spill] sm:$0xff]  ;;  %v10253_v17 = vld [vmem:[#allocation250_spill] sm:$0xff]  ;;  %v2625_v55 = vsub.f32 1.0, %v7772_v51  ;;  %v3331_v40 = vpop.eup %3330  ;;  %v10259_v34 = vld [vmem:[#allocation257_spill] sm:$0xff]  ;;  %3356 = vpow2.f32 %v7659_v46 }
 0x380   :  { %v7799_v5 = vmul.f32 %v3319_v8, %v10252_v57  ;;  %v7802_v10 = vmul.f32 %v3321_v45, %v10253_v17  ;;  %v10255_v60 = vld [vmem:[#allocation198_spill] sm:$0xff]  ;;  %v10256_v27 = vld [vmem:[#allocation200_spill] sm:$0xff]  ;;  %v10257_v8 = vld [vmem:[#allocation199_spill] sm:$0xff]  ;;  %v2627_v57 = vsub.f32 1.0, %v7779_v50  ;;  %v3333_v17 = vpop.eup %3332  ;;  %v2629_v51 = vsub.f32 1.0, %v7785_v9 }
 0x381   :  { %v7809_v38 = vmul.f32 %v3325_v0, %v10255_v60  ;;  %v7812_v1 = vmul.f32 %v3327_v3, %v10256_v27  ;;  %v7817_v45 = vmul.f32 %v3329_v2, %v10257_v8  ;;  %v7823_v0 = vmul.f32 %v3331_v40, %v10258_v36  ;;  %v3335_v49 = vpop.eup %3334  ;;  %v10260_v30 = vld [vmem:[#allocation202_spill] sm:$0xff]  ;;  %v10261_v35 = vld [vmem:[#allocation203_spill] sm:$0xff]  ;;  %v10262_v46 = vld [vmem:[#allocation204_spill] sm:$0xff] }
 0x382   :  { %v2628_v3 = vsub.f32 1.0, %v7782_v12  ;;  %v7829_v2 = vmul.f32 %v3333_v17, %v10259_v34  ;;  %v3337_v60 = vpop.eup %3336  ;;  %v7835_v27 = vmul.f32 %v3335_v49, %v10260_v30  ;;  %3358 = vpow2.f32 %v7662_v47  ;;  %v10263_v47 = vld [vmem:[#allocation205_spill] sm:$0xff]  ;;  %v10270_v40 = vld [vmem:[#allocation76_spill] sm:$0xff] }
 0x383   :  { %v3339_v8 = vpop.eup %3338  ;;  %v7841_v17 = vmul.f32 %v3337_v60, %v10261_v35  ;;  %3360 = vpow2.f32 %v7665_v16  ;;  %v10264_v16 = vld [vmem:[#allocation206_spill] sm:$0xff] }
 0x384   :  { %v3341_v50 = vpop.eup %3340  ;;  %v7847_v49 = vmul.f32 %v3339_v8, %v10262_v46  ;;  %3362 = vpow2.f32 %v7668_v13  ;;  %v10265_v13 = vld [vmem:[#allocation207_spill] sm:$0xff] }
 0x385   :  { %v3343_v12 = vpop.eup %3342  ;;  %v7853_v60 = vmul.f32 %v3341_v50, %v10263_v47  ;;  %3364 = vpow2.f32 %v7671_v37  ;;  %v10266_v37 = vld [vmem:[#allocation208_spill] sm:$0xff]  ;;  %v10268_v47 = vld [vmem:[#allocation74_spill] sm:$0xff] }
 0x386   :  { %v3345_v36 = vpop.eup %3344  ;;  %v7859_v8 = vmul.f32 %v3343_v12, %v10264_v16  ;;  %3366 = vpow2.f32 %v7674_v6  ;;  %v10267_v6 = vld [vmem:[#allocation209_spill] sm:$0xff]  ;;  %v7881_v34 = vmul.f32 %v2625_v55, %v10268_v47  ;;  %v7889_v16 = vmul.f32 %v2626_v15, %v10270_v40  ;;  %v10274_v40 = vld [vmem:[#allocation82_spill] sm:$0xff] }
 0x387   :  { %v3347_v30 = vpop.eup %3346  ;;  %v7865_v50 = vmul.f32 %v3345_v36, %v10265_v13  ;;  %3368 = vpow2.f32 %v7677_v44  ;;  %v10269_v44 = vld [vmem:[#allocation194_spill] sm:$0xff]  ;;  %v10272_v47 = vld [vmem:[#allocation13_spill] sm:$0xff] }
 0x388   :  { %v3349_v35 = vpop.eup %3348  ;;  %v7871_v12 = vmul.f32 %v3347_v30, %v10266_v37  ;;  %3370 = vpow2.f32 %v7680_v62  ;;  %v7897_v13 = vmul.f32 %v2627_v57, %v10272_v47  ;;  %v7905_v37 = vmul.f32 %v2628_v3, %v10274_v40  ;;  %v10276_v47 = vld [vmem:[#allocation83_spill] sm:$0xff]  ;;  %v10278_v40 = vld [vmem:[#allocation84_spill] sm:$0xff]  ;;  %v10280_v57 = vld [vmem:[#allocation261_spill] sm:$0xff] }
 0x389   :  { %v3351_v46 = vpop.eup %3350  ;;  %v7877_v36 = vmul.f32 %v3349_v35, %v10267_v6  ;;  %3372 = vpow2.f32 %v7683_v53  ;;  %v10271_v35 = vld [vmem:[#allocation210_spill] sm:$0xff]  ;;  %v10283_v3 = vld [vmem:[#allocation212_spill] sm:$0xff] }
 0x38a   :  { %v3353_v58 = vpop.eup %3352  ;;  %v7885_v30 = vmul.f32 %v3351_v46, %v10269_v44  ;;  %3374 = vpow2.f32 %v7686_v41  ;;  %v10273_v46 = vld [vmem:[#allocation211_spill] sm:$0xff] }
 0x38b   :  { %v3355_v62 = vpop.eup %3354  ;;  %v7893_v6 = vmul.f32 %v3353_v58, %v10271_v35  ;;  %v2648_v55 = vsub.f32 1.0, %v7877_v36  ;;  %3376 = vpow2.f32 %v7689_v26  ;;  %v10275_v58 = vld [vmem:[#allocation195_spill] sm:$0xff]  ;;  %v7915_v26 = vmul.f32 %v2629_v51, %v10276_v47  ;;  %v10281_v47 = vld [vmem:[#allocation85_spill] sm:$0xff] }
 0x38c   :  { %v3357_v53 = vpop.eup %3356  ;;  %v7901_v44 = vmul.f32 %v3355_v62, %v10273_v46  ;;  %3378 = vpow2.f32 %v7692_v24  ;;  %v10277_v46 = vld [vmem:[#allocation259_spill] sm:$0xff]  ;;  %v10279_v24 = vsub.f32 1.0, %v7789_v11 }
 0x38d   :  { %v3359_v41 = vpop.eup %3358  ;;  %v7909_v35 = vmul.f32 %v3357_v53, %v10275_v58  ;;  %3380 = vpow2.f32 %v7695_v59  ;;  %v10282_v59 = vsub.f32 1.0, %v7792_v7  ;;  %v10286_v51 = vld [vmem:[#allocation263_spill] sm:$0xff] }
 0x38e   :  { %v3361_v62 = vpop.eup %3360  ;;  %v7919_v15 = vmul.f32 %v3359_v41, %v10277_v46  ;;  %v7925_v53 = vmul.f32 %v10279_v24, %v10278_v40  ;;  %3382 = vpow2.f32 %v7698_v28  ;;  %v10284_v24 = vld [vmem:[#allocation86_spill] sm:$0xff]  ;;  %v10285_v28 = vsub.f32 1.0, %v7795_v23  ;;  %v10289_v40 = vld [vmem:[#allocation265_spill] sm:$0xff] }
 0x38f   :  { %v3363_v58 = vpop.eup %3362  ;;  %v7929_v9 = vmul.f32 %v3361_v62, %v10280_v57  ;;  %v7935_v41 = vmul.f32 %v10282_v59, %v10281_v47  ;;  %3384 = vpow2.f32 %v7701_v33  ;;  %v10287_v59 = vld [vmem:[#allocation87_spill] sm:$0xff]  ;;  %v10288_v33 = vsub.f32 1.0, %v7799_v5 }
 0x390   :  { %v3365_v46 = vpop.eup %3364  ;;  %v7939_v11 = vmul.f32 %v3363_v58, %v10283_v3  ;;  %v7945_v57 = vmul.f32 %v10285_v28, %v10284_v24  ;;  %3386 = vpow2.f32 %v7704_v43  ;;  %v10290_v28 = vld [vmem:[#allocation88_spill] sm:$0xff]  ;;  %v10291_v43 = vsub.f32 1.0, %v7802_v10  ;;  %v10292_v47 = vld [vmem:[#allocation267_spill] sm:$0xff]  ;;  %v10295_v24 = vld [vmem:[#allocation213_spill] sm:$0xff] }
 0x391   :  { %v3367_v62 = vpop.eup %3366  ;;  %v7949_v7 = vmul.f32 %v3365_v46, %v10286_v51  ;;  %v7955_v3 = vmul.f32 %v10288_v33, %v10287_v59  ;;  %3388 = vpow2.f32 %v7707_v4  ;;  %v10293_v33 = vld [vmem:[#allocation89_spill] sm:$0xff]  ;;  %v10294_v4 = vsub.f32 1.0, %v7805_v63 }
 0x392   :  { %v3369_v58 = vpop.eup %3368  ;;  %v7959_v23 = vmul.f32 %v3367_v62, %v10289_v40  ;;  %v7965_v51 = vmul.f32 %v10291_v43, %v10290_v28  ;;  %3390 = vpow2.f32 %v7710_v29  ;;  %v10296_v43 = vld [vmem:[#allocation90_spill] sm:$0xff]  ;;  %v10297_v29 = vsub.f32 1.0, %v7809_v38  ;;  %v10298_v59 = vld [vmem:[#allocation269_spill] sm:$0xff]  ;;  %v10301_v28 = vld [vmem:[#allocation271_spill] sm:$0xff] }
 0x393   :  { %v3371_v46 = vpop.eup %3370  ;;  %v7969_v5 = vmul.f32 %v3369_v58, %v10292_v47  ;;  %v7975_v40 = vmul.f32 %v10294_v4, %v10293_v33  ;;  %3392 = vpow2.f32 %v7713_v52  ;;  %v10299_v4 = vld [vmem:[#allocation91_spill] sm:$0xff]  ;;  %v10300_v52 = vsub.f32 1.0, %v7812_v1  ;;  %v10304_v33 = vld [vmem:[#allocation274_spill] sm:$0xff] }
 0x394   :  { %v3373_v62 = vpop.eup %3372  ;;  %v7979_v10 = vmul.f32 %v3371_v46, %v10295_v24  ;;  %v7985_v47 = vmul.f32 %v10297_v29, %v10296_v43  ;;  %3394 = vpow2.f32 %v7716_v14  ;;  %v10302_v29 = vld [vmem:[#allocation92_spill] sm:$0xff]  ;;  %v10303_v14 = vsub.f32 1.0, %v7817_v45  ;;  %v10307_v43 = vld [vmem:[#allocation214_spill] sm:$0xff] }
 0x395   :  { %v3375_v58 = vpop.eup %3374  ;;  %v7989_v63 = vmul.f32 %v3373_v62, %v10298_v59  ;;  %v7995_v24 = vmul.f32 %v10300_v52, %v10299_v4  ;;  %3396 = vpow2.f32 %v7719_v42  ;;  %v10305_v52 = vld [vmem:[#allocation93_spill] sm:$0xff]  ;;  %v10306_v42 = vsub.f32 1.0, %v7823_v0  ;;  %v10310_v4 = vld [vmem:[#allocation275_spill] sm:$0xff] }
 0x396   :  { %v3377_v46 = vpop.eup %3376  ;;  %v7999_v38 = vmul.f32 %v3375_v58, %v10301_v28  ;;  %v8005_v59 = vmul.f32 %v10303_v14, %v10302_v29  ;;  %3398 = vpow2.f32 %v7722_v61  ;;  %v10308_v14 = vld [vmem:[#allocation94_spill] sm:$0xff]  ;;  %v10309_v61 = vsub.f32 1.0, %v7829_v2  ;;  %v10313_v29 = vld [vmem:[#allocation281_spill] sm:$0xff] }
 0x397   :  { %v3379_v62 = vpop.eup %3378  ;;  %v8009_v1 = vmul.f32 %v3377_v46, %v10304_v33  ;;  %v8015_v28 = vmul.f32 %v10306_v42, %v10305_v52  ;;  %3400 = vpow2.f32 %v7725_v25  ;;  %v10311_v42 = vld [vmem:[#allocation95_spill] sm:$0xff]  ;;  %v10312_v25 = vsub.f32 1.0, %v7835_v27  ;;  %v10316_v52 = vld [vmem:[#allocation282_spill] sm:$0xff] }
 0x398   :  { %v3381_v58 = vpop.eup %3380  ;;  %v8019_v45 = vmul.f32 %v3379_v62, %v10307_v43  ;;  %v8025_v33 = vmul.f32 %v10309_v61, %v10308_v14  ;;  %3402 = vpow2.f32 %v7728_v20  ;;  %v10314_v61 = vld [vmem:[#allocation96_spill] sm:$0xff]  ;;  %v10315_v20 = vsub.f32 1.0, %v7841_v17  ;;  %v10319_v14 = vld [vmem:[#allocation215_spill] sm:$0xff] }
 0x399   :  { %v3383_v46 = vpop.eup %3382  ;;  %v8029_v0 = vmul.f32 %v3381_v58, %v10310_v4  ;;  %v8035_v43 = vmul.f32 %v10312_v25, %v10311_v42  ;;  %3404 = vpow2.f32 %v7731_v21  ;;  %v10317_v25 = vld [vmem:[#allocation97_spill] sm:$0xff]  ;;  %v10318_v21 = vsub.f32 1.0, %v7847_v49  ;;  %v10322_v42 = vld [vmem:[#allocation283_spill] sm:$0xff] }
 0x39a   :  { %v3385_v62 = vpop.eup %3384  ;;  %v8039_v2 = vmul.f32 %v3383_v46, %v10313_v29  ;;  %v8045_v4 = vmul.f32 %v10315_v20, %v10314_v61  ;;  %3406 = vpow2.f32 %v7734_v54  ;;  %v10320_v20 = vld [vmem:[#allocation98_spill] sm:$0xff]  ;;  %v10321_v54 = vsub.f32 1.0, %v7853_v60  ;;  %v10325_v61 = vld [vmem:[#allocation216_spill] sm:$0xff] }
 0x39b   :  { %v3387_v58 = vpop.eup %3386  ;;  %v8049_v27 = vmul.f32 %v3385_v62, %v10316_v52  ;;  %v8055_v29 = vmul.f32 %v10318_v21, %v10317_v25  ;;  %3408 = vpow2.f32 %v7737_v22  ;;  %v10323_v21 = vld [vmem:[#allocation99_spill] sm:$0xff]  ;;  %v10324_v22 = vsub.f32 1.0, %v7859_v8  ;;  %v10328_v25 = vld [vmem:[#allocation217_spill] sm:$0xff] }
 0x39c   :  { %v3389_v46 = vpop.eup %3388  ;;  %v8059_v17 = vmul.f32 %v3387_v58, %v10319_v14  ;;  %v8065_v52 = vmul.f32 %v10321_v54, %v10320_v20  ;;  %3410 = vpow2.f32 %v7740_v32  ;;  %v10326_v54 = vld [vmem:[#allocation100_spill] sm:$0xff]  ;;  %v10327_v32 = vsub.f32 1.0, %v7865_v50  ;;  %v10331_v20 = vld [vmem:[#allocation218_spill] sm:$0xff] }
 0x39d   :  { %v3391_v62 = vpop.eup %3390  ;;  %v8069_v49 = vmul.f32 %v3389_v46, %v10322_v42  ;;  %v8075_v14 = vmul.f32 %v10324_v22, %v10323_v21  ;;  %3412 = vpow2.f32 %v7743_v56  ;;  %v10329_v22 = vld [vmem:[#allocation101_spill] sm:$0xff]  ;;  %v10330_v56 = vsub.f32 1.0, %v7871_v12  ;;  %v10347_v21 = vld [vmem:[#allocation222_spill] sm:$0xff] }
 0x39e   :  { %v3393_v58 = vpop.eup %3392  ;;  %v8079_v60 = vmul.f32 %v3391_v62, %v10325_v61  ;;  %v8085_v42 = vmul.f32 %v10327_v32, %v10326_v54  ;;  %3414 = vpow2.f32 %v7746_v31  ;;  %v10332_v32 = vld [vmem:[#allocation102_spill] sm:$0xff]  ;;  %v10338_v54 = vld [vmem:[#allocation220_spill] sm:$0xff] }
 0x39f   :  { %v3395_v46 = vpop.eup %3394  ;;  %v8089_v8 = vmul.f32 %v3393_v58, %v10328_v25  ;;  %v8095_v61 = vmul.f32 %v10330_v56, %v10329_v22  ;;  %3416 = vpow2.f32 %v7749_v48  ;;  %v8105_v31 = vmul.f32 %v2648_v55, %v10332_v32  ;;  %v10334_v58 = vld [vmem:[#allocation219_spill] sm:$0xff]  ;;  %v10339_v32 = vld [vmem:[#allocation104_spill] sm:$0xff]  ;;  %v10342_v22 = vld [vmem:[#allocation221_spill] sm:$0xff] }
 0x3a0   :  { %v3397_v62 = vpop.eup %3396  ;;  %v8099_v50 = vmul.f32 %v3395_v46, %v10331_v20  ;;  %3418 = vpow2.f32 %v7752_v19  ;;  %v10335_v56 = vld [vmem:[#allocation103_spill] sm:$0xff]  ;;  %v10336_v48 = vsub.f32 1.0, %v7885_v30  ;;  %v10340_v19 = vsub.f32 1.0, %v7893_v6  ;;  %v10346_v55 = vld [vmem:[#allocation260_spill] sm:$0xff] }
 0x3a1   :  { %10333 = vst [vmem:[#allocation266_spill] sm:$0xff] %v8105_v31  ;;  %v3399_v25 = vpop.eup %3398  ;;  %v8109_v12 = vmul.f32 %v3397_v62, %v10334_v58  ;;  %3420 = vpow2.f32 %v7755_v39  ;;  %v10344_v39 = vsub.f32 1.0, %v7901_v44  ;;  %v10362_v31 = vld [vmem:[#allocation109_spill] sm:$0xff] }
 0x3a2   :  { %v8115_v20 = vmul.f32 %v10336_v48, %v10335_v56  ;;  %v3401_v46 = vpop.eup %3400  ;;  %v8119_v36 = vmul.f32 %v3399_v25, %v10338_v54  ;;  %v8125_v62 = vmul.f32 %v10340_v19, %v10339_v32  ;;  %3422 = vpow2.f32 %v7759_v18  ;;  %v10343_v48 = vld [vmem:[#allocation105_spill] sm:$0xff]  ;;  %v10348_v19 = vld [vmem:[#allocation106_spill] sm:$0xff] }
 0x3a3   :  { %v3403_v58 = vpop.eup %3402  ;;  %v8129_v30 = vmul.f32 %v3401_v46, %v10342_v22  ;;  %v2672_v56 = vsub.f32 1.0, %v8109_v12  ;;  %v8135_v54 = vmul.f32 %v10344_v39, %v10343_v48  ;;  %3424 = vpow2.f32 %v10346_v55  ;;  %v10351_v12 = vld [vmem:[#allocation262_spill] sm:$0xff]  ;;  %v10353_v39 = vld [vmem:[#allocation107_spill] sm:$0xff] }
 0x3a4   :  { %10337 = vst [vmem:[#allocation268_spill] sm:$0xff] %v8115_v20  ;;  %10341 = vst [vmem:[#allocation270_spill] sm:$0xff] %v8125_v62  ;;  %v3405_v25 = vpop.eup %3404  ;;  %v8139_v6 = vmul.f32 %v3403_v58, %v10347_v21  ;;  %v2673_v32 = vsub.f32 1.0, %v8119_v36  ;;  %v10349_v18 = vsub.f32 1.0, %v7909_v35  ;;  %3426 = vpow2.f32 %v10351_v12  ;;  %v10352_v62 = vld [vmem:[#allocation223_spill] sm:$0xff]  ;;  %v10356_v58 = vld [vmem:[#allocation264_spill] sm:$0xff] }
 0x3a5   :  { %10345 = vst [vmem:[#allocation272_spill] sm:$0xff] %v8135_v54  ;;  %v3407_v46 = vpop.eup %3406  ;;  %v2612_v44 = vmul.f32 %v3405_v25, %v10352_v62  ;;  %v2674_v48 = vsub.f32 1.0, %v8129_v30  ;;  %v10354_v55 = vsub.f32 1.0, %v7919_v15  ;;  %3428 = vpow2.f32 %v10356_v58  ;;  %v10357_v36 = vld [vmem:[#allocation224_spill] sm:$0xff]  ;;  %v10361_v25 = vld [vmem:[#allocation225_spill] sm:$0xff] }
 0x3a6   :  { %v8145_v22 = vmul.f32 %v10349_v18, %v10348_v19  ;;  %v3409_v21 = vpop.eup %3408  ;;  %v2613_v20 = vmul.f32 %v3407_v46, %v10357_v36  ;;  %v2675_v35 = vsub.f32 1.0, %v8139_v6  ;;  %v10358_v19 = vld [vmem:[#allocation108_spill] sm:$0xff]  ;;  %v10359_v18 = vsub.f32 1.0, %v7929_v9  ;;  %v10367_v36 = vld [vmem:[#allocation226_spill] sm:$0xff] }
 0x3a7   :  { %v8153_v54 = vmul.f32 %v10354_v55, %v10353_v39  ;;  %v3411_v62 = vpop.eup %3410  ;;  %v2614_v30 = vmul.f32 %v3409_v21, %v10361_v25  ;;  %v10363_v15 = vsub.f32 1.0, %v7939_v11  ;;  %v10364_v55 = vld [vmem:[#allocation110_spill] sm:$0xff]  ;;  %v10365_v58 = vsub.f32 1.0, %v7949_v7  ;;  %v10373_v25 = vld [vmem:[#allocation227_spill] sm:$0xff] }
 0x3a8   :  { %10350 = vst [vmem:[#allocation141_spill] sm:$0xff] %v8145_v22  ;;  %v8161_v12 = vmul.f32 %v10359_v18, %v10358_v19  ;;  %v2676_v22 = vsub.f32 1.0, %v2612_v44  ;;  %v3413_v6 = vpop.eup %3412  ;;  %v2677_v9 = vsub.f32 1.0, %v2613_v20  ;;  %v10368_v19 = vld [vmem:[#allocation111_spill] sm:$0xff]  ;;  %v10369_v18 = vsub.f32 1.0, %v7959_v23  ;;  %v10370_v44 = vld [vmem:[#allocation112_spill] sm:$0xff] }
 0x3a9   :  { %10355 = vst [vmem:[#allocation142_spill] sm:$0xff] %v8153_v54  ;;  %v8167_v39 = vmul.f32 %v10363_v15, %v10362_v31  ;;  %v8172_v46 = vmul.f32 %v10365_v58, %v10364_v55  ;;  %v2615_v54 = vmul.f32 %v3411_v62, %v10367_v36  ;;  %v10371_v21 = vsub.f32 1.0, %v7969_v5  ;;  %v3415_v31 = vpop.eup %3414  ;;  %v10374_v55 = vld [vmem:[#allocation113_spill] sm:$0xff]  ;;  %v10376_v20 = vld [vmem:[#allocation114_spill] sm:$0xff] }
 0x3aa   :  { %10360 = vst [vmem:[#allocation143_spill] sm:$0xff] %v8161_v12  ;;  %v8178_v12 = vmul.f32 %v10369_v18, %v10368_v19  ;;  %v2616_v15 = vmul.f32 %v3413_v6, %v10373_v25  ;;  %v2678_v7 = vsub.f32 1.0, %v2614_v30  ;;  %v10375_v58 = vsub.f32 1.0, %v7979_v10  ;;  %v3417_v36 = vpop.eup %3416  ;;  %v10379_v19 = vld [vmem:[#allocation228_spill] sm:$0xff]  ;;  %v10382_v30 = vld [vmem:[#allocation78_spill] sm:$0xff] }
 0x3ab   :  { %10366 = vst [vmem:[#allocation144_spill] sm:$0xff] %v8172_v46  ;;  %v8183_v11 = vmul.f32 %v10371_v21, %v10370_v44  ;;  %v10377_v62 = vsub.f32 1.0, %v7989_v63  ;;  %v2617_v18 = vmul.f32 %v3415_v31, %v10379_v19  ;;  %v2679_v5 = vsub.f32 1.0, %v2615_v54  ;;  %v10380_v44 = vld [vmem:[#allocation115_spill] sm:$0xff]  ;;  %v3419_v25 = vpop.eup %3418  ;;  %v10388_v54 = vld [vmem:[#allocation12_spill] sm:$0xff] }
 0x3ac   :  { %v8189_v46 = vmul.f32 %v10375_v58, %v10374_v55  ;;  %v10381_v21 = vsub.f32 1.0, %v7999_v38  ;;  %v10383_v6 = vsub.f32 1.0, %v8009_v1  ;;  %v10385_v55 = vld [vmem:[#allocation229_spill] sm:$0xff]  ;;  %v2680_v63 = vsub.f32 1.0, %v2616_v15  ;;  %v3421_v19 = vpop.eup %3420  ;;  %v10394_v15 = vld [vmem:[#allocation118_spill] sm:$0xff] }
 0x3ad   :  { %10372 = vst [vmem:[#allocation145_spill] sm:$0xff] %v8183_v11  ;;  %v8194_v23 = vmul.f32 %v10377_v62, %v10376_v20  ;;  %v2618_v58 = vmul.f32 %v3417_v36, %v10385_v55  ;;  %v10386_v20 = vld [vmem:[#allocation116_spill] sm:$0xff]  ;;  %v10387_v62 = vsub.f32 1.0, %v8019_v45  ;;  %v10389_v31 = vsub.f32 1.0, %v8029_v0  ;;  %v3423_v55 = vpop.eup %3422 }
 0x3ae   :  { %v8200_v11 = vmul.f32 %v10381_v21, %v10380_v44  ;;  %v8205_v10 = vmul.f32 %v10383_v6, %v10382_v30  ;;  %v10391_v44 = vld [vmem:[#allocation230_spill] sm:$0xff]  ;;  %v2681_v1 = vsub.f32 1.0, %v2617_v18  ;;  %v10392_v30 = vld [vmem:[#allocation117_spill] sm:$0xff]  ;;  %v10393_v6 = vsub.f32 1.0, %v8039_v2  ;;  %v10400_v18 = vld [vmem:[#allocation119_spill] sm:$0xff] }
 0x3af   :  { %10378 = vst [vmem:[#allocation146_spill] sm:$0xff] %v8194_v23  ;;  %v8211_v23 = vmul.f32 %v10387_v62, %v10386_v20  ;;  %v8216_v38 = vmul.f32 %v10389_v31, %v10388_v54  ;;  %v2619_v21 = vmul.f32 %v3419_v25, %v10391_v44  ;;  %v10395_v36 = vsub.f32 1.0, %v8049_v27  ;;  %v10397_v20 = vld [vmem:[#allocation231_spill] sm:$0xff]  ;;  %v10398_v54 = vld [vmem:[#allocation80_spill] sm:$0xff]  ;;  %v3425_v44 = vpop.eup %3424 }
 0x3b0   :  { %10384 = vst [vmem:[#allocation147_spill] sm:$0xff] %v8205_v10  ;;  %v8222_v10 = vmul.f32 %v10393_v6, %v10392_v30  ;;  %v2620_v62 = vmul.f32 %v3421_v19, %v10397_v20  ;;  %v2682_v0 = vsub.f32 1.0, %v2618_v58  ;;  %v10399_v31 = vsub.f32 1.0, %v8059_v17  ;;  %v10403_v30 = vld [vmem:[#allocation232_spill] sm:$0xff]  ;;  %v3427_v20 = vpop.eup %3426 }
 0x3b1   :  { %10390 = vst [vmem:[#allocation148_spill] sm:$0xff] %v8216_v38  ;;  %v8227_v45 = vmul.f32 %v10395_v36, %v10394_v15  ;;  %v10401_v25 = vsub.f32 1.0, %v8069_v49  ;;  %v2621_v6 = vmul.f32 %v3423_v55, %v10403_v30  ;;  %v2683_v27 = vsub.f32 1.0, %v2619_v21  ;;  %v10404_v15 = vld [vmem:[#allocation15_spill] sm:$0xff]  ;;  %v10407_v58 = vld [vmem:[#allocation120_spill] sm:$0xff]  ;;  %v10413_v21 = vld [vmem:[#allocation18_spill] sm:$0xff] }
 0x3b2   :  { %v8233_v38 = vmul.f32 %v10399_v31, %v10398_v54  ;;  %v10405_v36 = vsub.f32 1.0, %v8079_v60  ;;  %v10408_v19 = vsub.f32 1.0, %v8089_v8  ;;  %v10410_v54 = vld [vmem:[#allocation233_spill] sm:$0xff]  ;;  %v2684_v49 = vsub.f32 1.0, %v2620_v62  ;;  %v3429_v60 = vpop.eup %3428  ;;  %v10415_v30 = vld [vmem:[#allocation234_spill] sm:$0xff] }
 0x3b3   :  { %10396 = vst [vmem:[#allocation149_spill] sm:$0xff] %v8227_v45  ;;  %v8238_v2 = vmul.f32 %v10401_v25, %v10400_v18  ;;  %v2622_v31 = vmul.f32 %v3425_v44, %v10410_v54  ;;  %v10411_v18 = vld [vmem:[#allocation121_spill] sm:$0xff]  ;;  %v10412_v25 = vsub.f32 1.0, %v8099_v50  ;;  %v8258_v55 = vmul.f32 %v2672_v56, %v10413_v21  ;;  %v10418_v44 = vld [vmem:[#allocation235_spill] sm:$0xff]  ;;  %v10421_v21 = vld [vmem:[#allocation126_spill] sm:$0xff] }
 0x3b4   :  { %v8244_v45 = vmul.f32 %v10405_v36, %v10404_v15  ;;  %v8249_v17 = vmul.f32 %v10408_v19, %v10407_v58  ;;  %v2623_v15 = vmul.f32 %v3427_v20, %v10415_v30  ;;  %v2685_v36 = vsub.f32 1.0, %v2621_v6  ;;  %v10417_v58 = vld [vmem:[#allocation123_spill] sm:$0xff]  ;;  %v10424_v30 = vld [vmem:[#allocation129_spill] sm:$0xff] }
 0x3b5   :  { %10402 = vst [vmem:[#allocation150_spill] sm:$0xff] %v8238_v2  ;;  %v8255_v2 = vmul.f32 %v10412_v25, %v10411_v18  ;;  %10414 = vst [vmem:[#allocation153_spill] sm:$0xff] %v8258_v55  ;;  %v8265_v19 = vmul.f32 %v2674_v48, %v10417_v58  ;;  %v2624_v62 = vmul.f32 %v3429_v60, %v10418_v44  ;;  %v2686_v54 = vsub.f32 1.0, %v2622_v31  ;;  %v10420_v18 = vld [vmem:[#allocation125_spill] sm:$0xff]  ;;  %v10422_v6 = vld [vmem:[#allocation127_spill] sm:$0xff] }
 0x3b6   :  { %10406 = vst [vmem:[#allocation151_spill] sm:$0xff] %v8244_v45  ;;  %10409 = vst [vmem:[#allocation152_spill] sm:$0xff] %v8249_v17  ;;  %v10416_v45 = vld [vmem:[#allocation122_spill] sm:$0xff]  ;;  %v10419_v17 = vld [vmem:[#allocation124_spill] sm:$0xff]  ;;  %v8272_v25 = vmul.f32 %v2676_v22, %v10420_v18  ;;  %v2687_v56 = vsub.f32 1.0, %v2623_v15  ;;  %v8275_v55 = vmul.f32 %v2677_v9, %v10421_v21  ;;  %v8278_v20 = vmul.f32 %v2678_v7, %v10422_v6 }
 0x3b7   :  { %v8262_v8 = vmul.f32 %v2673_v32, %v10416_v45  ;;  %v8269_v50 = vmul.f32 %v2675_v35, %v10419_v17  ;;  %v10423_v32 = vld [vmem:[#allocation128_spill] sm:$0xff]  ;;  %v2688_v48 = vsub.f32 1.0, %v2624_v62  ;;  %v8284_v60 = vmul.f32 %v2680_v63, %v10424_v30  ;;  %v10425_v31 = vld [vmem:[#allocation130_spill] sm:$0xff]  ;;  %v10426_v17 = vld [vmem:[#allocation131_spill] sm:$0xff] }
 0x3b8   :  { %v8281_v45 = vmul.f32 %v2679_v5, %v10423_v32  ;;  %v8287_v35 = vmul.f32 %v2681_v1, %v10425_v31  ;;  %v8290_v22 = vmul.f32 %v2682_v0, %v10426_v17  ;;  %v10427_v15 = vld [vmem:[#allocation132_spill] sm:$0xff]  ;;  %v10428_v9 = vld [vmem:[#allocation133_spill] sm:$0xff]  ;;  %v10429_v7 = vld [vmem:[#allocation134_spill] sm:$0xff]  ;;  %v8311_v0 = vadd.f32 1.0, %v7881_v34 }
 0x3b9   :  { %v8293_v58 = vmul.f32 %v2683_v27, %v10427_v15  ;;  %v8296_v44 = vmul.f32 %v2684_v49, %v10428_v9  ;;  %v8299_v18 = vmul.f32 %v2685_v36, %v10429_v7  ;;  %v10430_v5 = vld [vmem:[#allocation135_spill] sm:$0xff]  ;;  %v10431_v63 = vld [vmem:[#allocation136_spill] sm:$0xff]  ;;  %v10432_v1 = vld [vmem:[#allocation137_spill] sm:$0xff]  ;;  %v8314_v27 = vadd.f32 1.0, %v7889_v16 }
 0x3ba   :  { %v8302_v62 = vmul.f32 %v2686_v54, %v10430_v5  ;;  %v8305_v21 = vmul.f32 %v2687_v56, %v10431_v63  ;;  %v8308_v6 = vmul.f32 %v2688_v48, %v10432_v1  ;;  %v8317_v49 = vadd.f32 1.0, %v7897_v13  ;;  %v10441_v63 = vld [vmem:[#allocation144_spill] sm:$0xff] }
 0x3bb   :  { %v8320_v36 = vadd.f32 1.0, %v7905_v37  ;;  %v8323_v54 = vadd.f32 1.0, %v7915_v26  ;;  %v8326_v56 = vadd.f32 1.0, %v7925_v53  ;;  %v8329_v32 = vadd.f32 1.0, %v7935_v41 }
 0x3bc   :  { %v8332_v34 = vadd.f32 1.0, %v7945_v57  ;;  %v8335_v16 = vadd.f32 1.0, %v7955_v3  ;;  %v8338_v13 = vadd.f32 1.0, %v7965_v51  ;;  %v8341_v37 = vadd.f32 1.0, %v7975_v40 }
 0x3bd   :  { %v8344_v26 = vadd.f32 1.0, %v7985_v47  ;;  %v8347_v53 = vadd.f32 1.0, %v7995_v24  ;;  %v8350_v41 = vadd.f32 1.0, %v8005_v59  ;;  %v8353_v57 = vadd.f32 1.0, %v8015_v28 }
 0x3be   :  { %v8356_v3 = vadd.f32 1.0, %v8025_v33  ;;  %v8359_v51 = vadd.f32 1.0, %v8035_v43  ;;  %v8362_v40 = vadd.f32 1.0, %v8045_v4  ;;  %v8365_v47 = vadd.f32 1.0, %v8055_v29  ;;  %v10433_v43 = vld [vmem:[#allocation266_spill] sm:$0xff]  ;;  %v10434_v4 = vld [vmem:[#allocation268_spill] sm:$0xff] }
 0x3bf   :  { %v8368_v24 = vadd.f32 1.0, %v8065_v52  ;;  %v8371_v59 = vadd.f32 1.0, %v8075_v14  ;;  %v8374_v28 = vadd.f32 1.0, %v8085_v42  ;;  %v8377_v33 = vadd.f32 1.0, %v8095_v61  ;;  %v10435_v29 = vld [vmem:[#allocation270_spill] sm:$0xff]  ;;  %v10436_v52 = vld [vmem:[#allocation272_spill] sm:$0xff] }
 0x3c0   :  { %v8380_v48 = vadd.f32 1.0, %v10433_v43  ;;  %v8383_v30 = vadd.f32 1.0, %v10434_v4  ;;  %v8386_v31 = vadd.f32 1.0, %v10435_v29  ;;  %v8389_v17 = vadd.f32 1.0, %v10436_v52  ;;  %v10437_v14 = vld [vmem:[#allocation141_spill] sm:$0xff]  ;;  %v10438_v42 = vld [vmem:[#allocation142_spill] sm:$0xff] }
 0x3c1   :  { %v8392_v15 = vadd.f32 1.0, %v10437_v14  ;;  %v8395_v9 = vadd.f32 1.0, %v10438_v42  ;;  %v10439_v61 = vld [vmem:[#allocation143_spill] sm:$0xff]  ;;  %v8401_v5 = vadd.f32 1.0, %v8167_v39  ;;  %v8404_v1 = vadd.f32 1.0, %v10441_v63  ;;  %v10443_v4 = vld [vmem:[#allocation145_spill] sm:$0xff] }
 0x3c2   :  { %v8398_v7 = vadd.f32 1.0, %v10439_v61  ;;  %v8407_v43 = vadd.f32 1.0, %v8178_v12  ;;  %v8410_v29 = vadd.f32 1.0, %v10443_v4  ;;  %v8413_v52 = vadd.f32 1.0, %v8189_v46  ;;  %v10445_v14 = vld [vmem:[#allocation146_spill] sm:$0xff]  ;;  %v10447_v39 = vld [vmem:[#allocation147_spill] sm:$0xff] }
 0x3c3   :  { %10440 = vst [vmem:[#allocation73_spill] sm:$0xff] %v8401_v5  ;;  %v8416_v42 = vadd.f32 1.0, %v10445_v14  ;;  %v8419_v61 = vadd.f32 1.0, %v8200_v11  ;;  %v8422_v5 = vadd.f32 1.0, %v10447_v39  ;;  %v8425_v63 = vadd.f32 1.0, %v8211_v23  ;;  %v10450_v12 = vld [vmem:[#allocation148_spill] sm:$0xff] }
 0x3c4   :  { %10442 = vst [vmem:[#allocation154_spill] sm:$0xff] %v8407_v43  ;;  %10444 = vst [vmem:[#allocation155_spill] sm:$0xff] %v8413_v52  ;;  %v8428_v43 = vadd.f32 1.0, %v10450_v12  ;;  %v8431_v4 = vadd.f32 1.0, %v8222_v10  ;;  %v10452_v46 = vld [vmem:[#allocation149_spill] sm:$0xff]  ;;  %v8437_v14 = vadd.f32 1.0, %v8233_v38 }
 0x3c5   :  { %10446 = vst [vmem:[#allocation156_spill] sm:$0xff] %v8419_v61  ;;  %10448 = vst [vmem:[#allocation157_spill] sm:$0xff] %v8422_v5  ;;  %v8434_v52 = vadd.f32 1.0, %v10452_v46  ;;  %v10453_v11 = vld [vmem:[#allocation150_spill] sm:$0xff]  ;;  %v10454_v39 = vld [vmem:[#allocation151_spill] sm:$0xff]  ;;  %v8449_v12 = vadd.f32 1.0, %v8255_v2 }
 0x3c6   :  { %10449 = vst [vmem:[#allocation158_spill] sm:$0xff] %v8425_v63  ;;  %10451 = vst [vmem:[#allocation159_spill] sm:$0xff] %v8431_v4  ;;  %v8440_v61 = vadd.f32 1.0, %v10453_v11  ;;  %v8443_v5 = vadd.f32 1.0, %v10454_v39  ;;  %v10455_v23 = vld [vmem:[#allocation152_spill] sm:$0xff]  ;;  %v10456_v10 = vld [vmem:[#allocation153_spill] sm:$0xff] }
 0x3c7   :  { %v8446_v63 = vadd.f32 1.0, %v10455_v23  ;;  %v8452_v4 = vadd.f32 1.0, %v10456_v10  ;;  %v8455_v46 = vadd.f32 1.0, %v8262_v8  ;;  %v8458_v38 = vadd.f32 1.0, %v8265_v19 }
 0x3c8   :  { %v8461_v11 = vadd.f32 1.0, %v8269_v50  ;;  %v8464_v39 = vadd.f32 1.0, %v8272_v25  ;;  %v8467_v23 = vadd.f32 1.0, %v8275_v55  ;;  %v8470_v2 = vadd.f32 1.0, %v8278_v20 }
 0x3c9   :  { %v8473_v10 = vadd.f32 1.0, %v8281_v45  ;;  %v8476_v8 = vadd.f32 1.0, %v8284_v60  ;;  %v8479_v19 = vadd.f32 1.0, %v8287_v35  ;;  %v8482_v50 = vadd.f32 1.0, %v8290_v22  ;;  %v10465_v22 = vld [vmem:[#allocation24_spill] sm:$0xff] }
 0x3ca   :  { %v8485_v25 = vadd.f32 1.0, %v8293_v58  ;;  %v8488_v55 = vadd.f32 1.0, %v8296_v44  ;;  %v8491_v20 = vadd.f32 1.0, %v8299_v18  ;;  %v8494_v45 = vadd.f32 1.0, %v8302_v62  ;;  %v10466_v58 = vld [vmem:[#allocation2_spill] sm:$0xff]  ;;  %v10467_v44 = vld [vmem:[#allocation3_spill] sm:$0xff] }
 0x3cb   :  { %10457 = vst [vmem:[#allocation160_spill] sm:$0xff] %v8479_v19  ;;  %10458 = vst [vmem:[#allocation161_spill] sm:$0xff] %v8482_v50  ;;  %v8497_v60 = vadd.f32 1.0, %v8305_v21  ;;  %v8500_v35 = vadd.f32 1.0, %v8308_v6  ;;  %v2817_v50 = vmul.f32 %v8311_v0, %v10465_v22  ;;  %v10468_v18 = vld [vmem:[#allocation4_spill] sm:$0xff]  ;;  %v10469_v62 = vld [vmem:[#allocation6_spill] sm:$0xff] }
 0x3cc   :  { %10459 = vst [vmem:[#allocation162_spill] sm:$0xff] %v8485_v25  ;;  %10460 = vst [vmem:[#allocation163_spill] sm:$0xff] %v8488_v55  ;;  %v2818_v25 = vmul.f32 %v8314_v27, %v10466_v58  ;;  %v2819_v55 = vmul.f32 %v8317_v49, %v10467_v44  ;;  %v10470_v21 = vld [vmem:[#allocation5_spill] sm:$0xff]  ;;  %v10471_v6 = vld [vmem:[#allocation7_spill] sm:$0xff] }
 0x3cd   :  { %10461 = vst [vmem:[#allocation164_spill] sm:$0xff] %v8491_v20  ;;  %10462 = vst [vmem:[#allocation165_spill] sm:$0xff] %v8494_v45  ;;  %v2820_v20 = vmul.f32 %v8320_v36, %v10468_v18  ;;  %v2821_v45 = vmul.f32 %v8323_v54, %v10469_v62  ;;  %v10472_v19 = vld [vmem:[#allocation8_spill] sm:$0xff]  ;;  %v10473_v22 = vld [vmem:[#allocation10_spill] sm:$0xff] }
 0x3ce   :  { %10463 = vst [vmem:[#allocation166_spill] sm:$0xff] %v8497_v60  ;;  %10464 = vst [vmem:[#allocation167_spill] sm:$0xff] %v8500_v35  ;;  %v2822_v60 = vmul.f32 %v8326_v56, %v10470_v21  ;;  %v2823_v35 = vmul.f32 %v8329_v32, %v10471_v6  ;;  %v2824_v0 = vmul.f32 %v8332_v34, %v10472_v19  ;;  %v10474_v58 = vld [vmem:[#allocation9_spill] sm:$0xff]  ;;  %v10477_v36 = vld [vmem:[#allocation11_spill] sm:$0xff] }
 0x3cf   :  { %v2825_v27 = vmul.f32 %v8335_v16, %v10473_v22  ;;  %v2826_v49 = vmul.f32 %v8338_v13, %v10474_v58  ;;  %2881 = vst.msk [vmem:[%s8891_s5] sm:$0xff] %vm10475_vm6, %v2817_v50  ;;  %v2827_v54 = vmul.f32 %v8341_v37, %v10477_v36  ;;  %v10478_v56 = vld [vmem:[#allocation26_spill] sm:$0xff]  ;;  %v10479_v34 = vld [vmem:[#allocation27_spill] sm:$0xff]  ;;  %v10480_v13 = vld [vmem:[#allocation28_spill] sm:$0xff] }
 0x3d0   :  { %2882 = vst.msk [vmem:[%s8891_s5 + $0x8] sm:$0xff] %vm10476_vm4, %v2818_v25  ;;  %v2828_v32 = vmul.f32 %v8344_v26, %v10478_v56  ;;  %v2829_v16 = vmul.f32 %v8347_v53, %v10479_v34  ;;  %v2830_v19 = vmul.f32 %v8350_v41, %v10480_v13  ;;  %v10485_v37 = vld [vmem:[#allocation29_spill] sm:$0xff]  ;;  %v10486_v53 = vld [vmem:[#allocation30_spill] sm:$0xff]  ;;  %v10487_v50 = vld [vmem:[#allocation31_spill] sm:$0xff] }
 0x3d1   :  { %2883 = vst.msk [vmem:[%s8891_s5 + $0x10] sm:$0xff] %vm10481_vm12, %v2819_v55  ;;  %v2831_v26 = vmul.f32 %v8353_v57, %v10485_v37  ;;  %v2832_v41 = vmul.f32 %v8356_v3, %v10486_v53  ;;  %v2833_v25 = vmul.f32 %v8359_v51, %v10487_v50  ;;  %v10488_v55 = vld [vmem:[#allocation32_spill] sm:$0xff]  ;;  %v10493_v57 = vld [vmem:[#allocation33_spill] sm:$0xff]  ;;  %v10494_v51 = vld [vmem:[#allocation34_spill] sm:$0xff] }
 0x3d2   :  { %2884 = vst.msk [vmem:[%s8891_s5 + $0x18] sm:$0xff] %vm10482_vm13, %v2820_v20  ;;  %v2834_v20 = vmul.f32 %v8362_v40, %v10488_v55  ;;  %v2835_v3 = vmul.f32 %v8365_v47, %v10493_v57  ;;  %v2836_v40 = vmul.f32 %v8368_v24, %v10494_v51  ;;  %v10501_v47 = vld [vmem:[#allocation37_spill] sm:$0xff]  ;;  %v10503_v18 = vld [vmem:[#allocation39_spill] sm:$0xff]  ;;  %v10504_v21 = vld [vmem:[#allocation40_spill] sm:$0xff] }
 0x3d3   :  { %2885 = vst.msk [vmem:[%s8891_s5 + $0x20] sm:$0xff] %vm10483_vm14, %v2821_v45  ;;  %v10495_v45 = vld [vmem:[#allocation35_spill] sm:$0xff]  ;;  %v2839_v24 = vmul.f32 %v8377_v33, %v10501_v47  ;;  %v2841_v62 = vmul.f32 %v8383_v30, %v10503_v18  ;;  %v2842_v6 = vmul.f32 %v8386_v31, %v10504_v21  ;;  %vm10507_vm6 = vmmov %vm10489_vm0  ;;  %v10509_v33 = vld [vmem:[#allocation41_spill] sm:$0xff] }
 0x3d4   :  { %2886 = vst.msk [vmem:[%s8891_s5 + $0x28] sm:$0xff] %vm10484_vm15, %v2822_v60  ;;  %v2837_v60 = vmul.f32 %v8371_v59, %v10495_v45  ;;  %v10502_v59 = vld [vmem:[#allocation38_spill] sm:$0xff]  ;;  %vm10508_vm4 = vmmov %vm10489_vm0  ;;  %v10520_v36 = vld [vmem:[#allocation47_spill] sm:$0xff] }
 0x3d5   :  { %2887 = vst.msk [vmem:[%s8891_s5 + $0x30] sm:$0xff] %vm10489_vm0, %v2823_v35  ;;  %v10496_v35 = vld [vmem:[#allocation36_spill] sm:$0xff]  ;;  %v10510_v30 = vld [vmem:[#allocation42_spill] sm:$0xff]  ;;  %vm10513_vm12 = vmmov %vm10489_vm0 }
 0x3d6   :  { %2888 = vst.msk [vmem:[%s8891_s5 + $0x38] sm:$0xff] %vm10490_vm10, %v2824_v0  ;;  %v2838_v44 = vmul.f32 %v8374_v28, %v10496_v35  ;;  %v2840_v28 = vmul.f32 %v8380_v48, %v10502_v59  ;;  %v2843_v48 = vmul.f32 %v8389_v17, %v10509_v33  ;;  %v2844_v31 = vmul.f32 %v8392_v15, %v10510_v30  ;;  %v10511_v0 = vld [vmem:[#allocation43_spill] sm:$0xff]  ;;  %vm10514_vm13 = vmmov %vm10489_vm0  ;;  %v10517_v17 = vld [vmem:[#allocation45_spill] sm:$0xff] }
 0x3d7   :  { %2889 = vst.msk [vmem:[%s8891_s5 + $0x40] sm:$0xff] %vm10491_vm1, %v2825_v27  ;;  %v2845_v22 = vmul.f32 %v8395_v9, %v10511_v0  ;;  %v10512_v27 = vld [vmem:[#allocation44_spill] sm:$0xff]  ;;  %vm10515_vm14 = vmmov %vm10489_vm0  ;;  %v10518_v15 = vld [vmem:[#allocation73_spill] sm:$0xff] }
 0x3d8   :  { %2890 = vst.msk [vmem:[%s8891_s5 + $0x48] sm:$0xff] %vm10492_vm3, %v2826_v49  ;;  %v2846_v58 = vmul.f32 %v8398_v7, %v10512_v27  ;;  %vm10516_vm15 = vmmov %vm10489_vm0  ;;  %v2847_v9 = vmul.f32 %v10518_v15, %v10517_v17  ;;  %v10519_v7 = vld [vmem:[#allocation46_spill] sm:$0xff]  ;;  %v10529_v37 = vld [vmem:[#allocation51_spill] sm:$0xff] }
 0x3d9   :  { %2891 = vst.msk [vmem:[%s8891_s5 + $0x50] sm:$0xff] %vm10497_vm7, %v2827_v54  ;;  %v2848_v49 = vmul.f32 %v8404_v1, %v10519_v7  ;;  %v10521_v54 = vld [vmem:[#allocation154_spill] sm:$0xff]  ;;  %vm10523_vm10 = vmmov %vm10489_vm0  ;;  %v10526_v1 = vld [vmem:[#allocation49_spill] sm:$0xff] }
 0x3da   :  { %2892 = vst.msk [vmem:[%s8891_s5 + $0x58] sm:$0xff] %vm10498_vm8, %v2828_v32  ;;  %v2849_v56 = vmul.f32 %v10521_v54, %v10520_v36  ;;  %v10522_v32 = vld [vmem:[#allocation48_spill] sm:$0xff]  ;;  %vm10524_vm1 = vmmov %vm10489_vm0  ;;  %v10528_v13 = vld [vmem:[#allocation50_spill] sm:$0xff] }
 0x3db   :  { %2893 = vst.msk [vmem:[%s8891_s5 + $0x60] sm:$0xff] %vm10499_vm9, %v2829_v16  ;;  %v2850_v34 = vmul.f32 %v8410_v29, %v10522_v32  ;;  %vm10525_vm3 = vmmov %vm10489_vm0  ;;  %v10527_v29 = vld [vmem:[#allocation155_spill] sm:$0xff]  ;;  %v10532_v50 = vld [vmem:[#allocation157_spill] sm:$0xff] }
 0x3dc   :  { %2894 = vst.msk [vmem:[%s8891_s5 + $0x68] sm:$0xff] %vm10500_vm5, %v2830_v19  ;;  %v2851_v16 = vmul.f32 %v10527_v29, %v10526_v1  ;;  %v2852_v19 = vmul.f32 %v8416_v42, %v10528_v13  ;;  %vm10533_vm7 = vmmov %vm10489_vm0  ;;  %v10537_v42 = vld [vmem:[#allocation53_spill] sm:$0xff]  ;;  %v10538_v55 = vld [vmem:[#allocation158_spill] sm:$0xff] }
 0x3dd   :  { %2895 = vst.msk [vmem:[%s8891_s5 + $0x70] sm:$0xff] %vm10505_vm2, %v2831_v26  ;;  %v10530_v26 = vld [vmem:[#allocation156_spill] sm:$0xff]  ;;  %vm10534_vm8 = vmmov %vm10489_vm0  ;;  %v10539_v57 = vld [vmem:[#allocation54_spill] sm:$0xff] }
 0x3de   :  { %2896 = vst.msk [vmem:[%s8891_s5 + $0x78] sm:$0xff] %vm10506_vm11, %v2832_v41  ;;  %v2853_v53 = vmul.f32 %v10530_v26, %v10529_v37  ;;  %v10531_v41 = vld [vmem:[#allocation52_spill] sm:$0xff]  ;;  %vm10535_vm9 = vmmov %vm10489_vm0  ;;  %v10540_v51 = vld [vmem:[#allocation55_spill] sm:$0xff] }
 0x3df   :  { %2897 = vst.msk [vmem:[%s8891_s5 + $0x80] sm:$0xff] %vm10507_vm6, %v2833_v25  ;;  %v2854_v25 = vmul.f32 %v10532_v50, %v10531_v41  ;;  %vm10536_vm5 = vmmov %vm10489_vm0  ;;  %v10573_v27 = vld [vmem:[#allocation160_spill] sm:$0xff]  ;;  %v10574_v17 = vld [vmem:[#allocation67_spill] sm:$0xff] }
 0x3e0   :  { %2898 = vst.msk [vmem:[%s8891_s5 + $0x88] sm:$0xff] %vm10508_vm4, %v2834_v20  ;;  %v2855_v20 = vmul.f32 %v10538_v55, %v10537_v42  ;;  %vm10543_vm2 = vmmov %vm10489_vm0  ;;  %v10575_v15 = vld [vmem:[#allocation161_spill] sm:$0xff]  ;;  %v10583_v36 = vld [vmem:[#allocation163_spill] sm:$0xff] }
 0x3e1   :  { %2899 = vst.msk [vmem:[%s8891_s5 + $0x90] sm:$0xff] %vm10513_vm12, %v2835_v3  ;;  %v2856_v3 = vmul.f32 %v8428_v43, %v10539_v57  ;;  %vm10544_vm11 = vmmov %vm10489_vm0  ;;  %v10547_v43 = vld [vmem:[#allocation57_spill] sm:$0xff]  ;;  %v10585_v32 = vld [vmem:[#allocation164_spill] sm:$0xff] }
 0x3e2   :  { %2900 = vst.msk [vmem:[%s8891_s5 + $0x98] sm:$0xff] %vm10514_vm13, %v2836_v40  ;;  %v10541_v40 = vld [vmem:[#allocation159_spill] sm:$0xff]  ;;  %vm10545_vm6 = vmmov %vm10489_vm0  ;;  %v10587_v29 = vld [vmem:[#allocation165_spill] sm:$0xff] }
 0x3e3   :  { %2901 = vst.msk [vmem:[%s8891_s5 + $0xa0] sm:$0xff] %vm10515_vm14, %v2837_v60  ;;  %v2857_v45 = vmul.f32 %v10541_v40, %v10540_v51  ;;  %v10542_v60 = vld [vmem:[#allocation56_spill] sm:$0xff]  ;;  %vm10546_vm4 = vmmov %vm10489_vm0  ;;  %v10586_v1 = vld [vmem:[#allocation23_spill] sm:$0xff] }
 0x3e4   :  { %2902 = vst.msk [vmem:[%s8891_s5 + $0xa8] sm:$0xff] %vm10516_vm15, %v2838_v44  ;;  %v2858_v35 = vmul.f32 %v8434_v52, %v10542_v60  ;;  %v2859_v52 = vmul.f32 %v8437_v14, %v10547_v43  ;;  %v10548_v44 = vld [vmem:[#allocation58_spill] sm:$0xff]  ;;  %vm10551_vm12 = vmmov %vm10489_vm0  ;;  %v10592_v13 = vld [vmem:[#allocation71_spill] sm:$0xff] }
 0x3e5   :  { %2903 = vst.msk [vmem:[%s8891_s5 + $0xb0] sm:$0xff] %vm10489_vm0, %v2839_v24  ;;  %v2860_v47 = vmul.f32 %v8440_v61, %v10548_v44  ;;  %v10549_v24 = vld [vmem:[#allocation59_spill] sm:$0xff]  ;;  %vm10552_vm13 = vmmov %vm10489_vm0  ;;  %v10594_v26 = vld [vmem:[#allocation72_spill] sm:$0xff] }
 0x3e6   :  { %2904 = vst.msk [vmem:[%s8891_s5 + $0xb8] sm:$0xff] %vm10523_vm10, %v2840_v28  ;;  %v2861_v59 = vmul.f32 %v8443_v5, %v10549_v24  ;;  %v10550_v28 = vld [vmem:[#allocation16_spill] sm:$0xff]  ;;  %vm10553_vm14 = vmmov %vm10489_vm0 }
 0x3e7   :  { %2905 = vst.msk [vmem:[%s8891_s5 + $0xc0] sm:$0xff] %vm10524_vm1, %v2841_v62  ;;  %v2862_v18 = vmul.f32 %v8446_v63, %v10550_v28  ;;  %vm10554_vm15 = vmmov %vm10489_vm0  ;;  %v10555_v5 = vld [vmem:[#allocation60_spill] sm:$0xff]  ;;  %v10556_v63 = vld [vmem:[#allocation17_spill] sm:$0xff] }
 0x3e8   :  { %2906 = vst.msk [vmem:[%s8891_s5 + $0xc8] sm:$0xff] %vm10525_vm3, %v2842_v6  ;;  %v2863_v61 = vmul.f32 %v8449_v12, %v10555_v5  ;;  %v2864_v14 = vmul.f32 %v8452_v4, %v10556_v63  ;;  %v10557_v62 = vld [vmem:[#allocation61_spill] sm:$0xff]  ;;  %v10558_v6 = vld [vmem:[#allocation62_spill] sm:$0xff]  ;;  %vm10559_vm10 = vmmov %vm10489_vm0 }
 0x3e9   :  { %2907 = vst.msk [vmem:[%s8891_s5 + $0xd0] sm:$0xff] %vm10533_vm7, %v2843_v48  ;;  %v2865_v21 = vmul.f32 %v8455_v46, %v10557_v62  ;;  %v2866_v33 = vmul.f32 %v8458_v38, %v10558_v6  ;;  %vm10560_vm1 = vmmov %vm10489_vm0  ;;  %v10562_v4 = vld [vmem:[#allocation63_spill] sm:$0xff]  ;;  %v10563_v46 = vld [vmem:[#allocation20_spill] sm:$0xff] }
 0x3ea   :  { %2908 = vst.msk [vmem:[%s8891_s5 + $0xd8] sm:$0xff] %vm10534_vm8, %v2844_v31  ;;  %vm10561_vm3 = vmmov %vm10489_vm0  ;;  %v2867_v12 = vmul.f32 %v8461_v11, %v10562_v4  ;;  %v2868_v38 = vmul.f32 %v8464_v39, %v10563_v46  ;;  %v10564_v48 = vld [vmem:[#allocation64_spill] sm:$0xff]  ;;  %v10565_v31 = vld [vmem:[#allocation25_spill] sm:$0xff] }
 0x3eb   :  { %2909 = vst.msk [vmem:[%s8891_s5 + $0xe0] sm:$0xff] %vm10535_vm9, %v2845_v22  ;;  %v2869_v30 = vmul.f32 %v8467_v23, %v10564_v48  ;;  %v2870_v0 = vmul.f32 %v8470_v2, %v10565_v31  ;;  %vm10566_vm7 = vmmov %vm10489_vm0  ;;  %v10570_v11 = vld [vmem:[#allocation65_spill] sm:$0xff]  ;;  %v10571_v23 = vld [vmem:[#allocation22_spill] sm:$0xff] }
 0x3ec   :  { %2910 = vst.msk [vmem:[%s8891_s5 + $0xe8] sm:$0xff] %vm10536_vm5, %v2846_v58  ;;  %vm10567_vm8 = vmmov %vm10489_vm0  ;;  %v2871_v39 = vmul.f32 %v8473_v10, %v10570_v11  ;;  %v2872_v2 = vmul.f32 %v8476_v8, %v10571_v23  ;;  %v10572_v22 = vld [vmem:[#allocation66_spill] sm:$0xff]  ;;  %v10580_v10 = vld [vmem:[#allocation68_spill] sm:$0xff] }
 0x3ed   :  { %2911 = vst.msk [vmem:[%s8891_s5 + $0xf0] sm:$0xff] %vm10543_vm2, %v2847_v9  ;;  %vm10568_vm9 = vmmov %vm10489_vm0  ;;  %v2873_v58 = vmul.f32 %v10573_v27, %v10572_v22  ;;  %v2874_v9 = vmul.f32 %v10575_v15, %v10574_v17  ;;  %v10581_v8 = vld [vmem:[#allocation162_spill] sm:$0xff] }
 0x3ee   :  { %2912 = vst.msk [vmem:[%s8891_s5 + $0xf8] sm:$0xff] %vm10544_vm11, %v2848_v49  ;;  %vm10569_vm5 = vmmov %vm10489_vm0  ;;  %v2875_v7 = vmul.f32 %v10581_v8, %v10580_v10  ;;  %v10582_v49 = vld [vmem:[#allocation69_spill] sm:$0xff] }
 0x3ef   :  { %2913 = vst.msk [vmem:[%s8891_s5 + $0x100] sm:$0xff] %vm10545_vm6, %v2849_v56  ;;  %vm10576_vm2 = vmmov %vm10489_vm0  ;;  %v2876_v54 = vmul.f32 %v10583_v36, %v10582_v49  ;;  %v10584_v56 = vld [vmem:[#allocation70_spill] sm:$0xff] }
 0x3f0   :  { %2914 = vst.msk [vmem:[%s8891_s5 + $0x108] sm:$0xff] %vm10546_vm4, %v2850_v34  ;;  %vm10577_vm11 = vmmov %vm10489_vm0  ;;  %v2877_v34 = vmul.f32 %v10585_v32, %v10584_v56 }
 0x3f1   :  { %2915 = vst.msk [vmem:[%s8891_s5 + $0x110] sm:$0xff] %vm10551_vm12, %v2851_v16  ;;  %vm10578_vm6 = vmmov %vm10489_vm0  ;;  %v2878_v16 = vmul.f32 %v10587_v29, %v10586_v1 }
 0x3f2   :  { %2916 = vst.msk [vmem:[%s8891_s5 + $0x118] sm:$0xff] %vm10552_vm13, %v2852_v19  ;;  %vm10579_vm4 = vmmov %vm10489_vm0  ;;  %v10593_v19 = vld [vmem:[#allocation166_spill] sm:$0xff] }
 0x3f3   :  { %2917 = vst.msk [vmem:[%s8891_s5 + $0x120] sm:$0xff] %vm10553_vm14, %v2853_v53  ;;  %vm10588_vm12 = vmmov %vm10489_vm0  ;;  %v2879_v37 = vmul.f32 %v10593_v19, %v10592_v13  ;;  %v10595_v53 = vld [vmem:[#allocation167_spill] sm:$0xff] }
 0x3f4   :  { %2918 = vst.msk [vmem:[%s8891_s5 + $0x128] sm:$0xff] %vm10554_vm15, %v2854_v25  ;;  %vm10589_vm13 = vmmov %vm10489_vm0  ;;  %v2880_v41 = vmul.f32 %v10595_v53, %v10594_v26 }
 0x3f5   :  { %2919 = vst.msk [vmem:[%s8891_s5 + $0x130] sm:$0xff] %vm10489_vm0, %v2855_v20  ;;  %vm10590_vm14 = vmmov %vm10489_vm0 }
 0x3f6   :  { %2920 = vst.msk [vmem:[%s8891_s5 + $0x138] sm:$0xff] %vm10559_vm10, %v2856_v3  ;;  %vm10591_vm15 = vmmov %vm10489_vm0 }
 0x3f7   :  { %2921 = vst.msk [vmem:[%s8891_s5 + $0x140] sm:$0xff] %vm10560_vm1, %v2857_v45  ;;  %vm10596_vm10 = vmmov %vm10489_vm0 }
 0x3f8   :  { %2922 = vst.msk [vmem:[%s8891_s5 + $0x148] sm:$0xff] %vm10561_vm3, %v2858_v35  ;;  %vm10597_vm1 = vmmov %vm10489_vm0 }
 0x3f9   :  { %2923 = vst.msk [vmem:[%s8891_s5 + $0x150] sm:$0xff] %vm10566_vm7, %v2859_v52  ;;  %vm10598_vm3 = vmmov %vm10489_vm0 }
 0x3fa   :  { %2924 = vst.msk [vmem:[%s8891_s5 + $0x158] sm:$0xff] %vm10567_vm8, %v2860_v47  ;;  %vm10599_vm7 = vmmov %vm10489_vm0 }
 0x3fb   :  { %2925 = vst.msk [vmem:[%s8891_s5 + $0x160] sm:$0xff] %vm10568_vm9, %v2861_v59  ;;  %vm10600_vm8 = vmmov %vm10489_vm0 }
 0x3fc   :  { %2926 = vst.msk [vmem:[%s8891_s5 + $0x168] sm:$0xff] %vm10569_vm5, %v2862_v18  ;;  %vm10601_vm9 = vmmov %vm10489_vm0 }
 0x3fd   :  { %2927 = vst.msk [vmem:[%s8891_s5 + $0x170] sm:$0xff] %vm10576_vm2, %v2863_v61  ;;  %vm10602_vm5 = vmmov %vm10489_vm0 }
 0x3fe   :  { %2928 = vst.msk [vmem:[%s8891_s5 + $0x178] sm:$0xff] %vm10577_vm11, %v2864_v14  ;;  %vm10603_vm2 = vmmov %vm10489_vm0 }
 0x3ff   :  { %2929 = vst.msk [vmem:[%s8891_s5 + $0x180] sm:$0xff] %vm10578_vm6, %v2865_v21  ;;  %vm10604_vm11 = vmmov %vm10489_vm0 }
 0x400   :  { %2930 = vst.msk [vmem:[%s8891_s5 + $0x188] sm:$0xff] %vm10579_vm4, %v2866_v33 }
 0x401   :  { %2931 = vst.msk [vmem:[%s8891_s5 + $0x190] sm:$0xff] %vm10588_vm12, %v2867_v12 }
 0x402   :  { %2932 = vst.msk [vmem:[%s8891_s5 + $0x198] sm:$0xff] %vm10589_vm13, %v2868_v38 }
 0x403   :  { %2933 = vst.msk [vmem:[%s8891_s5 + $0x1a0] sm:$0xff] %vm10590_vm14, %v2869_v30 }
 0x404   :  { %2934 = vst.msk [vmem:[%s8891_s5 + $0x1a8] sm:$0xff] %vm10591_vm15, %v2870_v0 }
 0x405   :  { %2935 = vst.msk [vmem:[%s8891_s5 + $0x1b0] sm:$0xff] %vm10489_vm0, %v2871_v39 }
 0x406   :  { %2936 = vst.msk [vmem:[%s8891_s5 + $0x1b8] sm:$0xff] %vm10596_vm10, %v2872_v2 }
 0x407   :  { %2937 = vst.msk [vmem:[%s8891_s5 + $0x1c0] sm:$0xff] %vm10597_vm1, %v2873_v58 }
 0x408   :  { %2938 = vst.msk [vmem:[%s8891_s5 + $0x1c8] sm:$0xff] %vm10598_vm3, %v2874_v9 }
 0x409   :  { %2939 = vst.msk [vmem:[%s8891_s5 + $0x1d0] sm:$0xff] %vm10599_vm7, %v2875_v7 }
 0x40a   :  { %2940 = vst.msk [vmem:[%s8891_s5 + $0x1d8] sm:$0xff] %vm10600_vm8, %v2876_v54 }
 0x40b   :  { %2941 = vst.msk [vmem:[%s8891_s5 + $0x1e0] sm:$0xff] %vm10601_vm9, %v2877_v34 }
 0x40c   :  { %2942 = vst.msk [vmem:[%s8891_s5 + $0x1e8] sm:$0xff] %vm10602_vm5, %v2878_v16 }
 0x40d   :  { %2943 = vst.msk [vmem:[%s8891_s5 + $0x1f0] sm:$0xff] %vm10603_vm2, %v2879_v37 }
 0x40e   :  { %2944 = vst.msk [vmem:[%s8891_s5 + $0x1f8] sm:$0xff] %vm10604_vm11, %v2880_v41 }

</bundles_post_ra>
